<compile_context>
chip_gen: v5e
topology: v5e:2x2
jax: 0.10.0
libtpu: 0.0.40
codegen_flags: <defaults>
</compile_context>

<pallas_src>
import functools

import numpy as np
import jax
import jax.numpy as jnp
from jax.experimental import pallas as pl
from jax.experimental.pallas import tpu as pltpu

EPS = 1e-7


def _round_up(x, m):
    return ((x + m - 1) // m) * m


def _detect_vmem_bytes():
    try:
        return int(pltpu.get_tpu_info().vmem_capacity_bytes)
    except Exception:
        return 64 * 1024 * 1024        # conservative (v7x per-core VMEM)


def _stft_loss_kernel(xc_ref, xh_ref, yc_ref, yh_ref, basis_ref, out_ref, f_ref,
                      *, tm, hop, fft, half, n_pieces, n_frames):
    """One (batch row, frame tile) of one STFT resolution.

    xc_ref/yc_ref : (1, tm, hop) f32   hop-length rows of the padded signal
    xh_ref/yh_ref : (1, qr, hop) f32   halo rows (start of the next tile)
    basis_ref     : (fft, 2*half) bf16 [w*cos(bins 0..H-1) | w*(-1)^n, -w*sin(bins 1..H-1)]
    out_ref       : (1, 1, 8, 128) f32 packed per-tile partial sums (lanes 0..2)
    f_ref         : (2*tm, fft) f32    frame scratch, x frames stacked on y frames
    """
    i = pl.program_id(1)

    # ---- In-VMEM framing: F[f, q*hop + r] = rows[f + q, r] -------------------
    xrows = jnp.concatenate([xc_ref[0], xh_ref[0]], axis=0)    # (tm + qr, hop)
    yrows = jnp.concatenate([yc_ref[0], yh_ref[0]], axis=0)
    for q in range(n_pieces):                                  # unrolled, static
        c0 = q * hop
        w = min(hop, fft - c0)
        f_ref[0:tm, c0:c0 + w] = xrows[q:q + tm, 0:w]
        f_ref[tm:2 * tm, c0:c0 + w] = yrows[q:q + tm, 0:w]

    # ---- Single fused MXU matmul: stacked (x|y) frames vs resident basis. ----
    prod = jnp.dot(f_ref[...].astype(jnp.bfloat16), basis_ref[...],
                   preferred_element_type=jnp.float32)         # (2*tm, 2*half)
    # TODO(synk): confirm in the Mosaic dump these (8,128)-aligned slices stay
    # views; if copies materialize, dot into an explicit f32 scratch instead.
    xr = prod[:tm, :half]
    xi_raw = prod[:tm, half:]
    yr = prod[tm:, :half]
    yi_raw = prod[tm:, half:]

    # Column 0 of the imag half carries the (purely real) Nyquist bin; the true
    # imag(DC) is 0, so zero it for the per-bin math of bins 0..half-1.
    col0 = jax.lax.broadcasted_iota(jnp.int32, (1, half), 1) == 0
    xi = jnp.where(col0, 0.0, xi_raw)
    yi = jnp.where(col0, 0.0, yi_raw)

    # -- bins 0..half-1 --------------------------------------------------------
    dr0 = xr - yr
    di0 = xi - yi
    dif_sq = jnp.maximum(dr0 * dr0 + di0 * di0, EPS)
    v_y = jnp.maximum(yr * yr + yi * yi, EPS)                  # y_mag**2 (clamped)
    v_x = jnp.maximum(xr * xr + xi * xi, EPS)
    # log(|x|)/|x| = 0.5*log(v)*rsqrt(v)  (log/rsqrt run on the EUP slot)
    xs = 0.5 * jnp.log(v_x) * jax.lax.rsqrt(v_x)
    ys = 0.5 * jnp.log(v_y) * jax.lax.rsqrt(v_y)
    dlr = xr * xs - yr * ys
    dli = xi * xs - yi * ys
    dif_mag = jnp.sqrt(jnp.maximum(dlr * dlr + dli * dli, EPS))

    sc_num_rows = jnp.sum(dif_sq, axis=1, keepdims=True)       # (tm, 1)
    sc_den_rows = jnp.sum(v_y, axis=1, keepdims=True)
    mag_rows = jnp.sum(dif_mag, axis=1, keepdims=True)

    # -- Nyquist bin (imag == 0), read from imag-half column 0 ----------------
    xn = xi_raw[:, 0:1]
    yn = yi_raw[:, 0:1]
    dn = xn - yn
    v_yn = jnp.maximum(yn * yn, EPS)
    v_xn = jnp.maximum(xn * xn, EPS)
    xsn = 0.5 * jnp.log(v_xn) * jax.lax.rsqrt(v_xn)
    ysn = 0.5 * jnp.log(v_yn) * jax.lax.rsqrt(v_yn)
    dln = xn * xsn - yn * ysn
    sc_num_rows = sc_num_rows + jnp.maximum(dn * dn, EPS)
    sc_den_rows = sc_den_rows + v_yn
    mag_rows = mag_rows + jnp.sqrt(jnp.maximum(dln * dln, EPS))

    # Frame-validity mask applied on the lane-reduced (tm, 1) sums only.
    rows = jax.lax.broadcasted_iota(jnp.int32, (tm, 1), 0) + i * tm
    rmask = (rows < n_frames).astype(jnp.float32)
    sc_num_p = jnp.sum(sc_num_rows * rmask)
    sc_den_p = jnp.sum(sc_den_rows * rmask)
    mag_p = jnp.sum(mag_rows * rmask)

    # Pack the three partial sums into a single output block (lanes 0..2).
    lane = jax.lax.broadcasted_iota(jnp.int32, (8, 128), 1)
    out_ref[0, 0] = jnp.where(
        lane == 0, sc_num_p,
        jnp.where(lane == 1, sc_den_p, jnp.where(lane == 2, mag_p, 0.0)))


class MultiResolutionSTFTLossPallas:
    """JAX/Pallas port of demucs MultiResolutionSTFTLoss (hann window)."""

    def __init__(self, fft_sizes=(1024, 2048, 512), hop_sizes=(120, 240, 50),
                 win_lengths=(600, 1200, 240)):
        assert len(fft_sizes) == len(hop_sizes) == len(win_lengths)
        self.resolutions = list(zip(fft_sizes, hop_sizes, win_lengths))
        phys_vmem = _detect_vmem_bytes()
        self._big_vmem = phys_vmem >= 96 * 1024 * 1024         # v5e / v6e (128 MiB)
        self._vmem_limit = (96 if self._big_vmem else 56) * 1024 * 1024
        self.bases = []
        for fs, _hp, wl in self.resolutions:
            assert fs % 2 == 0 and wl <= fs
            half = fs // 2
            # torch.hann_window(wl) -> periodic hann, centered inside n_fft.
            n = np.arange(wl, dtype=np.float64)
            w = 0.5 - 0.5 * np.cos(2.0 * np.pi * n / wl)
            w_pad = np.zeros(fs, dtype=np.float64)
            left = (fs - wl) // 2
            w_pad[left:left + wl] = w
            nn = np.arange(fs, dtype=np.float64)[:, None]
            # Real half: bins 0..half-1.  Imag half: column 0 = Nyquist REAL
            # basis (w*(-1)^n, its imag is 0); columns 1..half-1 = -w*sin for
            # bins 1..half-1 (imag(DC)=0 needs no column).  -> exactly fft
            # columns: no padded MXU lanes, no in-kernel column mask needed.
            k_re = np.arange(half, dtype=np.float64)[None, :]
            real_b = w_pad[:, None] * np.cos(2.0 * np.pi * nn * k_re / fs)
            imag_b = np.zeros((fs, half), dtype=np.float64)
            imag_b[:, 0] = w_pad * np.cos(np.pi * nn[:, 0])
            if half > 1:
                k_im = np.arange(1, half, dtype=np.float64)[None, :]
                imag_b[:, 1:] = -w_pad[:, None] * np.sin(2.0 * np.pi * nn * k_im / fs)
            basis = np.concatenate([real_b, imag_b], axis=1)    # (fs, fs)
            # bf16 basis: halves resident VMEM and runs the MXU at bf16 rate
            # (frames are cast to bf16 at the matmul; accumulation stays f32).
            self.bases.append(jnp.asarray(basis, dtype=jnp.bfloat16))

    def _tile_frames(self, fft):
        # Per-resolution frame-tile size; doubled when 128 MiB VMEM is detected
        # (v5e/v6e) so the MXU streams a longer LHS and per-step overhead halves.
        if fft >= 2048:
            tm = 256
        elif fft >= 1024:
            tm = 512
        else:
            tm = 1024
        return tm * 2 if self._big_vmem else tm

    def _single(self, x, y, fft, hop, basis):
        B, T = x.shape
        half = fft // 2
        nbins = half + 1
        pad = fft // 2
        tp = T + 2 * pad
        n_frames = 1 + (tp - fft) // hop
        n_pieces = 1 + (fft - 1) // hop            # hop-rows touched per frame

        qr = 8                                     # halo rows; power of 2, | tm
        while qr < n_pieces - 1:
            qr *= 2
        tm = max(min(self._tile_frames(fft), _round_up(n_frames, qr)), qr)
        num_tiles = -(-n_frames // tm)
        r_pad = (num_tiles + 1) * tm               # covers the last halo block
        total = r_pad * hop

        def to_rows(sig):
            # torch.stft(center=True, pad_mode='reflect') framing geometry.  The
            # hop-length row reshape is free (contiguous); this ~1x signal read
            # is all the HBM traffic the kernel needs (frames are built in VMEM).
            sp = jnp.pad(sig, ((0, 0), (pad, pad)), mode='reflect')
            sp = jnp.pad(sp, ((0, 0), (0, max(0, total - tp))))[:, :total]
            return sp.reshape(B, r_pad, hop)

        cx = to_rows(x)
        cy = to_rows(y)

        kernel = functools.partial(_stft_loss_kernel, tm=tm, hop=hop, fft=fft,
                                   half=half, n_pieces=n_pieces,
                                   n_frames=n_frames)

        blk = tm // qr
        cur_spec = pl.BlockSpec((1, tm, hop), lambda b, i: (b, i, 0))
        halo_spec = pl.BlockSpec((1, qr, hop), lambda b, i: (b, (i + 1) * blk, 0))
        # Constant index_map -> the basis is DMA'd once and stays resident.
        # TODO(synk): pipeline_mode=pl.Buffered(1) would drop its second buffer
        # (~8 MiB at fft=2048); kept on the default buffering for API safety.
        basis_spec = pl.BlockSpec(basis.shape, lambda b, i: (0, 0))

        cost = pl.CostEstimate(
            flops=int(2 * B * num_tiles * (2 * tm) * fft * (2 * half)),
            transcendentals=int(6 * B * num_tiles * tm * nbins),
            bytes_accessed=int(4 * (cx.size + cy.size) + 2 * basis.size
                               + B * num_tiles * 8 * 128 * 4))

        parts = pl.pallas_call(
            kernel,
            out_shape=jax.ShapeDtypeStruct((B, num_tiles, 8, 128), jnp.float32),
            grid_spec=pltpu.PrefetchScalarGridSpec(
                num_scalar_prefetch=0,
                grid=(B, num_tiles),
                in_specs=[cur_spec, halo_spec, cur_spec, halo_spec, basis_spec],
                out_specs=pl.BlockSpec((1, 1, 8, 128), lambda b, i: (b, i, 0, 0)),
                scratch_shapes=[pltpu.VMEM((2 * tm, fft), jnp.float32)]),
            compiler_params=pltpu.CompilerParams(
                dimension_semantics=("parallel", "parallel"),
                vmem_limit_bytes=self._vmem_limit),
            cost_estimate=cost,
        )(cx, cx, cy, cy, basis)

        sc_num = jnp.sum(parts[:, :, 0, 0])
        sc_den = jnp.sum(parts[:, :, 0, 1])
        mag_sum = jnp.sum(parts[:, :, 0, 2])
        sc_loss = jnp.sqrt(sc_num) / jnp.sqrt(sc_den)
        mag_loss = mag_sum / float(B * n_frames * nbins)
        return sc_loss, mag_loss

    def __call__(self, x, y):
        if x.ndim > 2:
            x = x.reshape(-1, x.shape[-1])
            y = y.reshape(-1, y.shape[-1])
        sc_total = jnp.float32(0.0)
        mag_total = jnp.float32(0.0)
        for (fs, hp, _wl), basis in zip(self.resolutions, self.bases):
            sc, mag = self._single(x, y, fs, hp, basis)
            sc_total = sc_total + sc
            mag_total = mag_total + mag
        n = float(len(self.resolutions))
        return sc_total / n, mag_total / n


def _reference(x, y, resolutions):
    """Pure-JAX (rfft, f32) reference implementing the spec's loss formulas."""
    sc_t, mag_t = 0.0, 0.0
    for fs, hp, wl in resolutions:
        pad = fs // 2
        n = jnp.arange(wl, dtype=jnp.float32)
        w = 0.5 - 0.5 * jnp.cos(2.0 * jnp.pi * n / wl)
        left = (fs - wl) // 2
        w_pad = jnp.zeros(fs, jnp.float32).at[left:left + wl].set(w)

        def spec(s):
            sp = jnp.pad(s, ((0, 0), (pad, pad)), mode='reflect')
            nf = 1 + (s.shape[1] + 2 * pad - fs) // hp
            idx = jnp.arange(nf)[:, None] * hp + jnp.arange(fs)[None, :]
            X = jnp.fft.rfft(sp[:, idx] * w_pad, axis=-1)
            return X.real.astype(jnp.float32), X.imag.astype(jnp.float32)

        xr, xi = spec(x)
        yr, yi = spec(y)
        x_mag = jnp.sqrt(jnp.maximum(xr ** 2 + xi ** 2, EPS))
        y_mag = jnp.sqrt(jnp.maximum(yr ** 2 + yi ** 2, EPS))
        dif_sq = jnp.maximum((xr - yr) ** 2 + (xi - yi) ** 2, EPS)
        sc = jnp.sqrt(jnp.sum(dif_sq)) / jnp.sqrt(jnp.sum(y_mag ** 2))
        xs = jnp.log(x_mag) / x_mag
        ys = jnp.log(y_mag) / y_mag
        dr = xr * xs - yr * ys
        di = xi * xs - yi * ys
        mag = jnp.mean(jnp.sqrt(jnp.maximum(dr ** 2 + di ** 2, EPS)))
        sc_t = sc_t + sc
        mag_t = mag_t + mag
    n = len(resolutions)
    return sc_t / n, mag_t / n


if __name__ == "__main__":
    key = jax.random.PRNGKey(0)
    kx, ky = jax.random.split(key)
    B, T = 2, 256
    x = jax.random.normal(kx, (B, T), dtype=jnp.float32)
    y = jax.random.normal(ky, (B, T), dtype=jnp.float32)

    # Small resolutions consistent with the module's configurable
    # (fft_sizes, hop_sizes, win_lengths) lists.
    loss = MultiResolutionSTFTLossPallas(fft_sizes=(64, 128, 32),
                                         hop_sizes=(16, 32, 8),
                                         win_lengths=(40, 80, 20))

    forward = jax.jit(lambda a, b: loss(a, b))
    sc, mag = forward(x, y)
    sc, mag = jax.block_until_ready((sc, mag))

    sc_ref, mag_ref = _reference(x, y, loss.resolutions)
    assert np.allclose(float(sc), float(sc_ref), rtol=5e-2, atol=1e-3), (
        float(sc), float(sc_ref))
    assert np.allclose(float(mag), float(mag_ref), rtol=5e-2, atol=1e-3), (
        float(mag), float(mag_ref))

    print("KERNEL_OK")
</pallas_src>

<mosaic_0001>
module attributes {stable_mosaic.version = 11 : i64} {
  func.func @_stft_loss_kernel(%arg0: i32, %arg1: i32, %arg2: memref<1x16x32xf32, #tpu.memory_space<vmem>>, %arg3: memref<1x8x32xf32, #tpu.memory_space<vmem>>, %arg4: memref<1x16x32xf32, #tpu.memory_space<vmem>>, %arg5: memref<1x8x32xf32, #tpu.memory_space<vmem>>, %arg6: memref<128x128xbf16, #tpu.memory_space<vmem>>, %arg7: memref<1x1x8x128xf32, #tpu.memory_space<vmem>>, %arg8: memref<32x128xf32, #tpu.memory_space<vmem>>) attributes {dimension_semantics = [#tpu.dimension_semantics<parallel>, #tpu.dimension_semantics<parallel>], iteration_bounds = array<i64: 2, 1>, scalar_prefetch = 0 : i64, scratch_operands = 1 : i64, tpu.core_type = #tpu.core_type<tc>, window_params = [{transform_indices = @transform_0, window_bounds = array<i64: 1, 16, 32>}, {transform_indices = @transform_1, window_bounds = array<i64: 1, 8, 32>}, {transform_indices = @transform_2, window_bounds = array<i64: 1, 16, 32>}, {transform_indices = @transform_3, window_bounds = array<i64: 1, 8, 32>}, {pipeline_mode = #tpu.pipeline_mode<synchronous>, transform_indices = @transform_4, window_bounds = array<i64: 128, 128>}, {transform_indices = @transform_5, window_bounds = array<i64: 1, 1, 8, 128>}]} {
    %c0 = arith.constant 0 : index
    %c0_0 = arith.constant 0 : index
    %c0_1 = arith.constant 0 : index
    %0 = vector.load %arg2[%c0, %c0_0, %c0_1] : memref<1x16x32xf32, #tpu.memory_space<vmem>>, vector<1x16x32xf32>
    %1 = vector.shape_cast %0 : vector<1x16x32xf32> to vector<16x32xf32>
    %c0_2 = arith.constant 0 : index
    %c0_3 = arith.constant 0 : index
    %c0_4 = arith.constant 0 : index
    %2 = vector.load %arg3[%c0_2, %c0_3, %c0_4] : memref<1x8x32xf32, #tpu.memory_space<vmem>>, vector<1x8x32xf32>
    %3 = vector.shape_cast %2 : vector<1x8x32xf32> to vector<8x32xf32>
    %4 = tpu.concatenate %1, %3 in 0 : vector<16x32xf32>, vector<8x32xf32> -> vector<24x32xf32>
    %c0_5 = arith.constant 0 : index
    %c0_6 = arith.constant 0 : index
    %c0_7 = arith.constant 0 : index
    %5 = vector.load %arg4[%c0_5, %c0_6, %c0_7] : memref<1x16x32xf32, #tpu.memory_space<vmem>>, vector<1x16x32xf32>
    %6 = vector.shape_cast %5 : vector<1x16x32xf32> to vector<16x32xf32>
    %c0_8 = arith.constant 0 : index
    %c0_9 = arith.constant 0 : index
    %c0_10 = arith.constant 0 : index
    %7 = vector.load %arg5[%c0_8, %c0_9, %c0_10] : memref<1x8x32xf32, #tpu.memory_space<vmem>>, vector<1x8x32xf32>
    %8 = vector.shape_cast %7 : vector<1x8x32xf32> to vector<8x32xf32>
    %9 = tpu.concatenate %6, %8 in 0 : vector<16x32xf32>, vector<8x32xf32> -> vector<24x32xf32>
    %10 = vector.extract_strided_slice %4 {offsets = [0, 0], sizes = [16, 32], strides = [1, 1]} : vector<24x32xf32> to vector<16x32xf32>
    %c0_11 = arith.constant 0 : index
    %c0_12 = arith.constant 0 : index
    %11 = vector.load %arg8[%c0_11, %c0_12] : memref<32x128xf32, #tpu.memory_space<vmem>>, vector<16x32xf32>
    tpu.vector_store %arg8[%c0_11, %c0_12], %10 {strides = array<i32>} : memref<32x128xf32, #tpu.memory_space<vmem>>, vector<16x32xf32>,
    %12 = vector.extract_strided_slice %9 {offsets = [0, 0], sizes = [16, 32], strides = [1, 1]} : vector<24x32xf32> to vector<16x32xf32>
    %c16 = arith.constant 16 : index
    %c0_13 = arith.constant 0 : index
    %13 = vector.load %arg8[%c16, %c0_13] : memref<32x128xf32, #tpu.memory_space<vmem>>, vector<16x32xf32>
    tpu.vector_store %arg8[%c16, %c0_13], %12 {strides = array<i32>} : memref<32x128xf32, #tpu.memory_space<vmem>>, vector<16x32xf32>,
    %14 = vector.extract_strided_slice %4 {offsets = [1, 0], sizes = [16, 32], strides = [1, 1]} : vector<24x32xf32> to vector<16x32xf32>
    %c0_14 = arith.constant 0 : index
    %c32 = arith.constant 32 : index
    %15 = vector.load %arg8[%c0_14, %c32] : memref<32x128xf32, #tpu.memory_space<vmem>>, vector<16x32xf32>
    tpu.vector_store %arg8[%c0_14, %c32], %14 {strides = array<i32>} : memref<32x128xf32, #tpu.memory_space<vmem>>, vector<16x32xf32>,
    %16 = vector.extract_strided_slice %9 {offsets = [1, 0], sizes = [16, 32], strides = [1, 1]} : vector<24x32xf32> to vector<16x32xf32>
    %c16_15 = arith.constant 16 : index
    %c32_16 = arith.constant 32 : index
    %17 = vector.load %arg8[%c16_15, %c32_16] : memref<32x128xf32, #tpu.memory_space<vmem>>, vector<16x32xf32>
    tpu.vector_store %arg8[%c16_15, %c32_16], %16 {strides = array<i32>} : memref<32x128xf32, #tpu.memory_space<vmem>>, vector<16x32xf32>,
    %18 = vector.extract_strided_slice %4 {offsets = [2, 0], sizes = [16, 32], strides = [1, 1]} : vector<24x32xf32> to vector<16x32xf32>
    %c0_17 = arith.constant 0 : index
    %c64 = arith.constant 64 : index
    %19 = vector.load %arg8[%c0_17, %c64] : memref<32x128xf32, #tpu.memory_space<vmem>>, vector<16x32xf32>
    tpu.vector_store %arg8[%c0_17, %c64], %18 {strides = array<i32>} : memref<32x128xf32, #tpu.memory_space<vmem>>, vector<16x32xf32>,
    %20 = vector.extract_strided_slice %9 {offsets = [2, 0], sizes = [16, 32], strides = [1, 1]} : vector<24x32xf32> to vector<16x32xf32>
    %c16_18 = arith.constant 16 : index
    %c64_19 = arith.constant 64 : index
    %21 = vector.load %arg8[%c16_18, %c64_19] : memref<32x128xf32, #tpu.memory_space<vmem>>, vector<16x32xf32>
    tpu.vector_store %arg8[%c16_18, %c64_19], %20 {strides = array<i32>} : memref<32x128xf32, #tpu.memory_space<vmem>>, vector<16x32xf32>,
    %22 = vector.extract_strided_slice %4 {offsets = [3, 0], sizes = [16, 32], strides = [1, 1]} : vector<24x32xf32> to vector<16x32xf32>
    %c0_20 = arith.constant 0 : index
    %c96 = arith.constant 96 : index
    %23 = vector.load %arg8[%c0_20, %c96] : memref<32x128xf32, #tpu.memory_space<vmem>>, vector<16x32xf32>
    tpu.vector_store %arg8[%c0_20, %c96], %22 {strides = array<i32>} : memref<32x128xf32, #tpu.memory_space<vmem>>, vector<16x32xf32>,
    %24 = vector.extract_strided_slice %9 {offsets = [3, 0], sizes = [16, 32], strides = [1, 1]} : vector<24x32xf32> to vector<16x32xf32>
    %c16_21 = arith.constant 16 : index
    %c96_22 = arith.constant 96 : index
    %25 = vector.load %arg8[%c16_21, %c96_22] : memref<32x128xf32, #tpu.memory_space<vmem>>, vector<16x32xf32>
    tpu.vector_store %arg8[%c16_21, %c96_22], %24 {strides = array<i32>} : memref<32x128xf32, #tpu.memory_space<vmem>>, vector<16x32xf32>,
    %c0_23 = arith.constant 0 : index
    %c0_24 = arith.constant 0 : index
    %26 = vector.load %arg8[%c0_23, %c0_24] : memref<32x128xf32, #tpu.memory_space<vmem>>, vector<32x128xf32>
    %27 = arith.truncf %26 : vector<32x128xf32> to vector<32x128xbf16>
    %c0_25 = arith.constant 0 : index
    %c0_26 = arith.constant 0 : index
    %28 = vector.load %arg6[%c0_25, %c0_26] : memref<128x128xbf16, #tpu.memory_space<vmem>>, vector<128x128xbf16>
    %cst = arith.constant dense<0.000000e+00> : vector<32x128xf32>
    %29 = tpu.matmul %27, %28, %cst {dimension_numbers = #tpu.dot_dimension_numbers<[1], [0], [0], [1], [0, 0, 1, 1], [], []>} : vector<32x128xbf16>, vector<128x128xbf16>, vector<32x128xf32> -> vector<32x128xf32>
    %30 = vector.extract_strided_slice %29 {offsets = [0, 0], sizes = [16, 64], strides = [1, 1]} : vector<32x128xf32> to vector<16x64xf32>
    %31 = vector.extract_strided_slice %29 {offsets = [0, 64], sizes = [16, 64], strides = [1, 1]} : vector<32x128xf32> to vector<16x64xf32>
    %32 = vector.extract_strided_slice %29 {offsets = [16, 0], sizes = [16, 64], strides = [1, 1]} : vector<32x128xf32> to vector<16x64xf32>
    %33 = vector.extract_strided_slice %29 {offsets = [16, 64], sizes = [16, 64], strides = [1, 1]} : vector<32x128xf32> to vector<16x64xf32>
    %34 = tpu.iota {dimensions = array<i32: 1>} : vector<1x64xi32>
    %c0_i32 = arith.constant 0 : i32
    %35 = vector.broadcast %c0_i32 : i32 to vector<1x64xi32>
    %36 = arith.cmpi eq, %34, %35 : vector<1x64xi32>
    %cst_27 = arith.constant 0.000000e+00 : f32
    %37 = vector.shape_cast %36 : vector<1x64xi1> to vector<1x64xi1>
    %38 = vector.broadcast %37 : vector<1x64xi1> to vector<16x64xi1>
    %39 = vector.broadcast %cst_27 : f32 to vector<16x64xf32>
    %40 = arith.select %38, %39, %31 : vector<16x64xi1>, vector<16x64xf32>
    %cst_28 = arith.constant 0.000000e+00 : f32
    %41 = vector.shape_cast %36 : vector<1x64xi1> to vector<1x64xi1>
    %42 = vector.broadcast %41 : vector<1x64xi1> to vector<16x64xi1>
    %43 = vector.broadcast %cst_28 : f32 to vector<16x64xf32>
    %44 = arith.select %42, %43, %33 : vector<16x64xi1>, vector<16x64xf32>
    %45 = arith.subf %30, %32 : vector<16x64xf32>
    %46 = arith.subf %40, %44 : vector<16x64xf32>
    %47 = arith.mulf %45, %45 : vector<16x64xf32>
    %48 = arith.mulf %46, %46 : vector<16x64xf32>
    %49 = arith.addf %47, %48 : vector<16x64xf32>
    %cst_29 = arith.constant 1.000000e-07 : f32
    %50 = vector.broadcast %cst_29 : f32 to vector<16x64xf32>
    %51 = arith.maximumf %49, %50 : vector<16x64xf32>
    %52 = arith.mulf %32, %32 : vector<16x64xf32>
    %53 = arith.mulf %44, %44 : vector<16x64xf32>
    %54 = arith.addf %52, %53 : vector<16x64xf32>
    %cst_30 = arith.constant 1.000000e-07 : f32
    %55 = vector.broadcast %cst_30 : f32 to vector<16x64xf32>
    %56 = arith.maximumf %54, %55 : vector<16x64xf32>
    %57 = arith.mulf %30, %30 : vector<16x64xf32>
    %58 = arith.mulf %40, %40 : vector<16x64xf32>
    %59 = arith.addf %57, %58 : vector<16x64xf32>
    %cst_31 = arith.constant 1.000000e-07 : f32
    %60 = vector.broadcast %cst_31 : f32 to vector<16x64xf32>
    %61 = arith.maximumf %59, %60 : vector<16x64xf32>
    %62 = math.log %61 : vector<16x64xf32>
    %cst_32 = arith.constant 5.000000e-01 : f32
    %63 = vector.broadcast %cst_32 : f32 to vector<16x64xf32>
    %64 = arith.mulf %63, %62 : vector<16x64xf32>
    %65 = math.rsqrt %61 : vector<16x64xf32>
    %66 = arith.mulf %64, %65 : vector<16x64xf32>
    %67 = math.log %56 : vector<16x64xf32>
    %cst_33 = arith.constant 5.000000e-01 : f32
    %68 = vector.broadcast %cst_33 : f32 to vector<16x64xf32>
    %69 = arith.mulf %68, %67 : vector<16x64xf32>
    %70 = math.rsqrt %56 : vector<16x64xf32>
    %71 = arith.mulf %69, %70 : vector<16x64xf32>
    %72 = arith.mulf %30, %66 : vector<16x64xf32>
    %73 = arith.mulf %32, %71 : vector<16x64xf32>
    %74 = arith.subf %72, %73 : vector<16x64xf32>
    %75 = arith.mulf %40, %66 : vector<16x64xf32>
    %76 = arith.mulf %44, %71 : vector<16x64xf32>
    %77 = arith.subf %75, %76 : vector<16x64xf32>
    %78 = arith.mulf %74, %74 : vector<16x64xf32>
    %79 = arith.mulf %77, %77 : vector<16x64xf32>
    %80 = arith.addf %78, %79 : vector<16x64xf32>
    %cst_34 = arith.constant 1.000000e-07 : f32
    %81 = vector.broadcast %cst_34 : f32 to vector<16x64xf32>
    %82 = arith.maximumf %80, %81 : vector<16x64xf32>
    %83 = math.sqrt %82 : vector<16x64xf32>
    %cst_35 = arith.constant dense<0.000000e+00> : vector<16xf32>
    %84 = vector.multi_reduction <add>, %51, %cst_35 [1] : vector<16x64xf32> to vector<16xf32>
    %85 = vector.shape_cast %84 : vector<16xf32> to vector<16x1xf32>
    %cst_36 = arith.constant dense<0.000000e+00> : vector<16xf32>
    %86 = vector.multi_reduction <add>, %56, %cst_36 [1] : vector<16x64xf32> to vector<16xf32>
    %87 = vector.shape_cast %86 : vector<16xf32> to vector<16x1xf32>
    %cst_37 = arith.constant dense<0.000000e+00> : vector<16xf32>
    %88 = vector.multi_reduction <add>, %83, %cst_37 [1] : vector<16x64xf32> to vector<16xf32>
    %89 = vector.shape_cast %88 : vector<16xf32> to vector<16x1xf32>
    %90 = vector.extract_strided_slice %31 {offsets = [0, 0], sizes = [16, 1], strides = [1, 1]} : vector<16x64xf32> to vector<16x1xf32>
    %91 = vector.extract_strided_slice %33 {offsets = [0, 0], sizes = [16, 1], strides = [1, 1]} : vector<16x64xf32> to vector<16x1xf32>
    %92 = arith.subf %90, %91 : vector<16x1xf32>
    %93 = arith.mulf %91, %91 : vector<16x1xf32>
    %cst_38 = arith.constant 1.000000e-07 : f32
    %94 = vector.broadcast %cst_38 : f32 to vector<16x1xf32>
    %95 = arith.maximumf %93, %94 : vector<16x1xf32>
    %96 = arith.mulf %90, %90 : vector<16x1xf32>
    %cst_39 = arith.constant 1.000000e-07 : f32
    %97 = vector.broadcast %cst_39 : f32 to vector<16x1xf32>
    %98 = arith.maximumf %96, %97 : vector<16x1xf32>
    %99 = math.log %98 : vector<16x1xf32>
    %cst_40 = arith.constant 5.000000e-01 : f32
    %100 = vector.broadcast %cst_40 : f32 to vector<16x1xf32>
    %101 = arith.mulf %100, %99 : vector<16x1xf32>
    %102 = math.rsqrt %98 : vector<16x1xf32>
    %103 = arith.mulf %101, %102 : vector<16x1xf32>
    %104 = math.log %95 : vector<16x1xf32>
    %cst_41 = arith.constant 5.000000e-01 : f32
    %105 = vector.broadcast %cst_41 : f32 to vector<16x1xf32>
    %106 = arith.mulf %105, %104 : vector<16x1xf32>
    %107 = math.rsqrt %95 : vector<16x1xf32>
    %108 = arith.mulf %106, %107 : vector<16x1xf32>
    %109 = arith.mulf %90, %103 : vector<16x1xf32>
    %110 = arith.mulf %91, %108 : vector<16x1xf32>
    %111 = arith.subf %109, %110 : vector<16x1xf32>
    %112 = arith.mulf %92, %92 : vector<16x1xf32>
    %cst_42 = arith.constant 1.000000e-07 : f32
    %113 = vector.broadcast %cst_42 : f32 to vector<16x1xf32>
    %114 = arith.maximumf %112, %113 : vector<16x1xf32>
    %115 = arith.addf %85, %114 : vector<16x1xf32>
    %116 = arith.addf %87, %95 : vector<16x1xf32>
    %117 = arith.mulf %111, %111 : vector<16x1xf32>
    %cst_43 = arith.constant 1.000000e-07 : f32
    %118 = vector.broadcast %cst_43 : f32 to vector<16x1xf32>
    %119 = arith.maximumf %117, %118 : vector<16x1xf32>
    %120 = math.sqrt %119 : vector<16x1xf32>
    %121 = arith.addf %89, %120 : vector<16x1xf32>
    %122 = tpu.iota {dimensions = array<i32: 0>} : vector<16x1xi32>
    %c16_i32 = arith.constant 16 : i32
    %123 = arith.muli %arg1, %c16_i32 : i32
    %124 = vector.broadcast %123 : i32 to vector<16x1xi32>
    %125 = arith.addi %122, %124 : vector<16x1xi32>
    %c9_i32 = arith.constant 9 : i32
    %126 = vector.broadcast %c9_i32 : i32 to vector<16x1xi32>
    %127 = arith.cmpi slt, %125, %126 : vector<16x1xi32>
    %128 = arith.extui %127 : vector<16x1xi1> to vector<16x1xi32>
    %129 = arith.sitofp %128 : vector<16x1xi32> to vector<16x1xf32>
    %130 = arith.mulf %115, %129 : vector<16x1xf32>
    %131 = vector.shape_cast %130 : vector<16x1xf32> to vector<1x16x1xf32>
    %cst_44 = arith.constant dense<0.000000e+00> : vector<1xf32>
    %132 = vector.multi_reduction <add>, %131, %cst_44 [1, 2] : vector<1x16x1xf32> to vector<1xf32>
    %133 = vector.shape_cast %132 : vector<1xf32> to vector<1x1x1xf32>
    %134 = vector.extract %133[0, 0, 0] : f32 from vector<1x1x1xf32>
    %135 = arith.mulf %116, %129 : vector<16x1xf32>
    %136 = vector.shape_cast %135 : vector<16x1xf32> to vector<1x16x1xf32>
    %cst_45 = arith.constant dense<0.000000e+00> : vector<1xf32>
    %137 = vector.multi_reduction <add>, %136, %cst_45 [1, 2] : vector<1x16x1xf32> to vector<1xf32>
    %138 = vector.shape_cast %137 : vector<1xf32> to vector<1x1x1xf32>
    %139 = vector.extract %138[0, 0, 0] : f32 from vector<1x1x1xf32>
    %140 = arith.mulf %121, %129 : vector<16x1xf32>
    %141 = vector.shape_cast %140 : vector<16x1xf32> to vector<1x16x1xf32>
    %cst_46 = arith.constant dense<0.000000e+00> : vector<1xf32>
    %142 = vector.multi_reduction <add>, %141, %cst_46 [1, 2] : vector<1x16x1xf32> to vector<1xf32>
    %143 = vector.shape_cast %142 : vector<1xf32> to vector<1x1x1xf32>
    %144 = vector.extract %143[0, 0, 0] : f32 from vector<1x1x1xf32>
    %145 = tpu.iota {dimensions = array<i32: 1>} : vector<8x128xi32>
    %c0_i32_47 = arith.constant 0 : i32
    %146 = vector.broadcast %c0_i32_47 : i32 to vector<8x128xi32>
    %147 = arith.cmpi eq, %145, %146 : vector<8x128xi32>
    %c1_i32 = arith.constant 1 : i32
    %148 = vector.broadcast %c1_i32 : i32 to vector<8x128xi32>
    %149 = arith.cmpi eq, %145, %148 : vector<8x128xi32>
    %c2_i32 = arith.constant 2 : i32
    %150 = vector.broadcast %c2_i32 : i32 to vector<8x128xi32>
    %151 = arith.cmpi eq, %145, %150 : vector<8x128xi32>
    %cst_48 = arith.constant 0.000000e+00 : f32
    %152 = vector.broadcast %144 : f32 to vector<8x128xf32>
    %153 = vector.broadcast %cst_48 : f32 to vector<8x128xf32>
    %154 = arith.select %151, %152, %153 : vector<8x128xi1>, vector<8x128xf32>
    %155 = vector.broadcast %139 : f32 to vector<8x128xf32>
    %156 = arith.select %149, %155, %154 : vector<8x128xi1>, vector<8x128xf32>
    %157 = vector.broadcast %134 : f32 to vector<8x128xf32>
    %158 = arith.select %147, %157, %156 : vector<8x128xi1>, vector<8x128xf32>
    %c0_49 = arith.constant 0 : index
    %c0_50 = arith.constant 0 : index
    %c0_51 = arith.constant 0 : index
    %c0_52 = arith.constant 0 : index
    %159 = vector.load %arg7[%c0_49, %c0_50, %c0_51, %c0_52] : memref<1x1x8x128xf32, #tpu.memory_space<vmem>>, vector<1x1x8x128xf32>
    %160 = vector.shape_cast %159 : vector<1x1x8x128xf32> to vector<8x128xf32>
    %161 = vector.shape_cast %158 : vector<8x128xf32> to vector<1x1x8x128xf32>
    tpu.vector_store %arg7[%c0_49, %c0_50, %c0_51, %c0_52], %161 {strides = array<i32>} : memref<1x1x8x128xf32, #tpu.memory_space<vmem>>, vector<1x1x8x128xf32>,
    return
  }
  func.func @transform_0(%arg0: i32, %arg1: i32) -> (i32, i32, i32) {
    %c0_i32 = arith.constant 0 : i32
    %c0_i32_0 = arith.constant 0 : i32
    return %arg0, %arg1, %c0_i32 : i32, i32, i32
  }
  func.func @transform_1(%arg0: i32, %arg1: i32) -> (i32, i32, i32) {
    %c1_i32 = arith.constant 1 : i32
    %0 = arith.addi %arg1, %c1_i32 : i32
    %c2_i32 = arith.constant 2 : i32
    %1 = arith.muli %0, %c2_i32 : i32
    %c0_i32 = arith.constant 0 : i32
    %c0_i32_0 = arith.constant 0 : i32
    return %arg0, %1, %c0_i32 : i32, i32, i32
  }
  func.func @transform_2(%arg0: i32, %arg1: i32) -> (i32, i32, i32) {
    %c0_i32 = arith.constant 0 : i32
    %c0_i32_0 = arith.constant 0 : i32
    return %arg0, %arg1, %c0_i32 : i32, i32, i32
  }
  func.func @transform_3(%arg0: i32, %arg1: i32) -> (i32, i32, i32) {
    %c1_i32 = arith.constant 1 : i32
    %0 = arith.addi %arg1, %c1_i32 : i32
    %c2_i32 = arith.constant 2 : i32
    %1 = arith.muli %0, %c2_i32 : i32
    %c0_i32 = arith.constant 0 : i32
    %c0_i32_0 = arith.constant 0 : i32
    return %arg0, %1, %c0_i32 : i32, i32, i32
  }
  func.func @transform_4(%arg0: i32, %arg1: i32) -> (i32, i32) {
    %c0_i32 = arith.constant 0 : i32
    %c0_i32_0 = arith.constant 0 : i32
    %c0_i32_1 = arith.constant 0 : i32
    return %c0_i32, %c0_i32_0 : i32, i32
  }
  func.func @transform_5(%arg0: i32, %arg1: i32) -> (i32, i32, i32, i32) {
    %c0_i32 = arith.constant 0 : i32
    %c0_i32_0 = arith.constant 0 : i32
    %c0_i32_1 = arith.constant 0 : i32
    return %arg0, %arg1, %c0_i32, %c0_i32_0 : i32, i32, i32, i32
  }
}

module attributes {stable_mosaic.version = 11 : i64} {
  func.func @_stft_loss_kernel(%arg0: i32, %arg1: i32, %arg2: memref<1x24x16xf32, #tpu.memory_space<vmem>>, %arg3: memref<1x8x16xf32, #tpu.memory_space<vmem>>, %arg4: memref<1x24x16xf32, #tpu.memory_space<vmem>>, %arg5: memref<1x8x16xf32, #tpu.memory_space<vmem>>, %arg6: memref<64x64xbf16, #tpu.memory_space<vmem>>, %arg7: memref<1x1x8x128xf32, #tpu.memory_space<vmem>>, %arg8: memref<48x64xf32, #tpu.memory_space<vmem>>) attributes {dimension_semantics = [#tpu.dimension_semantics<parallel>, #tpu.dimension_semantics<parallel>], iteration_bounds = array<i64: 2, 1>, scalar_prefetch = 0 : i64, scratch_operands = 1 : i64, tpu.core_type = #tpu.core_type<tc>, window_params = [{transform_indices = @transform_0, window_bounds = array<i64: 1, 24, 16>}, {transform_indices = @transform_1, window_bounds = array<i64: 1, 8, 16>}, {transform_indices = @transform_2, window_bounds = array<i64: 1, 24, 16>}, {transform_indices = @transform_3, window_bounds = array<i64: 1, 8, 16>}, {pipeline_mode = #tpu.pipeline_mode<synchronous>, transform_indices = @transform_4, window_bounds = array<i64: 64, 64>}, {transform_indices = @transform_5, window_bounds = array<i64: 1, 1, 8, 128>}]} {
    %c0 = arith.constant 0 : index
    %c0_0 = arith.constant 0 : index
    %c0_1 = arith.constant 0 : index
    %0 = vector.load %arg2[%c0, %c0_0, %c0_1] : memref<1x24x16xf32, #tpu.memory_space<vmem>>, vector<1x24x16xf32>
    %1 = vector.shape_cast %0 : vector<1x24x16xf32> to vector<24x16xf32>
    %c0_2 = arith.constant 0 : index
    %c0_3 = arith.constant 0 : index
    %c0_4 = arith.constant 0 : index
    %2 = vector.load %arg3[%c0_2, %c0_3, %c0_4] : memref<1x8x16xf32, #tpu.memory_space<vmem>>, vector<1x8x16xf32>
    %3 = vector.shape_cast %2 : vector<1x8x16xf32> to vector<8x16xf32>
    %4 = tpu.concatenate %1, %3 in 0 : vector<24x16xf32>, vector<8x16xf32> -> vector<32x16xf32>
    %c0_5 = arith.constant 0 : index
    %c0_6 = arith.constant 0 : index
    %c0_7 = arith.constant 0 : index
    %5 = vector.load %arg4[%c0_5, %c0_6, %c0_7] : memref<1x24x16xf32, #tpu.memory_space<vmem>>, vector<1x24x16xf32>
    %6 = vector.shape_cast %5 : vector<1x24x16xf32> to vector<24x16xf32>
    %c0_8 = arith.constant 0 : index
    %c0_9 = arith.constant 0 : index
    %c0_10 = arith.constant 0 : index
    %7 = vector.load %arg5[%c0_8, %c0_9, %c0_10] : memref<1x8x16xf32, #tpu.memory_space<vmem>>, vector<1x8x16xf32>
    %8 = vector.shape_cast %7 : vector<1x8x16xf32> to vector<8x16xf32>
    %9 = tpu.concatenate %6, %8 in 0 : vector<24x16xf32>, vector<8x16xf32> -> vector<32x16xf32>
    %10 = vector.extract_strided_slice %4 {offsets = [0, 0], sizes = [24, 16], strides = [1, 1]} : vector<32x16xf32> to vector<24x16xf32>
    %c0_11 = arith.constant 0 : index
    %c0_12 = arith.constant 0 : index
    %11 = vector.load %arg8[%c0_11, %c0_12] : memref<48x64xf32, #tpu.memory_space<vmem>>, vector<24x16xf32>
    tpu.vector_store %arg8[%c0_11, %c0_12], %10 {strides = array<i32>} : memref<48x64xf32, #tpu.memory_space<vmem>>, vector<24x16xf32>,
    %12 = vector.extract_strided_slice %9 {offsets = [0, 0], sizes = [24, 16], strides = [1, 1]} : vector<32x16xf32> to vector<24x16xf32>
    %c24 = arith.constant 24 : index
    %c0_13 = arith.constant 0 : index
    %13 = vector.load %arg8[%c24, %c0_13] : memref<48x64xf32, #tpu.memory_space<vmem>>, vector<24x16xf32>
    tpu.vector_store %arg8[%c24, %c0_13], %12 {strides = array<i32>} : memref<48x64xf32, #tpu.memory_space<vmem>>, vector<24x16xf32>,
    %14 = vector.extract_strided_slice %4 {offsets = [1, 0], sizes = [24, 16], strides = [1, 1]} : vector<32x16xf32> to vector<24x16xf32>
    %c0_14 = arith.constant 0 : index
    %c16 = arith.constant 16 : index
    %15 = vector.load %arg8[%c0_14, %c16] : memref<48x64xf32, #tpu.memory_space<vmem>>, vector<24x16xf32>
    tpu.vector_store %arg8[%c0_14, %c16], %14 {strides = array<i32>} : memref<48x64xf32, #tpu.memory_space<vmem>>, vector<24x16xf32>,
    %16 = vector.extract_strided_slice %9 {offsets = [1, 0], sizes = [24, 16], strides = [1, 1]} : vector<32x16xf32> to vector<24x16xf32>
    %c24_15 = arith.constant 24 : index
    %c16_16 = arith.constant 16 : index
    %17 = vector.load %arg8[%c24_15, %c16_16] : memref<48x64xf32, #tpu.memory_space<vmem>>, vector<24x16xf32>
    tpu.vector_store %arg8[%c24_15, %c16_16], %16 {strides = array<i32>} : memref<48x64xf32, #tpu.memory_space<vmem>>, vector<24x16xf32>,
    %18 = vector.extract_strided_slice %4 {offsets = [2, 0], sizes = [24, 16], strides = [1, 1]} : vector<32x16xf32> to vector<24x16xf32>
    %c0_17 = arith.constant 0 : index
    %c32 = arith.constant 32 : index
    %19 = vector.load %arg8[%c0_17, %c32] : memref<48x64xf32, #tpu.memory_space<vmem>>, vector<24x16xf32>
    tpu.vector_store %arg8[%c0_17, %c32], %18 {strides = array<i32>} : memref<48x64xf32, #tpu.memory_space<vmem>>, vector<24x16xf32>,
    %20 = vector.extract_strided_slice %9 {offsets = [2, 0], sizes = [24, 16], strides = [1, 1]} : vector<32x16xf32> to vector<24x16xf32>
    %c24_18 = arith.constant 24 : index
    %c32_19 = arith.constant 32 : index
    %21 = vector.load %arg8[%c24_18, %c32_19] : memref<48x64xf32, #tpu.memory_space<vmem>>, vector<24x16xf32>
    tpu.vector_store %arg8[%c24_18, %c32_19], %20 {strides = array<i32>} : memref<48x64xf32, #tpu.memory_space<vmem>>, vector<24x16xf32>,
    %22 = vector.extract_strided_slice %4 {offsets = [3, 0], sizes = [24, 16], strides = [1, 1]} : vector<32x16xf32> to vector<24x16xf32>
    %c0_20 = arith.constant 0 : index
    %c48 = arith.constant 48 : index
    %23 = vector.load %arg8[%c0_20, %c48] : memref<48x64xf32, #tpu.memory_space<vmem>>, vector<24x16xf32>
    tpu.vector_store %arg8[%c0_20, %c48], %22 {strides = array<i32>} : memref<48x64xf32, #tpu.memory_space<vmem>>, vector<24x16xf32>,
    %24 = vector.extract_strided_slice %9 {offsets = [3, 0], sizes = [24, 16], strides = [1, 1]} : vector<32x16xf32> to vector<24x16xf32>
    %c24_21 = arith.constant 24 : index
    %c48_22 = arith.constant 48 : index
    %25 = vector.load %arg8[%c24_21, %c48_22] : memref<48x64xf32, #tpu.memory_space<vmem>>, vector<24x16xf32>
    tpu.vector_store %arg8[%c24_21, %c48_22], %24 {strides = array<i32>} : memref<48x64xf32, #tpu.memory_space<vmem>>, vector<24x16xf32>,
    %c0_23 = arith.constant 0 : index
    %c0_24 = arith.constant 0 : index
    %26 = vector.load %arg8[%c0_23, %c0_24] : memref<48x64xf32, #tpu.memory_space<vmem>>, vector<48x64xf32>
    %27 = arith.truncf %26 : vector<48x64xf32> to vector<48x64xbf16>
    %c0_25 = arith.constant 0 : index
    %c0_26 = arith.constant 0 : index
    %28 = vector.load %arg6[%c0_25, %c0_26] : memref<64x64xbf16, #tpu.memory_space<vmem>>, vector<64x64xbf16>
    %cst = arith.constant dense<0.000000e+00> : vector<48x64xf32>
    %29 = tpu.matmul %27, %28, %cst {dimension_numbers = #tpu.dot_dimension_numbers<[1], [0], [0], [1], [0, 0, 1, 1], [], []>} : vector<48x64xbf16>, vector<64x64xbf16>, vector<48x64xf32> -> vector<48x64xf32>
    %30 = vector.extract_strided_slice %29 {offsets = [0, 0], sizes = [24, 32], strides = [1, 1]} : vector<48x64xf32> to vector<24x32xf32>
    %31 = vector.extract_strided_slice %29 {offsets = [0, 32], sizes = [24, 32], strides = [1, 1]} : vector<48x64xf32> to vector<24x32xf32>
    %32 = vector.extract_strided_slice %29 {offsets = [24, 0], sizes = [24, 32], strides = [1, 1]} : vector<48x64xf32> to vector<24x32xf32>
    %33 = vector.extract_strided_slice %29 {offsets = [24, 32], sizes = [24, 32], strides = [1, 1]} : vector<48x64xf32> to vector<24x32xf32>
    %34 = tpu.iota {dimensions = array<i32: 1>} : vector<1x32xi32>
    %c0_i32 = arith.constant 0 : i32
    %35 = vector.broadcast %c0_i32 : i32 to vector<1x32xi32>
    %36 = arith.cmpi eq, %34, %35 : vector<1x32xi32>
    %cst_27 = arith.constant 0.000000e+00 : f32
    %37 = vector.shape_cast %36 : vector<1x32xi1> to vector<1x32xi1>
    %38 = vector.broadcast %37 : vector<1x32xi1> to vector<24x32xi1>
    %39 = vector.broadcast %cst_27 : f32 to vector<24x32xf32>
    %40 = arith.select %38, %39, %31 : vector<24x32xi1>, vector<24x32xf32>
    %cst_28 = arith.constant 0.000000e+00 : f32
    %41 = vector.shape_cast %36 : vector<1x32xi1> to vector<1x32xi1>
    %42 = vector.broadcast %41 : vector<1x32xi1> to vector<24x32xi1>
    %43 = vector.broadcast %cst_28 : f32 to vector<24x32xf32>
    %44 = arith.select %42, %43, %33 : vector<24x32xi1>, vector<24x32xf32>
    %45 = arith.subf %30, %32 : vector<24x32xf32>
    %46 = arith.subf %40, %44 : vector<24x32xf32>
    %47 = arith.mulf %45, %45 : vector<24x32xf32>
    %48 = arith.mulf %46, %46 : vector<24x32xf32>
    %49 = arith.addf %47, %48 : vector<24x32xf32>
    %cst_29 = arith.constant 1.000000e-07 : f32
    %50 = vector.broadcast %cst_29 : f32 to vector<24x32xf32>
    %51 = arith.maximumf %49, %50 : vector<24x32xf32>
    %52 = arith.mulf %32, %32 : vector<24x32xf32>
    %53 = arith.mulf %44, %44 : vector<24x32xf32>
    %54 = arith.addf %52, %53 : vector<24x32xf32>
    %cst_30 = arith.constant 1.000000e-07 : f32
    %55 = vector.broadcast %cst_30 : f32 to vector<24x32xf32>
    %56 = arith.maximumf %54, %55 : vector<24x32xf32>
    %57 = arith.mulf %30, %30 : vector<24x32xf32>
    %58 = arith.mulf %40, %40 : vector<24x32xf32>
    %59 = arith.addf %57, %58 : vector<24x32xf32>
    %cst_31 = arith.constant 1.000000e-07 : f32
    %60 = vector.broadcast %cst_31 : f32 to vector<24x32xf32>
    %61 = arith.maximumf %59, %60 : vector<24x32xf32>
    %62 = math.log %61 : vector<24x32xf32>
    %cst_32 = arith.constant 5.000000e-01 : f32
    %63 = vector.broadcast %cst_32 : f32 to vector<24x32xf32>
    %64 = arith.mulf %63, %62 : vector<24x32xf32>
    %65 = math.rsqrt %61 : vector<24x32xf32>
    %66 = arith.mulf %64, %65 : vector<24x32xf32>
    %67 = math.log %56 : vector<24x32xf32>
    %cst_33 = arith.constant 5.000000e-01 : f32
    %68 = vector.broadcast %cst_33 : f32 to vector<24x32xf32>
    %69 = arith.mulf %68, %67 : vector<24x32xf32>
    %70 = math.rsqrt %56 : vector<24x32xf32>
    %71 = arith.mulf %69, %70 : vector<24x32xf32>
    %72 = arith.mulf %30, %66 : vector<24x32xf32>
    %73 = arith.mulf %32, %71 : vector<24x32xf32>
    %74 = arith.subf %72, %73 : vector<24x32xf32>
    %75 = arith.mulf %40, %66 : vector<24x32xf32>
    %76 = arith.mulf %44, %71 : vector<24x32xf32>
    %77 = arith.subf %75, %76 : vector<24x32xf32>
    %78 = arith.mulf %74, %74 : vector<24x32xf32>
    %79 = arith.mulf %77, %77 : vector<24x32xf32>
    %80 = arith.addf %78, %79 : vector<24x32xf32>
    %cst_34 = arith.constant 1.000000e-07 : f32
    %81 = vector.broadcast %cst_34 : f32 to vector<24x32xf32>
    %82 = arith.maximumf %80, %81 : vector<24x32xf32>
    %83 = math.sqrt %82 : vector<24x32xf32>
    %cst_35 = arith.constant dense<0.000000e+00> : vector<24xf32>
    %84 = vector.multi_reduction <add>, %51, %cst_35 [1] : vector<24x32xf32> to vector<24xf32>
    %85 = vector.shape_cast %84 : vector<24xf32> to vector<24x1xf32>
    %cst_36 = arith.constant dense<0.000000e+00> : vector<24xf32>
    %86 = vector.multi_reduction <add>, %56, %cst_36 [1] : vector<24x32xf32> to vector<24xf32>
    %87 = vector.shape_cast %86 : vector<24xf32> to vector<24x1xf32>
    %cst_37 = arith.constant dense<0.000000e+00> : vector<24xf32>
    %88 = vector.multi_reduction <add>, %83, %cst_37 [1] : vector<24x32xf32> to vector<24xf32>
    %89 = vector.shape_cast %88 : vector<24xf32> to vector<24x1xf32>
    %90 = vector.extract_strided_slice %31 {offsets = [0, 0], sizes = [24, 1], strides = [1, 1]} : vector<24x32xf32> to vector<24x1xf32>
    %91 = vector.extract_strided_slice %33 {offsets = [0, 0], sizes = [24, 1], strides = [1, 1]} : vector<24x32xf32> to vector<24x1xf32>
    %92 = arith.subf %90, %91 : vector<24x1xf32>
    %93 = arith.mulf %91, %91 : vector<24x1xf32>
    %cst_38 = arith.constant 1.000000e-07 : f32
    %94 = vector.broadcast %cst_38 : f32 to vector<24x1xf32>
    %95 = arith.maximumf %93, %94 : vector<24x1xf32>
    %96 = arith.mulf %90, %90 : vector<24x1xf32>
    %cst_39 = arith.constant 1.000000e-07 : f32
    %97 = vector.broadcast %cst_39 : f32 to vector<24x1xf32>
    %98 = arith.maximumf %96, %97 : vector<24x1xf32>
    %99 = math.log %98 : vector<24x1xf32>
    %cst_40 = arith.constant 5.000000e-01 : f32
    %100 = vector.broadcast %cst_40 : f32 to vector<24x1xf32>
    %101 = arith.mulf %100, %99 : vector<24x1xf32>
    %102 = math.rsqrt %98 : vector<24x1xf32>
    %103 = arith.mulf %101, %102 : vector<24x1xf32>
    %104 = math.log %95 : vector<24x1xf32>
    %cst_41 = arith.constant 5.000000e-01 : f32
    %105 = vector.broadcast %cst_41 : f32 to vector<24x1xf32>
    %106 = arith.mulf %105, %104 : vector<24x1xf32>
    %107 = math.rsqrt %95 : vector<24x1xf32>
    %108 = arith.mulf %106, %107 : vector<24x1xf32>
    %109 = arith.mulf %90, %103 : vector<24x1xf32>
    %110 = arith.mulf %91, %108 : vector<24x1xf32>
    %111 = arith.subf %109, %110 : vector<24x1xf32>
    %112 = arith.mulf %92, %92 : vector<24x1xf32>
    %cst_42 = arith.constant 1.000000e-07 : f32
    %113 = vector.broadcast %cst_42 : f32 to vector<24x1xf32>
    %114 = arith.maximumf %112, %113 : vector<24x1xf32>
    %115 = arith.addf %85, %114 : vector<24x1xf32>
    %116 = arith.addf %87, %95 : vector<24x1xf32>
    %117 = arith.mulf %111, %111 : vector<24x1xf32>
    %cst_43 = arith.constant 1.000000e-07 : f32
    %118 = vector.broadcast %cst_43 : f32 to vector<24x1xf32>
    %119 = arith.maximumf %117, %118 : vector<24x1xf32>
    %120 = math.sqrt %119 : vector<24x1xf32>
    %121 = arith.addf %89, %120 : vector<24x1xf32>
    %122 = tpu.iota {dimensions = array<i32: 0>} : vector<24x1xi32>
    %c24_i32 = arith.constant 24 : i32
    %123 = arith.muli %arg1, %c24_i32 : i32
    %124 = vector.broadcast %123 : i32 to vector<24x1xi32>
    %125 = arith.addi %122, %124 : vector<24x1xi32>
    %c17_i32 = arith.constant 17 : i32
    %126 = vector.broadcast %c17_i32 : i32 to vector<24x1xi32>
    %127 = arith.cmpi slt, %125, %126 : vector<24x1xi32>
    %128 = arith.extui %127 : vector<24x1xi1> to vector<24x1xi32>
    %129 = arith.sitofp %128 : vector<24x1xi32> to vector<24x1xf32>
    %130 = arith.mulf %115, %129 : vector<24x1xf32>
    %131 = vector.shape_cast %130 : vector<24x1xf32> to vector<1x24x1xf32>
    %cst_44 = arith.constant dense<0.000000e+00> : vector<1xf32>
    %132 = vector.multi_reduction <add>, %131, %cst_44 [1, 2] : vector<1x24x1xf32> to vector<1xf32>
    %133 = vector.shape_cast %132 : vector<1xf32> to vector<1x1x1xf32>
    %134 = vector.extract %133[0, 0, 0] : f32 from vector<1x1x1xf32>
    %135 = arith.mulf %116, %129 : vector<24x1xf32>
    %136 = vector.shape_cast %135 : vector<24x1xf32> to vector<1x24x1xf32>
    %cst_45 = arith.constant dense<0.000000e+00> : vector<1xf32>
    %137 = vector.multi_reduction <add>, %136, %cst_45 [1, 2] : vector<1x24x1xf32> to vector<1xf32>
    %138 = vector.shape_cast %137 : vector<1xf32> to vector<1x1x1xf32>
    %139 = vector.extract %138[0, 0, 0] : f32 from vector<1x1x1xf32>
    %140 = arith.mulf %121, %129 : vector<24x1xf32>
    %141 = vector.shape_cast %140 : vector<24x1xf32> to vector<1x24x1xf32>
    %cst_46 = arith.constant dense<0.000000e+00> : vector<1xf32>
    %142 = vector.multi_reduction <add>, %141, %cst_46 [1, 2] : vector<1x24x1xf32> to vector<1xf32>
    %143 = vector.shape_cast %142 : vector<1xf32> to vector<1x1x1xf32>
    %144 = vector.extract %143[0, 0, 0] : f32 from vector<1x1x1xf32>
    %145 = tpu.iota {dimensions = array<i32: 1>} : vector<8x128xi32>
    %c0_i32_47 = arith.constant 0 : i32
    %146 = vector.broadcast %c0_i32_47 : i32 to vector<8x128xi32>
    %147 = arith.cmpi eq, %145, %146 : vector<8x128xi32>
    %c1_i32 = arith.constant 1 : i32
    %148 = vector.broadcast %c1_i32 : i32 to vector<8x128xi32>
    %149 = arith.cmpi eq, %145, %148 : vector<8x128xi32>
    %c2_i32 = arith.constant 2 : i32
    %150 = vector.broadcast %c2_i32 : i32 to vector<8x128xi32>
    %151 = arith.cmpi eq, %145, %150 : vector<8x128xi32>
    %cst_48 = arith.constant 0.000000e+00 : f32
    %152 = vector.broadcast %144 : f32 to vector<8x128xf32>
    %153 = vector.broadcast %cst_48 : f32 to vector<8x128xf32>
    %154 = arith.select %151, %152, %153 : vector<8x128xi1>, vector<8x128xf32>
    %155 = vector.broadcast %139 : f32 to vector<8x128xf32>
    %156 = arith.select %149, %155, %154 : vector<8x128xi1>, vector<8x128xf32>
    %157 = vector.broadcast %134 : f32 to vector<8x128xf32>
    %158 = arith.select %147, %157, %156 : vector<8x128xi1>, vector<8x128xf32>
    %c0_49 = arith.constant 0 : index
    %c0_50 = arith.constant 0 : index
    %c0_51 = arith.constant 0 : index
    %c0_52 = arith.constant 0 : index
    %159 = vector.load %arg7[%c0_49, %c0_50, %c0_51, %c0_52] : memref<1x1x8x128xf32, #tpu.memory_space<vmem>>, vector<1x1x8x128xf32>
    %160 = vector.shape_cast %159 : vector<1x1x8x128xf32> to vector<8x128xf32>
    %161 = vector.shape_cast %158 : vector<8x128xf32> to vector<1x1x8x128xf32>
    tpu.vector_store %arg7[%c0_49, %c0_50, %c0_51, %c0_52], %161 {strides = array<i32>} : memref<1x1x8x128xf32, #tpu.memory_space<vmem>>, vector<1x1x8x128xf32>,
    return
  }
  func.func @transform_0(%arg0: i32, %arg1: i32) -> (i32, i32, i32) {
    %c0_i32 = arith.constant 0 : i32
    %c0_i32_0 = arith.constant 0 : i32
    return %arg0, %arg1, %c0_i32 : i32, i32, i32
  }
  func.func @transform_1(%arg0: i32, %arg1: i32) -> (i32, i32, i32) {
    %c1_i32 = arith.constant 1 : i32
    %0 = arith.addi %arg1, %c1_i32 : i32
    %c3_i32 = arith.constant 3 : i32
    %1 = arith.muli %0, %c3_i32 : i32
    %c0_i32 = arith.constant 0 : i32
    %c0_i32_0 = arith.constant 0 : i32
    return %arg0, %1, %c0_i32 : i32, i32, i32
  }
  func.func @transform_2(%arg0: i32, %arg1: i32) -> (i32, i32, i32) {
    %c0_i32 = arith.constant 0 : i32
    %c0_i32_0 = arith.constant 0 : i32
    return %arg0, %arg1, %c0_i32 : i32, i32, i32
  }
  func.func @transform_3(%arg0: i32, %arg1: i32) -> (i32, i32, i32) {
    %c1_i32 = arith.constant 1 : i32
    %0 = arith.addi %arg1, %c1_i32 : i32
    %c3_i32 = arith.constant 3 : i32
    %1 = arith.muli %0, %c3_i32 : i32
    %c0_i32 = arith.constant 0 : i32
    %c0_i32_0 = arith.constant 0 : i32
    return %arg0, %1, %c0_i32 : i32, i32, i32
  }
  func.func @transform_4(%arg0: i32, %arg1: i32) -> (i32, i32) {
    %c0_i32 = arith.constant 0 : i32
    %c0_i32_0 = arith.constant 0 : i32
    %c0_i32_1 = arith.constant 0 : i32
    return %c0_i32, %c0_i32_0 : i32, i32
  }
  func.func @transform_5(%arg0: i32, %arg1: i32) -> (i32, i32, i32, i32) {
    %c0_i32 = arith.constant 0 : i32
    %c0_i32_0 = arith.constant 0 : i32
    %c0_i32_1 = arith.constant 0 : i32
    return %arg0, %arg1, %c0_i32, %c0_i32_0 : i32, i32, i32, i32
  }
}

module attributes {stable_mosaic.version = 11 : i64} {
  func.func @_stft_loss_kernel(%arg0: i32, %arg1: i32, %arg2: memref<1x40x8xf32, #tpu.memory_space<vmem>>, %arg3: memref<1x8x8xf32, #tpu.memory_space<vmem>>, %arg4: memref<1x40x8xf32, #tpu.memory_space<vmem>>, %arg5: memref<1x8x8xf32, #tpu.memory_space<vmem>>, %arg6: memref<32x32xbf16, #tpu.memory_space<vmem>>, %arg7: memref<1x1x8x128xf32, #tpu.memory_space<vmem>>, %arg8: memref<80x32xf32, #tpu.memory_space<vmem>>) attributes {dimension_semantics = [#tpu.dimension_semantics<parallel>, #tpu.dimension_semantics<parallel>], iteration_bounds = array<i64: 2, 1>, scalar_prefetch = 0 : i64, scratch_operands = 1 : i64, tpu.core_type = #tpu.core_type<tc>, window_params = [{transform_indices = @transform_0, window_bounds = array<i64: 1, 40, 8>}, {transform_indices = @transform_1, window_bounds = array<i64: 1, 8, 8>}, {transform_indices = @transform_2, window_bounds = array<i64: 1, 40, 8>}, {transform_indices = @transform_3, window_bounds = array<i64: 1, 8, 8>}, {pipeline_mode = #tpu.pipeline_mode<synchronous>, transform_indices = @transform_4, window_bounds = array<i64: 32, 32>}, {transform_indices = @transform_5, window_bounds = array<i64: 1, 1, 8, 128>}]} {
    %c0 = arith.constant 0 : index
    %c0_0 = arith.constant 0 : index
    %c0_1 = arith.constant 0 : index
    %0 = vector.load %arg2[%c0, %c0_0, %c0_1] : memref<1x40x8xf32, #tpu.memory_space<vmem>>, vector<1x40x8xf32>
    %1 = vector.shape_cast %0 : vector<1x40x8xf32> to vector<40x8xf32>
    %c0_2 = arith.constant 0 : index
    %c0_3 = arith.constant 0 : index
    %c0_4 = arith.constant 0 : index
    %2 = vector.load %arg3[%c0_2, %c0_3, %c0_4] : memref<1x8x8xf32, #tpu.memory_space<vmem>>, vector<1x8x8xf32>
    %3 = vector.shape_cast %2 : vector<1x8x8xf32> to vector<8x8xf32>
    %4 = tpu.concatenate %1, %3 in 0 : vector<40x8xf32>, vector<8x8xf32> -> vector<48x8xf32>
    %c0_5 = arith.constant 0 : index
    %c0_6 = arith.constant 0 : index
    %c0_7 = arith.constant 0 : index
    %5 = vector.load %arg4[%c0_5, %c0_6, %c0_7] : memref<1x40x8xf32, #tpu.memory_space<vmem>>, vector<1x40x8xf32>
    %6 = vector.shape_cast %5 : vector<1x40x8xf32> to vector<40x8xf32>
    %c0_8 = arith.constant 0 : index
    %c0_9 = arith.constant 0 : index
    %c0_10 = arith.constant 0 : index
    %7 = vector.load %arg5[%c0_8, %c0_9, %c0_10] : memref<1x8x8xf32, #tpu.memory_space<vmem>>, vector<1x8x8xf32>
    %8 = vector.shape_cast %7 : vector<1x8x8xf32> to vector<8x8xf32>
    %9 = tpu.concatenate %6, %8 in 0 : vector<40x8xf32>, vector<8x8xf32> -> vector<48x8xf32>
    %10 = vector.extract_strided_slice %4 {offsets = [0, 0], sizes = [40, 8], strides = [1, 1]} : vector<48x8xf32> to vector<40x8xf32>
    %c0_11 = arith.constant 0 : index
    %c0_12 = arith.constant 0 : index
    %11 = vector.load %arg8[%c0_11, %c0_12] : memref<80x32xf32, #tpu.memory_space<vmem>>, vector<40x8xf32>
    tpu.vector_store %arg8[%c0_11, %c0_12], %10 {strides = array<i32>} : memref<80x32xf32, #tpu.memory_space<vmem>>, vector<40x8xf32>,
    %12 = vector.extract_strided_slice %9 {offsets = [0, 0], sizes = [40, 8], strides = [1, 1]} : vector<48x8xf32> to vector<40x8xf32>
    %c40 = arith.constant 40 : index
    %c0_13 = arith.constant 0 : index
    %13 = vector.load %arg8[%c40, %c0_13] : memref<80x32xf32, #tpu.memory_space<vmem>>, vector<40x8xf32>
    tpu.vector_store %arg8[%c40, %c0_13], %12 {strides = array<i32>} : memref<80x32xf32, #tpu.memory_space<vmem>>, vector<40x8xf32>,
    %14 = vector.extract_strided_slice %4 {offsets = [1, 0], sizes = [40, 8], strides = [1, 1]} : vector<48x8xf32> to vector<40x8xf32>
    %c0_14 = arith.constant 0 : index
    %c8 = arith.constant 8 : index
    %15 = vector.load %arg8[%c0_14, %c8] : memref<80x32xf32, #tpu.memory_space<vmem>>, vector<40x8xf32>
    tpu.vector_store %arg8[%c0_14, %c8], %14 {strides = array<i32>} : memref<80x32xf32, #tpu.memory_space<vmem>>, vector<40x8xf32>,
    %16 = vector.extract_strided_slice %9 {offsets = [1, 0], sizes = [40, 8], strides = [1, 1]} : vector<48x8xf32> to vector<40x8xf32>
    %c40_15 = arith.constant 40 : index
    %c8_16 = arith.constant 8 : index
    %17 = vector.load %arg8[%c40_15, %c8_16] : memref<80x32xf32, #tpu.memory_space<vmem>>, vector<40x8xf32>
    tpu.vector_store %arg8[%c40_15, %c8_16], %16 {strides = array<i32>} : memref<80x32xf32, #tpu.memory_space<vmem>>, vector<40x8xf32>,
    %18 = vector.extract_strided_slice %4 {offsets = [2, 0], sizes = [40, 8], strides = [1, 1]} : vector<48x8xf32> to vector<40x8xf32>
    %c0_17 = arith.constant 0 : index
    %c16 = arith.constant 16 : index
    %19 = vector.load %arg8[%c0_17, %c16] : memref<80x32xf32, #tpu.memory_space<vmem>>, vector<40x8xf32>
    tpu.vector_store %arg8[%c0_17, %c16], %18 {strides = array<i32>} : memref<80x32xf32, #tpu.memory_space<vmem>>, vector<40x8xf32>,
    %20 = vector.extract_strided_slice %9 {offsets = [2, 0], sizes = [40, 8], strides = [1, 1]} : vector<48x8xf32> to vector<40x8xf32>
    %c40_18 = arith.constant 40 : index
    %c16_19 = arith.constant 16 : index
    %21 = vector.load %arg8[%c40_18, %c16_19] : memref<80x32xf32, #tpu.memory_space<vmem>>, vector<40x8xf32>
    tpu.vector_store %arg8[%c40_18, %c16_19], %20 {strides = array<i32>} : memref<80x32xf32, #tpu.memory_space<vmem>>, vector<40x8xf32>,
    %22 = vector.extract_strided_slice %4 {offsets = [3, 0], sizes = [40, 8], strides = [1, 1]} : vector<48x8xf32> to vector<40x8xf32>
    %c0_20 = arith.constant 0 : index
    %c24 = arith.constant 24 : index
    %23 = vector.load %arg8[%c0_20, %c24] : memref<80x32xf32, #tpu.memory_space<vmem>>, vector<40x8xf32>
    tpu.vector_store %arg8[%c0_20, %c24], %22 {strides = array<i32>} : memref<80x32xf32, #tpu.memory_space<vmem>>, vector<40x8xf32>,
    %24 = vector.extract_strided_slice %9 {offsets = [3, 0], sizes = [40, 8], strides = [1, 1]} : vector<48x8xf32> to vector<40x8xf32>
    %c40_21 = arith.constant 40 : index
    %c24_22 = arith.constant 24 : index
    %25 = vector.load %arg8[%c40_21, %c24_22] : memref<80x32xf32, #tpu.memory_space<vmem>>, vector<40x8xf32>
    tpu.vector_store %arg8[%c40_21, %c24_22], %24 {strides = array<i32>} : memref<80x32xf32, #tpu.memory_space<vmem>>, vector<40x8xf32>,
    %c0_23 = arith.constant 0 : index
    %c0_24 = arith.constant 0 : index
    %26 = vector.load %arg8[%c0_23, %c0_24] : memref<80x32xf32, #tpu.memory_space<vmem>>, vector<80x32xf32>
    %27 = arith.truncf %26 : vector<80x32xf32> to vector<80x32xbf16>
    %c0_25 = arith.constant 0 : index
    %c0_26 = arith.constant 0 : index
    %28 = vector.load %arg6[%c0_25, %c0_26] : memref<32x32xbf16, #tpu.memory_space<vmem>>, vector<32x32xbf16>
    %cst = arith.constant dense<0.000000e+00> : vector<80x32xf32>
    %29 = tpu.matmul %27, %28, %cst {dimension_numbers = #tpu.dot_dimension_numbers<[1], [0], [0], [1], [0, 0, 1, 1], [], []>} : vector<80x32xbf16>, vector<32x32xbf16>, vector<80x32xf32> -> vector<80x32xf32>
    %30 = vector.extract_strided_slice %29 {offsets = [0, 0], sizes = [40, 16], strides = [1, 1]} : vector<80x32xf32> to vector<40x16xf32>
    %31 = vector.extract_strided_slice %29 {offsets = [0, 16], sizes = [40, 16], strides = [1, 1]} : vector<80x32xf32> to vector<40x16xf32>
    %32 = vector.extract_strided_slice %29 {offsets = [40, 0], sizes = [40, 16], strides = [1, 1]} : vector<80x32xf32> to vector<40x16xf32>
    %33 = vector.extract_strided_slice %29 {offsets = [40, 16], sizes = [40, 16], strides = [1, 1]} : vector<80x32xf32> to vector<40x16xf32>
    %34 = tpu.iota {dimensions = array<i32: 1>} : vector<1x16xi32>
    %c0_i32 = arith.constant 0 : i32
    %35 = vector.broadcast %c0_i32 : i32 to vector<1x16xi32>
    %36 = arith.cmpi eq, %34, %35 : vector<1x16xi32>
    %cst_27 = arith.constant 0.000000e+00 : f32
    %37 = vector.shape_cast %36 : vector<1x16xi1> to vector<1x16xi1>
    %38 = vector.broadcast %37 : vector<1x16xi1> to vector<40x16xi1>
    %39 = vector.broadcast %cst_27 : f32 to vector<40x16xf32>
    %40 = arith.select %38, %39, %31 : vector<40x16xi1>, vector<40x16xf32>
    %cst_28 = arith.constant 0.000000e+00 : f32
    %41 = vector.shape_cast %36 : vector<1x16xi1> to vector<1x16xi1>
    %42 = vector.broadcast %41 : vector<1x16xi1> to vector<40x16xi1>
    %43 = vector.broadcast %cst_28 : f32 to vector<40x16xf32>
    %44 = arith.select %42, %43, %33 : vector<40x16xi1>, vector<40x16xf32>
    %45 = arith.subf %30, %32 : vector<40x16xf32>
    %46 = arith.subf %40, %44 : vector<40x16xf32>
    %47 = arith.mulf %45, %45 : vector<40x16xf32>
    %48 = arith.mulf %46, %46 : vector<40x16xf32>
    %49 = arith.addf %47, %48 : vector<40x16xf32>
    %cst_29 = arith.constant 1.000000e-07 : f32
    %50 = vector.broadcast %cst_29 : f32 to vector<40x16xf32>
    %51 = arith.maximumf %49, %50 : vector<40x16xf32>
    %52 = arith.mulf %32, %32 : vector<40x16xf32>
    %53 = arith.mulf %44, %44 : vector<40x16xf32>
    %54 = arith.addf %52, %53 : vector<40x16xf32>
    %cst_30 = arith.constant 1.000000e-07 : f32
    %55 = vector.broadcast %cst_30 : f32 to vector<40x16xf32>
    %56 = arith.maximumf %54, %55 : vector<40x16xf32>
    %57 = arith.mulf %30, %30 : vector<40x16xf32>
    %58 = arith.mulf %40, %40 : vector<40x16xf32>
    %59 = arith.addf %57, %58 : vector<40x16xf32>
    %cst_31 = arith.constant 1.000000e-07 : f32
    %60 = vector.broadcast %cst_31 : f32 to vector<40x16xf32>
    %61 = arith.maximumf %59, %60 : vector<40x16xf32>
    %62 = math.log %61 : vector<40x16xf32>
    %cst_32 = arith.constant 5.000000e-01 : f32
    %63 = vector.broadcast %cst_32 : f32 to vector<40x16xf32>
    %64 = arith.mulf %63, %62 : vector<40x16xf32>
    %65 = math.rsqrt %61 : vector<40x16xf32>
    %66 = arith.mulf %64, %65 : vector<40x16xf32>
    %67 = math.log %56 : vector<40x16xf32>
    %cst_33 = arith.constant 5.000000e-01 : f32
    %68 = vector.broadcast %cst_33 : f32 to vector<40x16xf32>
    %69 = arith.mulf %68, %67 : vector<40x16xf32>
    %70 = math.rsqrt %56 : vector<40x16xf32>
    %71 = arith.mulf %69, %70 : vector<40x16xf32>
    %72 = arith.mulf %30, %66 : vector<40x16xf32>
    %73 = arith.mulf %32, %71 : vector<40x16xf32>
    %74 = arith.subf %72, %73 : vector<40x16xf32>
    %75 = arith.mulf %40, %66 : vector<40x16xf32>
    %76 = arith.mulf %44, %71 : vector<40x16xf32>
    %77 = arith.subf %75, %76 : vector<40x16xf32>
    %78 = arith.mulf %74, %74 : vector<40x16xf32>
    %79 = arith.mulf %77, %77 : vector<40x16xf32>
    %80 = arith.addf %78, %79 : vector<40x16xf32>
    %cst_34 = arith.constant 1.000000e-07 : f32
    %81 = vector.broadcast %cst_34 : f32 to vector<40x16xf32>
    %82 = arith.maximumf %80, %81 : vector<40x16xf32>
    %83 = math.sqrt %82 : vector<40x16xf32>
    %cst_35 = arith.constant dense<0.000000e+00> : vector<40xf32>
    %84 = vector.multi_reduction <add>, %51, %cst_35 [1] : vector<40x16xf32> to vector<40xf32>
    %85 = vector.shape_cast %84 : vector<40xf32> to vector<40x1xf32>
    %cst_36 = arith.constant dense<0.000000e+00> : vector<40xf32>
    %86 = vector.multi_reduction <add>, %56, %cst_36 [1] : vector<40x16xf32> to vector<40xf32>
    %87 = vector.shape_cast %86 : vector<40xf32> to vector<40x1xf32>
    %cst_37 = arith.constant dense<0.000000e+00> : vector<40xf32>
    %88 = vector.multi_reduction <add>, %83, %cst_37 [1] : vector<40x16xf32> to vector<40xf32>
    %89 = vector.shape_cast %88 : vector<40xf32> to vector<40x1xf32>
    %90 = vector.extract_strided_slice %31 {offsets = [0, 0], sizes = [40, 1], strides = [1, 1]} : vector<40x16xf32> to vector<40x1xf32>
    %91 = vector.extract_strided_slice %33 {offsets = [0, 0], sizes = [40, 1], strides = [1, 1]} : vector<40x16xf32> to vector<40x1xf32>
    %92 = arith.subf %90, %91 : vector<40x1xf32>
    %93 = arith.mulf %91, %91 : vector<40x1xf32>
    %cst_38 = arith.constant 1.000000e-07 : f32
    %94 = vector.broadcast %cst_38 : f32 to vector<40x1xf32>
    %95 = arith.maximumf %93, %94 : vector<40x1xf32>
    %96 = arith.mulf %90, %90 : vector<40x1xf32>
    %cst_39 = arith.constant 1.000000e-07 : f32
    %97 = vector.broadcast %cst_39 : f32 to vector<40x1xf32>
    %98 = arith.maximumf %96, %97 : vector<40x1xf32>
    %99 = math.log %98 : vector<40x1xf32>
    %cst_40 = arith.constant 5.000000e-01 : f32
    %100 = vector.broadcast %cst_40 : f32 to vector<40x1xf32>
    %101 = arith.mulf %100, %99 : vector<40x1xf32>
    %102 = math.rsqrt %98 : vector<40x1xf32>
    %103 = arith.mulf %101, %102 : vector<40x1xf32>
    %104 = math.log %95 : vector<40x1xf32>
    %cst_41 = arith.constant 5.000000e-01 : f32
    %105 = vector.broadcast %cst_41 : f32 to vector<40x1xf32>
    %106 = arith.mulf %105, %104 : vector<40x1xf32>
    %107 = math.rsqrt %95 : vector<40x1xf32>
    %108 = arith.mulf %106, %107 : vector<40x1xf32>
    %109 = arith.mulf %90, %103 : vector<40x1xf32>
    %110 = arith.mulf %91, %108 : vector<40x1xf32>
    %111 = arith.subf %109, %110 : vector<40x1xf32>
    %112 = arith.mulf %92, %92 : vector<40x1xf32>
    %cst_42 = arith.constant 1.000000e-07 : f32
    %113 = vector.broadcast %cst_42 : f32 to vector<40x1xf32>
    %114 = arith.maximumf %112, %113 : vector<40x1xf32>
    %115 = arith.addf %85, %114 : vector<40x1xf32>
    %116 = arith.addf %87, %95 : vector<40x1xf32>
    %117 = arith.mulf %111, %111 : vector<40x1xf32>
    %cst_43 = arith.constant 1.000000e-07 : f32
    %118 = vector.broadcast %cst_43 : f32 to vector<40x1xf32>
    %119 = arith.maximumf %117, %118 : vector<40x1xf32>
    %120 = math.sqrt %119 : vector<40x1xf32>
    %121 = arith.addf %89, %120 : vector<40x1xf32>
    %122 = tpu.iota {dimensions = array<i32: 0>} : vector<40x1xi32>
    %c40_i32 = arith.constant 40 : i32
    %123 = arith.muli %arg1, %c40_i32 : i32
    %124 = vector.broadcast %123 : i32 to vector<40x1xi32>
    %125 = arith.addi %122, %124 : vector<40x1xi32>
    %c33_i32 = arith.constant 33 : i32
    %126 = vector.broadcast %c33_i32 : i32 to vector<40x1xi32>
    %127 = arith.cmpi slt, %125, %126 : vector<40x1xi32>
    %128 = arith.extui %127 : vector<40x1xi1> to vector<40x1xi32>
    %129 = arith.sitofp %128 : vector<40x1xi32> to vector<40x1xf32>
    %130 = arith.mulf %115, %129 : vector<40x1xf32>
    %131 = vector.shape_cast %130 : vector<40x1xf32> to vector<1x40x1xf32>
    %cst_44 = arith.constant dense<0.000000e+00> : vector<1xf32>
    %132 = vector.multi_reduction <add>, %131, %cst_44 [1, 2] : vector<1x40x1xf32> to vector<1xf32>
    %133 = vector.shape_cast %132 : vector<1xf32> to vector<1x1x1xf32>
    %134 = vector.extract %133[0, 0, 0] : f32 from vector<1x1x1xf32>
    %135 = arith.mulf %116, %129 : vector<40x1xf32>
    %136 = vector.shape_cast %135 : vector<40x1xf32> to vector<1x40x1xf32>
    %cst_45 = arith.constant dense<0.000000e+00> : vector<1xf32>
    %137 = vector.multi_reduction <add>, %136, %cst_45 [1, 2] : vector<1x40x1xf32> to vector<1xf32>
    %138 = vector.shape_cast %137 : vector<1xf32> to vector<1x1x1xf32>
    %139 = vector.extract %138[0, 0, 0] : f32 from vector<1x1x1xf32>
    %140 = arith.mulf %121, %129 : vector<40x1xf32>
    %141 = vector.shape_cast %140 : vector<40x1xf32> to vector<1x40x1xf32>
    %cst_46 = arith.constant dense<0.000000e+00> : vector<1xf32>
    %142 = vector.multi_reduction <add>, %141, %cst_46 [1, 2] : vector<1x40x1xf32> to vector<1xf32>
    %143 = vector.shape_cast %142 : vector<1xf32> to vector<1x1x1xf32>
    %144 = vector.extract %143[0, 0, 0] : f32 from vector<1x1x1xf32>
    %145 = tpu.iota {dimensions = array<i32: 1>} : vector<8x128xi32>
    %c0_i32_47 = arith.constant 0 : i32
    %146 = vector.broadcast %c0_i32_47 : i32 to vector<8x128xi32>
    %147 = arith.cmpi eq, %145, %146 : vector<8x128xi32>
    %c1_i32 = arith.constant 1 : i32
    %148 = vector.broadcast %c1_i32 : i32 to vector<8x128xi32>
    %149 = arith.cmpi eq, %145, %148 : vector<8x128xi32>
    %c2_i32 = arith.constant 2 : i32
    %150 = vector.broadcast %c2_i32 : i32 to vector<8x128xi32>
    %151 = arith.cmpi eq, %145, %150 : vector<8x128xi32>
    %cst_48 = arith.constant 0.000000e+00 : f32
    %152 = vector.broadcast %144 : f32 to vector<8x128xf32>
    %153 = vector.broadcast %cst_48 : f32 to vector<8x128xf32>
    %154 = arith.select %151, %152, %153 : vector<8x128xi1>, vector<8x128xf32>
    %155 = vector.broadcast %139 : f32 to vector<8x128xf32>
    %156 = arith.select %149, %155, %154 : vector<8x128xi1>, vector<8x128xf32>
    %157 = vector.broadcast %134 : f32 to vector<8x128xf32>
    %158 = arith.select %147, %157, %156 : vector<8x128xi1>, vector<8x128xf32>
    %c0_49 = arith.constant 0 : index
    %c0_50 = arith.constant 0 : index
    %c0_51 = arith.constant 0 : index
    %c0_52 = arith.constant 0 : index
    %159 = vector.load %arg7[%c0_49, %c0_50, %c0_51, %c0_52] : memref<1x1x8x128xf32, #tpu.memory_space<vmem>>, vector<1x1x8x128xf32>
    %160 = vector.shape_cast %159 : vector<1x1x8x128xf32> to vector<8x128xf32>
    %161 = vector.shape_cast %158 : vector<8x128xf32> to vector<1x1x8x128xf32>
    tpu.vector_store %arg7[%c0_49, %c0_50, %c0_51, %c0_52], %161 {strides = array<i32>} : memref<1x1x8x128xf32, #tpu.memory_space<vmem>>, vector<1x1x8x128xf32>,
    return
  }
  func.func @transform_0(%arg0: i32, %arg1: i32) -> (i32, i32, i32) {
    %c0_i32 = arith.constant 0 : i32
    %c0_i32_0 = arith.constant 0 : i32
    return %arg0, %arg1, %c0_i32 : i32, i32, i32
  }
  func.func @transform_1(%arg0: i32, %arg1: i32) -> (i32, i32, i32) {
    %c1_i32 = arith.constant 1 : i32
    %0 = arith.addi %arg1, %c1_i32 : i32
    %c5_i32 = arith.constant 5 : i32
    %1 = arith.muli %0, %c5_i32 : i32
    %c0_i32 = arith.constant 0 : i32
    %c0_i32_0 = arith.constant 0 : i32
    return %arg0, %1, %c0_i32 : i32, i32, i32
  }
  func.func @transform_2(%arg0: i32, %arg1: i32) -> (i32, i32, i32) {
    %c0_i32 = arith.constant 0 : i32
    %c0_i32_0 = arith.constant 0 : i32
    return %arg0, %arg1, %c0_i32 : i32, i32, i32
  }
  func.func @transform_3(%arg0: i32, %arg1: i32) -> (i32, i32, i32) {
    %c1_i32 = arith.constant 1 : i32
    %0 = arith.addi %arg1, %c1_i32 : i32
    %c5_i32 = arith.constant 5 : i32
    %1 = arith.muli %0, %c5_i32 : i32
    %c0_i32 = arith.constant 0 : i32
    %c0_i32_0 = arith.constant 0 : i32
    return %arg0, %1, %c0_i32 : i32, i32, i32
  }
  func.func @transform_4(%arg0: i32, %arg1: i32) -> (i32, i32) {
    %c0_i32 = arith.constant 0 : i32
    %c0_i32_0 = arith.constant 0 : i32
    %c0_i32_1 = arith.constant 0 : i32
    return %c0_i32, %c0_i32_0 : i32, i32
  }
  func.func @transform_5(%arg0: i32, %arg1: i32) -> (i32, i32, i32, i32) {
    %c0_i32 = arith.constant 0 : i32
    %c0_i32_0 = arith.constant 0 : i32
    %c0_i32_1 = arith.constant 0 : i32
    return %arg0, %arg1, %c0_i32, %c0_i32_0 : i32, i32, i32, i32
  }
}

</mosaic_0001>

<bundles_post_ra>
// kernel: _lambda_.4
= control target key start
LH: loop header
LB: loop body
LE: loop exit
PB: predicated region body
PF: predicated region fallthrough
CT: control target
= control target key end

     0   :  { %s1271_s18 = smov 0   ;;  %s1273_s19 = smov 0   ;;  %s1529_s0 = inlined_call_operand.vmem [shape: f32[2,32,32], index: 0, kind: input, shape index: {}, may-alias: {0,1}]   ;;  %s1530_s1 = inlined_call_operand.vmem [shape: f32[2,32,32], index: 1, kind: input, shape index: {}, may-alias: {0,1}]   ;;  %s1531_s2 = inlined_call_operand.vmem [shape: f32[2,32,32], index: 2, kind: input, shape index: {}, may-alias: {2,3}]   ;;  %s1532_s3 = inlined_call_operand.vmem [shape: f32[2,32,32], index: 3, kind: input, shape index: {}, may-alias: {2,3}]   ;;  %s1533_s4 = inlined_call_operand.vmem [shape: bf16[128,128], index: 4, kind: input, shape index: {}]   ;;  %s1534_s5 = inlined_call_operand.vmem [shape: f32[2,1,8,128], index: 5, kind: output, shape index: {}]  }
   0x1   :  { %s1275_s20 = smov 0  }
   0x2 LB: > { %s27_s21 = sadd.s32 1, %s1231_s19  ;;  %p1070_p0 = scmp.ge.s32.totalorder %s1235_s20, 1  ;;  %s1235_s20 = sphi %s1275_s20, %s15_s20   ;;  %s1231_s19 = sphi %s1273_s19, %s1542_s19   ;;  %s1227_s18 = sphi %s1271_s18, %s1541_s18  }
   0x3   : > { %p29_p1 = scmp.ge.s32.totalorder %s27_s21, 2  ;;  %p271_p2 = scmp.lt.s32.totalorder %s1235_s20, 3 }
   0x5   : > { %s1544_s21 = smov (%p29_p1, %s27_s21), 0  ;;  %p272_p3 = pnand %p1070_p0, %p271_p2 }
   0x6   : > { %p335_p4 = scmp.lt.s32.totalorder (!%p272_p3), %s1227_s18, 1  ;;  %s1237_s30 = smov (!%p272_p3), 32  }
   0x7   : > { %275 = sbr.rel (%p272_p3) target bundleno = 911 (0x38f), region = 40  ;;  %s1238_s12 = smov (!%p272_p3), 64  }
   0x8   : > { %s1239_s13 = smov (!%p272_p3), 96  }
   0xc   : > { %s1546_s18 = smov (!%p335_p4, %s1227_s18), 1  ;;  %vm391_vm0 = vcmask 261120   ;;  %vm410_vm1 = vcmask 523520   ;;  %v1128_v7 = vld [vmem:[%s1533_s4 + $0x38] sm:$0xff]  ;;  %v1127_v8 = vld [vmem:[%s1533_s4 + $0x30] sm:$0xff]  ;;  %vm412_vm2 = vcmask 516352   ;;  %v572_v42 = vlaneseq }
   0xd   : > { %s1115_s22 = sshll.u32 %s1546_s18, 5  ;;  %553 = vmatpush.bf16.msra.mxu0 %v1128_v7  ;;  %1131 = vmatpush.bf16.msra.mxu1 %v1128_v7  ;;  %v1126_v10 = vld [vmem:[%s1533_s4 + $0x28] sm:$0xff]  ;;  %v1125_v11 = vld [vmem:[%s1533_s4 + $0x20] sm:$0xff]  ;;  %v1124_v13 = vld [vmem:[%s1533_s4 + $0x18] sm:$0xff]  ;;  %vm408_vm3 = vcmask 523521   ;;  %vm442_vm4 = vcmask 779776  }
   0xe   : > { %s364_s25 = scalar_lea.vmem %s1531_s2, %s1115_s22  ;;  %s342_s28 = scalar_lea.vmem %s1529_s0, %s1115_s22  ;;  %v1123_v14 = vld [vmem:[%s1533_s4 + $0x10] sm:$0xff]  ;;  %v1122_v18 = vld [vmem:[%s1533_s4 + $0x8] sm:$0xff]  ;;  %v1121_v19 = vld [vmem:[%s1533_s4] sm:$0xff]  ;;  %vm440_vm5 = vcmask 785920   ;;  %vm438_vm6 = vcmask 785922   ;;  %vm469_vm7 = vcmask 1043200  }
   0xf   : > { %v388_v0 = vld [vmem:[%s364_s25] sm:$0xff]  ;;  %s1117_s29 = sadd.s32 16, %s1115_s22  ;;  %v389_v2 = vld [vmem:[%s364_s25 + $0x8] sm:$0xff]  ;;  %vm467_vm8 = vcmask 1048320   ;;  %vm465_vm9 = vcmask 1048323   ;;  %v1355_v43 = vand.u32 127, %v572_v42 }
  0x10   : > { %v385_v1 = vld [vmem:[%s342_s28] sm:$0xff]  ;;  %417 = vrot.lane.b32.xlu1 %v388_v0, %s1237_s30  ;;  %419 = vrot.lane.b32.xlu2 %v389_v2, %s1237_s30  ;;  %s353_s8 = scalar_lea.vmem %s1530_s1, %s1117_s29  ;;  %s375_s11 = scalar_lea.vmem %s1532_s3, %s1117_s29  ;;  %v386_v4 = vld [vmem:[%s342_s28 + $0x8] sm:$0xff]  ;;  %394 = vst.msk [vmem:[#allocation2 + $0x10] sm:$0xff] %vm391_vm0, %v388_v0  ;;  %vm725_vm11 = vcmask 523264  }
  0x11   : > { %399 = vrot.lane.b32.xlu0 %v385_v1, %s1237_s30  ;;  %v387_v3 = vld [vmem:[%s353_s8] sm:$0xff]  ;;  %395 = vst.msk [vmem:[#allocation2 + $0x18] sm:$0xff] %vm391_vm0, %v389_v2  ;;  %554 = vmatpush.bf16.msra.mxu0 %v1127_v8  ;;  %vm574_vm10 = vcmp.eq.s32.totalorder %v1355_v43, 0 }
  0x12   : > { %v390_v5 = vld [vmem:[%s375_s11] sm:$0xff]  ;;  %392 = vst.msk [vmem:[#allocation2] sm:$0xff] %vm391_vm0, %v385_v1  ;;  %1132 = vmatpush.bf16.msra.mxu1 %v1127_v8  ;;  %s1079_s11 = sshll.u32 %s1546_s18, 3 }
  0x13   : > { %393 = vst.msk [vmem:[#allocation2 + $0x8] sm:$0xff] %vm391_vm0, %v386_v4  ;;  %s384_s15 = scalar_lea.vmem %s1534_s5, %s1079_s11 }
  0x15   : > { %555 = vmatpush.bf16.msra.mxu0 %v1126_v10 }
  0x16   : > { %1133 = vmatpush.bf16.msra.mxu1 %v1126_v10 }
  0x18   : > { %403 = vrot.lane.b32.xlu1 %v387_v3, %s1237_s30  ;;  %421 = vrot.lane.b32.xlu2 %v390_v5, %s1237_s30 }
  0x19   : > { %401 = vrot.lane.b32.xlu0 %v386_v4, %s1237_s30  ;;  %556 = vmatpush.bf16.msra.mxu0 %v1125_v11 }
  0x1a   : > { %1134 = vmatpush.bf16.msra.mxu1 %v1125_v11 }
  0x1d   : > { %557 = vmatpush.bf16.msra.mxu0 %v1124_v13 }
  0x1e   : > { %1135 = vmatpush.bf16.msra.mxu1 %v1124_v13 }
  0x20   : > { %431 = vrot.lane.b32.xlu1 %v386_v4, %s1238_s12  ;;  %433 = vrot.lane.b32.xlu2 %v387_v3, %s1238_s12 }
  0x21   : > { %429 = vrot.lane.b32.xlu0 %v385_v1, %s1238_s12  ;;  %558 = vmatpush.bf16.msra.mxu0 %v1123_v14 }
  0x22   : > { %1136 = vmatpush.bf16.msra.mxu1 %v1123_v14 }
  0x25   : > { %559 = vmatpush.bf16.msra.mxu0 %v1122_v18 }
  0x26   : > { %1137 = vmatpush.bf16.msra.mxu1 %v1122_v18 }
  0x28   : > { %446 = vrot.lane.b32.xlu1 %v389_v2, %s1238_s12  ;;  %448 = vrot.lane.b32.xlu2 %v390_v5, %s1238_s12 }
  0x29   : > { %444 = vrot.lane.b32.xlu0 %v388_v0, %s1238_s12  ;;  %560 = vmatpush.bf16.msra.mxu0 %v1121_v19 }
  0x2a   : > { %1138 = vmatpush.bf16.msra.mxu1 %v1121_v19 }
  0x30   : > { %458 = vrot.lane.b32.xlu1 %v386_v4, %s1239_s13  ;;  %460 = vrot.lane.b32.xlu2 %v387_v3, %s1239_s13 }
  0x31   : > { %456 = vrot.lane.b32.xlu0 %v385_v1, %s1239_s13 }
  0x38   : > { %473 = vrot.lane.b32.xlu1 %v389_v2, %s1239_s13  ;;  %475 = vrot.lane.b32.xlu2 %v390_v5, %s1239_s13 }
  0x39   : > { %471 = vrot.lane.b32.xlu0 %v388_v0, %s1239_s13 }
  0x6a   : > { %v420_v6 = vpop.permute.xlu2 %419 }
  0x6b   : > { %427 = vst.msk [vmem:[#allocation2 + $0x17] sm:$0xff] %vm410_vm1, %v420_v6 }
  0x72   : > { %v422_v9 = vpop.permute.xlu2 %421 }
  0x73   : > { %428 = vst.msk [vmem:[#allocation2 + $0x1f] sm:$0x1] %vm412_vm2, %v422_v9 }
  0x7a   : > { %v434_v12 = vpop.permute.xlu2 %433 }
  0x82   : > { %v418_v15 = vpop.permute.xlu1 %417  ;;  %v449_v17 = vpop.permute.xlu2 %448 }
  0x83   : > { %v400_v16 = vpop.permute.xlu0 %399  ;;  %426 = vst.msk [vmem:[#allocation2 + $0xf] sm:$0xfe] %vm408_vm3, %v418_v15 }
  0x84   : > { %409 = vst.msk [vmem:[#allocation2 - $0x1] sm:$0xfe] %vm408_vm3, %v400_v16 }
  0x85   : > { %455 = vst.msk [vmem:[#allocation2 + $0x1e] sm:$0x3] %vm442_vm4, %v449_v17 }
  0x8a   : > { %v404_v20 = vpop.permute.xlu1 %403  ;;  %v461_v22 = vpop.permute.xlu2 %460 }
  0x8b   : > { %v402_v21 = vpop.permute.xlu0 %401  ;;  %413 = vst.msk [vmem:[#allocation2 + $0xf] sm:$0x1] %vm412_vm2, %v404_v20 }
  0x8c   : > { %411 = vst.msk [vmem:[#allocation2 + $0x7] sm:$0xff] %vm410_vm1, %v402_v21 }
  0x8d   : > { %443 = vst.msk [vmem:[#allocation2 + $0xe] sm:$0x3] %vm442_vm4, %v434_v12 }
  0x92   : > { %v432_v23 = vpop.permute.xlu1 %431  ;;  %v476_v25 = vpop.permute.xlu2 %475 }
  0x93   : > { %v430_v24 = vpop.permute.xlu0 %429  ;;  %441 = vst.msk [vmem:[#allocation2 + $0x6] sm:$0xff] %vm440_vm5, %v432_v23 }
  0x94   : > { %439 = vst.msk [vmem:[#allocation2 - $0x2] sm:$0xfc] %vm438_vm6, %v430_v24 }
  0x95   : > { %470 = vst.msk [vmem:[#allocation2 + $0xd] sm:$0x7] %vm469_vm7, %v461_v22 }
  0x9a   : > { %v447_v26 = vpop.permute.xlu1 %446 }
  0x9b   : > { %v445_v27 = vpop.permute.xlu0 %444  ;;  %454 = vst.msk [vmem:[#allocation2 + $0x16] sm:$0xff] %vm440_vm5, %v447_v26 }
  0x9c   : > { %453 = vst.msk [vmem:[#allocation2 + $0xe] sm:$0xfc] %vm438_vm6, %v445_v27 }
  0x9d   : > { %482 = vst.msk [vmem:[#allocation2 + $0x1d] sm:$0x7] %vm469_vm7, %v476_v25 }
  0xa2   : > { %v459_v28 = vpop.permute.xlu1 %458 }
  0xa3   : > { %v457_v29 = vpop.permute.xlu0 %456  ;;  %468 = vst.msk [vmem:[#allocation2 + $0x5] sm:$0xff] %vm467_vm8, %v459_v28 }
  0xa4   : > { %466 = vst.msk [vmem:[#allocation2 - $0x3] sm:$0xf8] %vm465_vm9, %v457_v29 }
  0xaa   : > { %v474_v30 = vpop.permute.xlu1 %473  ;;  %v484_v32 = vld [vmem:[#allocation2 + $0x8] sm:$0xff] }
  0xab   : > { %v472_v31 = vpop.permute.xlu0 %471  ;;  %481 = vst.msk [vmem:[#allocation2 + $0x15] sm:$0xff] %vm467_vm8, %v474_v30  ;;  %v483_v33 = vld [vmem:[#allocation2] sm:$0xff] }
  0xac   : > { %480 = vst.msk [vmem:[#allocation2 + $0xd] sm:$0xf8] %vm465_vm9, %v472_v31  ;;  %v487_v34 = vpack.c.bf16 %v484_v32, %v483_v33 }
  0xae   : > { %561 = vmatmul.bf16.vlgmr.msra.gmra.mxu0 %v487_v34 }
  0xb2   : > { %v486_v35 = vld [vmem:[#allocation2 + $0x18] sm:$0xff] }
  0xb3   : > { %v485_v36 = vld [vmem:[#allocation2 + $0x10] sm:$0xff] }
  0xb4   : > { %v488_v37 = vpack.c.bf16 %v486_v35, %v485_v36 }
  0xb6   : > { %566 = vmatmul.bf16.vlgmr.msra.gmra.mxu1 %v488_v37 }
 0x12b   : > { %v1338_v38 = vpop.f32.mrf.mxu0 }
 0x12c   : > { %579 = vrot.lane.b32.xlu2 %v1338_v38, %s1238_s12  ;;  %v1366_v47 = vmul.f32 %v1338_v38, %v1338_v38 }
 0x133   : > { %v1342_v39 = vpop.f32.mrf.mxu0  ;;  %v1344_v40 = vpop.f32.mrf.mxu1 }
 0x134   : > { %581 = vrot.lane.b32.xlu0 %v1342_v39, %s1238_s12  ;;  %v1377_v52 = vmul.f32 %v1342_v39, %v1342_v39  ;;  %v1389_v58 = vmul.f32 %v1344_v40, %v1344_v40  ;;  %v597_v60 = vsub.f32 %v1338_v38, %v1344_v40 }
 0x136   : > { %v1420_v9 = vmul.f32 %v597_v60, %v597_v60 }
 0x13b   : > { %v1348_v41 = vpop.f32.mrf.mxu1 }
 0x13c   : > { %591 = vrot.lane.b32.xlu1 %v1348_v41, %s1238_s12  ;;  %589 = vrot.lane.b32.xlu0 %v1344_v40, %s1238_s12  ;;  %v1395_v61 = vmul.f32 %v1348_v41, %v1348_v41  ;;  %v598_v5 = vsub.f32 %v1342_v39, %v1348_v41 }
 0x13e   : > { %v1428_v16 = vmul.f32 %v598_v5, %v598_v5 }
 0x186   : > { %v580_v44 = vpop.permute.xlu2 %579 }
 0x187   : > { %v1360_v45 = vsel %vm574_vm10, 0.0, %v580_v44 }
 0x188   : > { %v619_v46 = vmul.f32 %v1360_v45, %v1360_v45 }
 0x18a   : > { %v621_v48 = vadd.f32 %v619_v46, %v1366_v47 }
 0x18c   : > { %v1369_v49 = vmax.f32 %v621_v48, 1e-07 }
 0x18e   : > { %1173 = vrsqrt.f32 %v1369_v49  ;;  %vm637_vm0 = vweird.f32 %v1369_v49 }
 0x194   : > { %v1385_v56 = vpop.eup %1173 }
 0x195   : > { %v632_v4 = vmul.f32 %v1385_v56, %v1369_v49  ;;  %vm638_vm13 = vweird.f32 %v1385_v56 }
 0x196   : > { %vm1456_vm1 = vmor %vm637_vm0, %vm638_vm13 }
 0x197   : > { %v633_v15 = vmul.f32 %v1385_v56, %v632_v4 }
 0x199   : > { %v634_v22 = vmul.f32 0.5, %v633_v15 }
 0x19b   : > { %v635_v29 = vsub.f32 1.5, %v634_v22 }
 0x19d   : > { %v636_v48 = vmul.f32 %v1385_v56, %v635_v29 }
 0x19f   : > { %v640_v5 = vsel %vm1456_vm1, %v1385_v56, %v636_v48 }
 0x1a6   : > { %v582_v50 = vpop.permute.xlu0 %581 }
 0x1a7   : > { %v1373_v51 = vsel %vm574_vm10, 0.0, %v582_v50 }
 0x1a8   : > { %v620_v53 = vmul.f32 %v1373_v51, %v1373_v51 }
 0x1aa   : > { %v622_v54 = vadd.f32 %v620_v53, %v1377_v52 }
 0x1ac   : > { %v1383_v55 = vmax.f32 %v622_v54, 1e-07 }
 0x1ae   : > { %v592_v57 = vpop.permute.xlu1 %591  ;;  %v590_v59 = vpop.permute.xlu0 %589  ;;  %1175 = vrsqrt.f32 %v1383_v55  ;;  %vm647_vm14 = vweird.f32 %v1383_v55 }
 0x1af   : > { %v1400_v62 = vsel %vm574_vm10, 0.0, %v592_v57  ;;  %v1404_v63 = vsel %vm574_vm10, 0.0, %v590_v59  ;;  %1177 = vlog2.f32 %v1383_v55 }
 0x1b0   : > { %v600_v0 = vsub.f32 %v1373_v51, %v1400_v62  ;;  %v612_v1 = vmul.f32 %v1400_v62, %v1400_v62  ;;  %v599_v2 = vsub.f32 %v1360_v45, %v1404_v63  ;;  %v611_v3 = vmul.f32 %v1404_v63, %v1404_v63 }
 0x1b2   : > { %v614_v6 = vadd.f32 %v612_v1, %v1395_v61  ;;  %v603_v7 = vmul.f32 %v599_v2, %v599_v2  ;;  %v613_v8 = vadd.f32 %v611_v3, %v1389_v58  ;;  %v604_v10 = vmul.f32 %v600_v0, %v600_v0 }
 0x1b4   : > { %v1422_v11 = vmax.f32 %v614_v6, 1e-07  ;;  %v1424_v12 = vmax.f32 %v613_v8, 1e-07  ;;  %v605_v13 = vadd.f32 %v603_v7, %v1420_v9  ;;  %v1176_v14 = vpop.eup %1175  ;;  %v606_v19 = vadd.f32 %v604_v10, %v1428_v16 }
 0x1b5   : > { %v642_v17 = vmul.f32 %v1176_v14, %v1383_v55  ;;  %v1178_v26 = vpop.eup %1177  ;;  %vm648_vm12 = vweird.f32 %v1176_v14 }
 0x1b6   : > { %1179 = vrsqrt.f32 %v1422_v11  ;;  %v732_v18 = vsel %vm725_vm11, %v1424_v12, 0.0  ;;  %v607_v21 = vmax.f32 %v605_v13, 1e-07  ;;  %v608_v25 = vmax.f32 %v606_v19, 1e-07  ;;  %vm1447_vm15 = vmor %vm647_vm14, %vm648_vm12 }
 0x1b7   : > { %1181 = vlog2.f32 %v1369_v49  ;;  %v643_v20 = vmul.f32 %v1176_v14, %v642_v17  ;;  %733 = vadd.xlane.f32.xlu1 %v732_v18  ;;  %v628_v36 = vmul.f32 0.6931472, %v1178_v26  ;;  %v735_v59 = vsel %vm725_vm11, %v1422_v11, 0.0 }
 0x1b8   : > { %1183 = vrsqrt.f32 %v1424_v12  ;;  %v726_v24 = vsel %vm725_vm11, %v607_v21, 0.0  ;;  %v729_v34 = vsel %vm725_vm11, %v608_v25, 0.0  ;;  %vm675_vm3 = vweird.f32 %v1422_v11 }
 0x1b9   : > { %v644_v23 = vmul.f32 0.5, %v643_v20  ;;  %1185 = vlog2.f32 %v1422_v11  ;;  %727 = vadd.xlane.f32.xlu2 %v726_v24  ;;  %v630_v55 = vmul.f32 0.5, %v628_v36  ;;  %vm665_vm6 = vweird.f32 %v1424_v12 }
 0x1ba   : > { %1187 = vlog2.f32 %v1424_v12 }
 0x1bb   : > { %v645_v27 = vsub.f32 1.5, %v644_v23 }
 0x1bc   : > { %v1180_v28 = vpop.eup %1179 }
 0x1bd   : > { %v1182_v30 = vpop.eup %1181  ;;  %v670_v31 = vmul.f32 %v1180_v28, %v1422_v11  ;;  %v646_v33 = vmul.f32 %v1176_v14, %v645_v27  ;;  %vm676_vm2 = vweird.f32 %v1180_v28 }
 0x1be   : > { %v1184_v32 = vpop.eup %1183  ;;  %v626_v46 = vmul.f32 0.6931472, %v1182_v30  ;;  %vm677_vm5 = vmor %vm675_vm3, %vm676_vm2 }
 0x1bf   : > { %v1186_v35 = vpop.eup %1185  ;;  %v671_v37 = vmul.f32 %v1180_v28, %v670_v31  ;;  %v660_v44 = vmul.f32 %v1184_v32, %v1424_v12  ;;  %730 = vadd.xlane.f32.xlu1 %v729_v34  ;;  %v650_v60 = vsel %vm1447_vm15, %v1176_v14, %v646_v33  ;;  %vm666_vm4 = vweird.f32 %v1184_v32 }
 0x1c0   : > { %v1188_v50 = vpop.eup %1187  ;;  %v656_v0 = vmul.f32 0.6931472, %v1186_v35  ;;  %v629_v4 = vmul.f32 0.5, %v626_v46  ;;  %v652_v6 = vmul.f32 %v650_v60, %v630_v55  ;;  %vm667_vm7 = vmor %vm665_vm6, %vm666_vm4 }
 0x1c1   : > { %v672_v54 = vmul.f32 0.5, %v671_v37  ;;  %v661_v57 = vmul.f32 %v1184_v32, %v660_v44  ;;  %736 = vadd.xlane.f32.xlu2 %v735_v59  ;;  %v654_v49 = vmul.f32 0.6931472, %v1188_v50 }
 0x1c2   : > { %v658_v10 = vmul.f32 0.5, %v656_v0  ;;  %v651_v13 = vmul.f32 %v640_v5, %v629_v4  ;;  %v682_v19 = vmul.f32 %v652_v6, %v1342_v39  ;;  %v688_v11 = vmul.f32 %v652_v6, %v1373_v51 }
 0x1c3   : > { %v673_v2 = vsub.f32 1.5, %v672_v54  ;;  %v662_v3 = vmul.f32 0.5, %v661_v57  ;;  %v657_v18 = vmul.f32 0.5, %v654_v49 }
 0x1c4   : > { %v681_v23 = vmul.f32 %v651_v13, %v1338_v38  ;;  %v687_v24 = vmul.f32 %v651_v13, %v1360_v45  ;;  %v746_v13 = vmax.f32 %v1366_v47, 1e-07 }
 0x1c5   : > { %v674_v7 = vmul.f32 %v1180_v28, %v673_v2  ;;  %v663_v8 = vsub.f32 1.5, %v662_v3 }
 0x1c7   : > { %v678_v14 = vsel %vm677_vm5, %v1180_v28, %v674_v7  ;;  %v664_v15 = vmul.f32 %v1184_v32, %v663_v8  ;;  %v1476_v7 = vmax.f32 %v1395_v61, 1e-07  ;;  %v747_v8 = vmax.f32 %v1377_v52, 1e-07 }
 0x1c8   : > { %v680_v17 = vmul.f32 %v678_v14, %v658_v10  ;;  %v1480_v10 = vmax.f32 %v1389_v58, 1e-07 }
 0x1c9   : > { %v668_v56 = vsel %vm667_vm7, %v1184_v32, %v664_v15  ;;  %vm798_vm15 = vweird.f32 %v1476_v7  ;;  %vm770_vm1 = vweird.f32 %v747_v8  ;;  %vm760_vm7 = vweird.f32 %v746_v13 }
 0x1ca   : > { %v684_v20 = vmul.f32 %v680_v17, %v1348_v41  ;;  %v690_v21 = vmul.f32 %v680_v17, %v1400_v62  ;;  %v679_v22 = vmul.f32 %v668_v56, %v657_v18  ;;  %vm788_vm5 = vweird.f32 %v1480_v10 }
 0x1cc   : > { %v686_v25 = vsub.f32 %v682_v19, %v684_v20  ;;  %v692_v26 = vsub.f32 %v688_v11, %v690_v21  ;;  %v683_v12 = vmul.f32 %v679_v22, %v1344_v40  ;;  %v689_v27 = vmul.f32 %v679_v22, %v1404_v63 }
 0x1ce   : > { %v694_v28 = vmul.f32 %v686_v25, %v686_v25  ;;  %v696_v29 = vmul.f32 %v692_v26, %v692_v26  ;;  %v685_v30 = vsub.f32 %v681_v23, %v683_v12  ;;  %v691_v31 = vsub.f32 %v687_v24, %v689_v27 }
 0x1d0   : > { %v698_v51 = vadd.f32 %v696_v29, %v694_v28  ;;  %v693_v32 = vmul.f32 %v685_v30, %v685_v30  ;;  %v695_v33 = vmul.f32 %v691_v31, %v691_v31 }
 0x1d2   : > { %v700_v34 = vmax.f32 %v698_v51, 1e-07  ;;  %v697_v62 = vadd.f32 %v695_v33, %v693_v32 }
 0x1d4   : > { %v699_v35 = vmax.f32 %v697_v62, 1e-07  ;;  %1189 = vrsqrt.f32 %v700_v34  ;;  %vm720_vm8 = vcmp.eq.f32.partialorder %v700_v34, inf  ;;  %v723_v0 = vand.u32 2147483648, %v700_v34 }
 0x1d5   : > { %vm722_vm9 = vcmp.eq.f32.partialorder %v700_v34, 0.0 }
 0x1d6   : > { %1191 = vrsqrt.f32 %v699_v35  ;;  %vm708_vm12 = vcmp.eq.f32.partialorder %v699_v35, inf  ;;  %v711_v2 = vand.u32 2147483648, %v699_v35  ;;  %vm710_vm13 = vcmp.eq.f32.partialorder %v699_v35, 0.0 }
 0x1d7   : > { %1193 = vrsqrt.f32 %v1476_v7 }
 0x1d8   : > { %1195 = vrsqrt.f32 %v747_v8 }
 0x1d9   : > { %1197 = vrsqrt.f32 %v1480_v10 }
 0x1da   : > { %v1190_v36 = vpop.eup %1189  ;;  %1199 = vrsqrt.f32 %v746_v13 }
 0x1db   : > { %v714_v45 = vmul.f32 %v1190_v36, %v700_v34  ;;  %1201 = vlog2.f32 %v1476_v7 }
 0x1dc   : > { %v1192_v37 = vpop.eup %1191  ;;  %1203 = vlog2.f32 %v747_v8 }
 0x1dd   : > { %v702_v44 = vmul.f32 %v1192_v37, %v699_v35  ;;  %v715_v46 = vmul.f32 %v1190_v36, %v714_v45  ;;  %v1194_v14 = vpop.eup %1193  ;;  %1205 = vlog2.f32 %v1480_v10 }
 0x1de   : > { %v1196_v15 = vpop.eup %1195  ;;  %v793_v18 = vmul.f32 %v1194_v14, %v1476_v7  ;;  %1207 = vlog2.f32 %v746_v13 }
 0x1df   : > { %v703_v48 = vmul.f32 %v1192_v37, %v702_v44  ;;  %v716_v50 = vmul.f32 0.5, %v715_v46  ;;  %v1198_v17 = vpop.eup %1197  ;;  %v765_v19 = vmul.f32 %v1196_v15, %v747_v8  ;;  %vm771_vm14 = vweird.f32 %v1196_v15 }
 0x1e0   : > { %v1200_v61 = vpop.eup %1199  ;;  %v783_v52 = vmul.f32 %v1198_v17, %v1480_v10  ;;  %v794_v56 = vmul.f32 %v1194_v14, %v793_v18  ;;  %vm789_vm0 = vweird.f32 %v1198_v17  ;;  %vm1490_vm3 = vmor %vm770_vm1, %vm771_vm14  ;;  %v810_v8 = vmax.f32 %v1420_v9, 1e-07 }
 0x1e1   : > { %v704_v63 = vmul.f32 0.5, %v703_v48  ;;  %v717_v53 = vsub.f32 1.5, %v716_v50  ;;  %v755_v58 = vmul.f32 %v1200_v61, %v746_v13  ;;  %v766_v11 = vmul.f32 %v1196_v15, %v765_v19  ;;  %v1202_v26 = vpop.eup %1201  ;;  %vm790_vm6 = vmor %vm788_vm5, %vm789_vm0 }
 0x1e2   : > { %v784_v20 = vmul.f32 %v1198_v17, %v783_v52  ;;  %v795_v47 = vmul.f32 0.5, %v794_v56  ;;  %v1204_v28 = vpop.eup %1203  ;;  %v779_v51 = vmul.f32 0.6931472, %v1202_v26  ;;  %vm761_vm4 = vweird.f32 %v1200_v61 }
 0x1e3   : > { %v705_v54 = vsub.f32 1.5, %v704_v63  ;;  %v718_v57 = vmul.f32 %v1190_v36, %v717_v53  ;;  %v756_v21 = vmul.f32 %v1200_v61, %v755_v58  ;;  %v767_v22 = vmul.f32 0.5, %v766_v11  ;;  %v1206_v29 = vpop.eup %1205 }
 0x1e4   : > { %v785_v23 = vmul.f32 0.5, %v784_v20  ;;  %v796_v24 = vsub.f32 1.5, %v795_v47  ;;  %v1208_v32 = vpop.eup %1207  ;;  %v751_v62 = vmul.f32 0.6931472, %v1204_v28  ;;  %v781_v44 = vmul.f32 0.5, %v779_v51 }
 0x1e5   : > { %v706_v59 = vmul.f32 %v1192_v37, %v705_v54  ;;  %v719_v60 = vmul.f32 %v718_v57, %v700_v34  ;;  %v757_v25 = vmul.f32 0.5, %v756_v21  ;;  %v768_v12 = vsub.f32 1.5, %v767_v22 }
 0x1e6   : > { %v786_v27 = vsub.f32 1.5, %v785_v23  ;;  %v797_v30 = vmul.f32 %v1194_v14, %v796_v24  ;;  %v749_v46 = vmul.f32 0.6931472, %v1208_v32  ;;  %v753_v63 = vmul.f32 0.5, %v751_v62 }
 0x1e7   : > { %v707_v1 = vmul.f32 %v706_v59, %v699_v35  ;;  %v721_v55 = vsel %vm720_vm8, %v700_v34, %v719_v60  ;;  %v758_v31 = vsub.f32 1.5, %v757_v25  ;;  %v769_v33 = vmul.f32 %v1196_v15, %v768_v12  ;;  %vm762_vm8 = vmor %vm760_vm7, %vm761_vm4 }
 0x1e8   : > { %v724_v3 = vsel %vm722_vm9, %v723_v0, %v721_v55  ;;  %v787_v34 = vmul.f32 %v1198_v17, %v786_v27  ;;  %v752_v60 = vmul.f32 0.5, %v749_v46  ;;  %vm927_vm0 = vcmp.eq.s32.totalorder %v1355_v43, 2 }
 0x1e9   : > { %v709_v4 = vsel %vm708_vm12, %v699_v35, %v707_v1  ;;  %v741_v5 = vsel %vm725_vm11, %v724_v3, 0.0  ;;  %v777_v35 = vmul.f32 0.6931472, %v1206_v29  ;;  %v759_v37 = vmul.f32 %v1200_v61, %v758_v31 }
 0x1ea   : > { %v712_v49 = vsel %vm710_vm13, %v711_v2, %v709_v4  ;;  %742 = vadd.xlane.f32.xlu0 %v741_v5  ;;  %v773_v48 = vsel %vm1490_vm3, %v1196_v15, %v769_v33  ;;  %v791_v50 = vsel %vm790_vm6, %v1198_v17, %v787_v34  ;;  %v847_v1 = vshrl.u32 %v572_v42, 7 }
 0x1eb   : > { %v738_v6 = vsel %vm725_vm11, %v712_v49, 0.0  ;;  %vm799_vm11 = vweird.f32 %v1194_v14  ;;  %v780_v54 = vmul.f32 0.5, %v777_v35  ;;  %v763_v57 = vsel %vm762_vm8, %v1200_v61, %v759_v37 }
 0x1ec   : > { %739 = vadd.xlane.f32.xlu2 %v738_v6  ;;  %vm800_vm2 = vmor %vm798_vm15, %vm799_vm11  ;;  %v775_v59 = vmul.f32 %v773_v48, %v753_v63  ;;  %v774_v2 = vmul.f32 %v763_v57, %v752_v60  ;;  %v848_v6 = vadd.s32 8, %v847_v1  ;;  %vm869_vm15 = vcmask 7168  }
 0x1ed   : > { %v801_v45 = vsel %vm800_vm2, %v1194_v14, %v797_v30  ;;  %v802_v0 = vmul.f32 %v791_v50, %v780_v54  ;;  %vm926_vm1 = vcmp.eq.s32.totalorder %v1355_v43, 1 }
 0x1ee   : > { %v803_v53 = vmul.f32 %v801_v45, %v781_v44  ;;  %v805_v4 = vmul.f32 %v775_v59, %v1342_v39  ;;  %v804_v14 = vmul.f32 %v774_v2, %v1338_v38  ;;  %vm854_vm9 = vcmp.lt.s32.totalorder %v848_v6, 9 }
 0x1ef   : > { %v806_v5 = vmul.f32 %v802_v0, %v1344_v40  ;;  %v811_v39 = vmax.f32 %v1428_v16, 1e-07  ;;  %v1240_v40 = vmov 0.0  }
 0x1f0   : > { %v807_v55 = vmul.f32 %v803_v53, %v1348_v41  ;;  %v1112_v18 = vsel %vm854_vm9, 1.0, %v1240_v40 }
 0x1f1   : > { %v808_v41 = vsub.f32 %v804_v14, %v806_v5 }
 0x1f2   : > { %v809_v13 = vsub.f32 %v805_v4, %v807_v55 }
 0x1f3   : > { %v816_v19 = vmul.f32 %v808_v41, %v808_v41 }
 0x1f4   : > { %v817_v17 = vmul.f32 %v809_v13, %v809_v13 }
 0x1f5   : > { %v818_v58 = vmax.f32 %v816_v19, 1e-07 }
 0x1f6   : > { %v819_v9 = vmax.f32 %v817_v17, 1e-07 }
 0x1f7   : > { %vm827_vm13 = vcmp.eq.f32.partialorder %v818_v58, inf  ;;  %v830_v32 = vand.u32 2147483648, %v818_v58  ;;  %vm829_vm14 = vcmp.eq.f32.partialorder %v818_v58, 0.0 }
 0x1f8   : > { %1209 = vrsqrt.f32 %v819_v9  ;;  %vm839_vm12 = vcmp.eq.f32.partialorder %v819_v9, inf  ;;  %v842_v31 = vand.u32 2147483648, %v819_v9  ;;  %vm841_vm11 = vcmp.eq.f32.partialorder %v819_v9, 0.0 }
 0x1f9   : > { %1211 = vrsqrt.f32 %v818_v58 }
 0x1fe   : > { %v1210_v20 = vpop.eup %1209 }
 0x1ff   : > { %v1212_v16 = vpop.eup %1211  ;;  %v833_v47 = vmul.f32 %v1210_v20, %v819_v9 }
 0x200   : > { %v821_v21 = vmul.f32 %v1212_v16, %v818_v58 }
 0x201   : > { %v834_v22 = vmul.f32 %v1210_v20, %v833_v47 }
 0x202   : > { %v822_v23 = vmul.f32 %v1212_v16, %v821_v21 }
 0x203   : > { %v835_v24 = vmul.f32 0.5, %v834_v22 }
 0x204   : > { %v823_v25 = vmul.f32 0.5, %v822_v23 }
 0x205   : > { %v836_v26 = vsub.f32 1.5, %v835_v24 }
 0x206   : > { %v824_v12 = vsub.f32 1.5, %v823_v25 }
 0x207   : > { %v837_v27 = vmul.f32 %v1210_v20, %v836_v26 }
 0x209   : > { %v838_v28 = vmul.f32 %v837_v27, %v819_v9 }
 0x20b   : > { %v840_v30 = vsel %vm839_vm12, %v819_v9, %v838_v28 }
 0x20c   : > { %v843_v33 = vsel %vm841_vm11, %v842_v31, %v840_v30 }
 0x22a   : > { %v734_v3 = vpop.xlane.xlu1 %733 }
 0x22b   : > { %v814_v49 = vadd.f32 %v1480_v10, %v734_v3 }
 0x22c   : > { %v728_v15 = vpop.xlane.xlu2 %727 }
 0x22d   : > { %886 = vrot.lane.b32.xlu2 %v814_v49, %s1238_s12  ;;  %v812_v42 = vadd.f32 %v810_v8, %v728_v15 }
 0x22f   : > { %863 = vrot.lane.b32.xlu0 %v812_v42, %s1238_s12 }
 0x232   : > { %v731_v10 = vpop.xlane.xlu1 %730 }
 0x233   : > { %v813_v61 = vadd.f32 %v811_v39, %v731_v10 }
 0x234   : > { %v737_v56 = vpop.xlane.xlu2 %736 }
 0x235   : > { %v860_v52 = vmul.f32 %v1112_v18, %v813_v61  ;;  %v815_v38 = vadd.f32 %v1476_v7, %v737_v56  ;;  %v825_v7 = vmul.f32 %v1212_v16, %v824_v12 }
 0x237   : > { %865 = vrot.lane.b32.xlu1 %v860_v52, %s1238_s12  ;;  %v883_v11 = vmul.f32 %v1112_v18, %v815_v38  ;;  %v826_v29 = vmul.f32 %v825_v7, %v818_v58 }
 0x239   : > { %888 = vrot.lane.b32.xlu0 %v883_v11, %s1238_s12  ;;  %v828_v51 = vsel %vm827_vm13, %v818_v58, %v826_v29 }
 0x23a   : > { %v831_v35 = vsel %vm829_vm14, %v830_v32, %v828_v51 }
 0x25d   : > { %v743_v34 = vpop.xlane.xlu0 %742 }
 0x25e   : > { %v845_v62 = vadd.f32 %v843_v33, %v743_v34 }
 0x25f   : > { %v740_v36 = vpop.xlane.xlu2 %739 }
 0x260   : > { %v844_v45 = vadd.f32 %v831_v35, %v740_v36  ;;  %v905_v37 = vmul.f32 %v1112_v18, %v845_v62 }
 0x262   : > { %908 = vrot.lane.b32.xlu1 %v844_v45, %s1238_s12  ;;  %910 = vrot.lane.b32.xlu0 %v905_v37, %s1238_s12 }
 0x287   : > { %v887_v48 = vpop.permute.xlu2 %886 }
 0x288   : > { %v892_v57 = vsel %vm869_vm15, %v887_v48, 0.0 }
 0x2a1   : > { %v864_v44 = vpop.permute.xlu0 %863 }
 0x2a2   : > { %v870_v50 = vsel %vm869_vm15, %v864_v44, 0.0 }
 0x2a9   : > { %v866_v46 = vpop.permute.xlu1 %865 }
 0x2aa   : > { %v871_v63 = vsel %vm869_vm15, %v866_v46, 0.0 }
 0x2ab   : > { %v872_v53 = vadd.f32 %v871_v63, %v870_v50  ;;  %v889_v54 = vpop.permute.xlu0 %888 }
 0x2ac   : > { %v893_v59 = vsel %vm869_vm15, %v889_v54, 0.0 }
 0x2ad   : > { %873 = vadd.xlane.f32.xlu2 %v872_v53  ;;  %v894_v60 = vadd.f32 %v893_v59, %v892_v57 }
 0x2af   : > { %895 = vadd.xlane.f32.xlu1 %v894_v60 }
 0x2d4   : > { %v909_v0 = vpop.permute.xlu1 %908  ;;  %v911_v1 = vpop.permute.xlu0 %910 }
 0x2d5   : > { %v914_v55 = vsel %vm869_vm15, %v909_v0, 0.0  ;;  %v915_v2 = vsel %vm869_vm15, %v911_v1, 0.0 }
 0x2d6   : > { %v916_v3 = vadd.f32 %v915_v2, %v914_v55 }
 0x2d8   : > { %917 = vadd.xlane.f32.xlu0 %v916_v3 }
 0x320   : > { %v874_v4 = vpop.xlane.xlu2 %873 }
 0x321   : > { %v875_v5 = vrot.slane %v874_v4, 4 }
 0x322   : > { %v896_v6 = vpop.xlane.xlu1 %895 }
 0x323   : > { %v876_v49 = vadd.f32 %v875_v5, %v874_v4  ;;  %v897_v8 = vrot.slane %v896_v6, 4 }
 0x325   : > { %v877_v13 = vrot.slane %v876_v49, 2  ;;  %v898_v14 = vadd.f32 %v897_v8, %v896_v6 }
 0x327   : > { %v878_v15 = vadd.f32 %v877_v13, %v876_v49  ;;  %v899_v42 = vrot.slane %v898_v14, 2 }
 0x329   : > { %v879_v41 = vrot.slane %v878_v15, 1  ;;  %v900_v17 = vadd.f32 %v899_v42, %v898_v14 }
 0x32b   : > { %v880_v39 = vadd.f32 %v879_v41, %v878_v15  ;;  %v901_v40 = vrot.slane %v900_v17, 1 }
 0x32d   : > { %1139 = vpush %v880_v39  ;;  %v902_v18 = vadd.f32 %v901_v40, %v900_v17 }
 0x32f   : > { %1141 = vpush %v902_v18 }
 0x34b   : > { %v918_v10 = vpop.xlane.xlu0 %917 }
 0x34c   : > { %v919_v61 = vrot.slane %v918_v10, 4 }
 0x34e   : > { %v920_v19 = vadd.f32 %v919_v61, %v918_v10 }
 0x350   : > { %v921_v9 = vrot.slane %v920_v19, 2 }
 0x352   : > { %v922_v52 = vadd.f32 %v921_v9, %v920_v19 }
 0x354   : > { %v923_v56 = vrot.slane %v922_v52, 1 }
 0x356   : > { %v924_v38 = vadd.f32 %v923_v56, %v922_v52 }
 0x358   : > { %1143 = vpush %v924_v38 }
 0x35e   : > { %s1140_s9 = spop %1139 }
 0x35f   : > { %v932_v16 = vstv %s1140_s9 }
 0x360   : > { %s1142_s10 = spop %1141 }
 0x361   : > { %v930_v11 = vstv %s1142_s10 }
 0x389   : > { %s1144_s12 = spop %1143 }
 0x38a   : > { %v928_v58 = vstv %s1144_s12 }
 0x38b   : > { %v929_v20 = vsel %vm927_vm0, %v928_v58, 0.0 }
 0x38c   : > { %v931_v47 = vsel %vm926_vm1, %v930_v11, %v929_v20 }
 0x38d   : > { %v933_v21 = vsel %vm574_vm10, %v932_v16, %v931_v47 }
 0x38e   : > { %934 = vst [vmem:[%s384_s15] sm:$0xff] %v933_v21 }
 0x38f PF: > { %s15_s20 = sadd.s32 1, %s1235_s20   ;;  %s1541_s18 = smov %s1231_s19 }
 0x390   : > { %p12_p5 = scmp.ge.s32.totalorder %s15_s20, 4   ;;  %s1542_s19 = smov %s1544_s21 }
 0x392   :  { %14 = sbr.rel (!%p12_p5) target bundleno = 2 (0x2), region = 79 }

// kernel: _lambda_.3
= control target key start
LH: loop header
LB: loop body
LE: loop exit
PB: predicated region body
PF: predicated region fallthrough
CT: control target
= control target key end

     0   :  { %s1448_s18 = smov 0   ;;  %s1450_s19 = smov 0   ;;  %s1837_s0 = inlined_call_operand.vmem [shape: f32[2,48,16], index: 0, kind: input, shape index: {}, may-alias: {0,1}]   ;;  %s1838_s1 = inlined_call_operand.vmem [shape: f32[2,48,16], index: 1, kind: input, shape index: {}, may-alias: {0,1}]   ;;  %s1839_s2 = inlined_call_operand.vmem [shape: f32[2,48,16], index: 2, kind: input, shape index: {}, may-alias: {2,3}]   ;;  %s1840_s3 = inlined_call_operand.vmem [shape: f32[2,48,16], index: 3, kind: input, shape index: {}, may-alias: {2,3}]   ;;  %s1841_s4 = inlined_call_operand.vmem [shape: bf16[64,64], index: 4, kind: input, shape index: {}]   ;;  %s1842_s5 = inlined_call_operand.vmem [shape: f32[2,1,8,128], index: 5, kind: output, shape index: {}]  }
   0x1   :  { %s1452_s20 = smov 0  }
   0x2 LB: > { %s27_s21 = sadd.s32 1, %s1407_s19  ;;  %p1247_p0 = scmp.ge.s32.totalorder %s1411_s20, 1  ;;  %s1411_s20 = sphi %s1452_s20, %s15_s20   ;;  %s1407_s19 = sphi %s1450_s19, %s1850_s19   ;;  %s1403_s18 = sphi %s1448_s18, %s1849_s18  }
   0x3   : > { %p29_p1 = scmp.ge.s32.totalorder %s27_s21, 2  ;;  %p271_p2 = scmp.lt.s32.totalorder %s1411_s20, 3 }
   0x5   : > { %s1852_s21 = smov (%p29_p1, %s27_s21), 0  ;;  %p272_p3 = pnand %p1247_p0, %p271_p2 }
   0x6   : > { %p335_p4 = scmp.lt.s32.totalorder (!%p272_p3), %s1403_s18, 1  ;;  %s1413_s27 = smov (!%p272_p3), 16  }
   0x7   : > { %275 = sbr.rel (%p272_p3) target bundleno = 943 (0x3af), region = 40  ;;  %s1414_s28 = smov (!%p272_p3), 32  }
   0x8   : > { %s1415_s7 = smov (!%p272_p3), 48  }
   0xc   : > { %s1854_s18 = smov (!%p335_p4, %s1403_s18), 1  ;;  %vm394_vm0 = vcmask 130048   ;;  %v1282_v10 = vld [vmem:[%s1841_s4 + $0x18] sm:$0xff]  ;;  %v1281_v11 = vld [vmem:[%s1841_s4 + $0x10] sm:$0xff]  ;;  %v1280_v13 = vld [vmem:[%s1841_s4 + $0x8] sm:$0xff]  ;;  %vm419_vm1 = vcmask 261248   ;;  %v589_v51 = vlaneseq }
   0xd   : > { %s1291_s22 = smul.u32 48, %s1854_s18  ;;  %1284 = vmatpush.bf16.msra.mxu2 %v1282_v10  ;;  %569 = vmatpush.bf16.msra.mxu0 %v1282_v10  ;;  %v1279_v14 = vld [vmem:[%s1841_s4] sm:$0xff]  ;;  %vm417_vm2 = vcmask 261249   ;;  %vm456_vm3 = vcmask 392450   ;;  %vm422_vm4 = vcmask 254080   ;;  %vm458_vm5 = vcmask 392448  }
   0xe   : > { %1283 = vmatpush.bf16.msra.mxu1 %v1282_v10  ;;  %vm493_vm6 = vcmask 523648   ;;  %vm461_vm7 = vcmask 386304   ;;  %vm496_vm8 = vcmask 518528   ;;  %vm491_vm9 = vcmask 523651   ;;  %s1252_s29 = sshll.u32 %s1854_s18, 3 }
   0xf   : > { %s364_s25 = scalar_lea.vmem %s1839_s2, %s1291_s22  ;;  %s1276_s26 = sadd.s32 24, %s1291_s22  ;;  %vm555_vm10 = vcmask 523264   ;;  %v1549_v52 = vand.u32 127, %v589_v51 }
  0x10   : > { %v392_v0 = vld [vmem:[%s364_s25 + $0x10] sm:$0xff]  ;;  %v390_v1 = vld [vmem:[%s364_s25] sm:$0xff]  ;;  %s375_s6 = scalar_lea.vmem %s1840_s3, %s1276_s26  ;;  %v391_v2 = vld [vmem:[%s364_s25 + $0x8] sm:$0xff]  ;;  %s342_s10 = scalar_lea.vmem %s1837_s0, %s1291_s22 }
  0x11   : > { %432 = vrot.lane.b32.xlu1 %v392_v0, %s1413_s27  ;;  %463 = vrot.lane.b32.xlu2 %v390_v1, %s1414_s28  ;;  %v393_v3 = vld [vmem:[%s375_s6] sm:$0xff]  ;;  %s353_s13 = scalar_lea.vmem %s1838_s1, %s1276_s26  ;;  %v388_v5 = vld [vmem:[%s342_s10 + $0x10] sm:$0xff]  ;;  %399 = vst.msk [vmem:[#allocation2 + $0x20] sm:$0xff] %vm394_vm0, %v391_v2  ;;  %s1416_s26 = smov 96   ;;  %vm591_vm11 = vcmp.eq.s32.totalorder %v1549_v52, 0 }
  0x12   : > { %428 = vrot.lane.b32.xlu0 %v390_v1, %s1413_s27  ;;  %v386_v4 = vld [vmem:[%s342_s10] sm:$0xff]  ;;  %v387_v7 = vld [vmem:[%s342_s10 + $0x8] sm:$0xff]  ;;  %400 = vst.msk [vmem:[#allocation2 + $0x28] sm:$0xff] %vm394_vm0, %v392_v0  ;;  %1286 = vmatpush.bf16.msra.mxu2 %v1281_v11  ;;  %s384_s8 = scalar_lea.vmem %s1842_s5, %s1252_s29 }
  0x13   : > { %v389_v6 = vld [vmem:[%s353_s13] sm:$0xff]  ;;  %395 = vst.msk [vmem:[#allocation2] sm:$0xff] %vm394_vm0, %v386_v4  ;;  %570 = vmatpush.bf16.msra.mxu0 %v1281_v11  ;;  %1285 = vmatpush.bf16.msra.mxu1 %v1281_v11 }
  0x14   : > { %396 = vst.msk [vmem:[#allocation2 + $0x8] sm:$0xff] %vm394_vm0, %v387_v7 }
  0x15   : > { %397 = vst.msk [vmem:[#allocation2 + $0x10] sm:$0xff] %vm394_vm0, %v388_v5 }
  0x16   : > { %398 = vst.msk [vmem:[#allocation2 + $0x18] sm:$0xff] %vm394_vm0, %v390_v1  ;;  %1288 = vmatpush.bf16.msra.mxu2 %v1280_v13 }
  0x17   : > { %571 = vmatpush.bf16.msra.mxu0 %v1280_v13  ;;  %1287 = vmatpush.bf16.msra.mxu1 %v1280_v13 }
  0x19   : > { %465 = vrot.lane.b32.xlu2 %v391_v2, %s1414_s28  ;;  %434 = vrot.lane.b32.xlu1 %v393_v3, %s1413_s27 }
  0x1a   : > { %430 = vrot.lane.b32.xlu0 %v391_v2, %s1413_s27  ;;  %1290 = vmatpush.bf16.msra.mxu2 %v1279_v14 }
  0x1b   : > { %572 = vmatpush.bf16.msra.mxu0 %v1279_v14  ;;  %1289 = vmatpush.bf16.msra.mxu1 %v1279_v14 }
  0x21   : > { %500 = vrot.lane.b32.xlu2 %v391_v2, %s1415_s7  ;;  %469 = vrot.lane.b32.xlu1 %v393_v3, %s1414_s28 }
  0x22   : > { %467 = vrot.lane.b32.xlu0 %v392_v0, %s1414_s28 }
  0x29   : > { %504 = vrot.lane.b32.xlu1 %v393_v3, %s1415_s7  ;;  %405 = vrot.lane.b32.xlu2 %v386_v4, %s1413_s27 }
  0x2a   : > { %502 = vrot.lane.b32.xlu0 %v392_v0, %s1415_s7 }
  0x31   : > { %409 = vrot.lane.b32.xlu1 %v388_v5, %s1413_s27  ;;  %411 = vrot.lane.b32.xlu2 %v389_v6, %s1413_s27 }
  0x32   : > { %407 = vrot.lane.b32.xlu0 %v387_v7, %s1413_s27 }
  0x39   : > { %446 = vrot.lane.b32.xlu1 %v387_v7, %s1414_s28  ;;  %448 = vrot.lane.b32.xlu2 %v388_v5, %s1414_s28 }
  0x3a   : > { %444 = vrot.lane.b32.xlu0 %v386_v4, %s1414_s28 }
  0x41   : > { %479 = vrot.lane.b32.xlu1 %v386_v4, %s1415_s7  ;;  %481 = vrot.lane.b32.xlu2 %v387_v7, %s1415_s7 }
  0x42   : > { %450 = vrot.lane.b32.xlu0 %v389_v6, %s1414_s28 }
  0x49   : > { %485 = vrot.lane.b32.xlu1 %v389_v6, %s1415_s7  ;;  %498 = vrot.lane.b32.xlu2 %v390_v1, %s1415_s7 }
  0x4a   : > { %483 = vrot.lane.b32.xlu0 %v388_v5, %s1415_s7 }
  0x6b   : > { %v464_v8 = vpop.permute.xlu2 %463 }
  0x73   : > { %v466_v9 = vpop.permute.xlu2 %465 }
  0x7b   : > { %v501_v12 = vpop.permute.xlu2 %500 }
  0x83   : > { %v433_v15 = vpop.permute.xlu1 %432  ;;  %v406_v16 = vpop.permute.xlu2 %405 }
  0x84   : > { %442 = vst.msk [vmem:[#allocation2 + $0x27] sm:$0xff] %vm419_vm1, %v433_v15  ;;  %v429_v17 = vpop.permute.xlu0 %428 }
  0x85   : > { %440 = vst.msk [vmem:[#allocation2 + $0x17] sm:$0xfe] %vm417_vm2, %v429_v17 }
  0x86   : > { %418 = vst.msk [vmem:[#allocation2 - $0x1] sm:$0xfe] %vm417_vm2, %v406_v16  ;;  %vm816_vm2 = vcmask 261120  }
  0x87   : > { %475 = vst.msk [vmem:[#allocation2 + $0x16] sm:$0xfc] %vm456_vm3, %v464_v8 }
  0x8b   : > { %v435_v18 = vpop.permute.xlu1 %434  ;;  %v412_v19 = vpop.permute.xlu2 %411 }
  0x8c   : > { %v431_v20 = vpop.permute.xlu0 %430  ;;  %443 = vst.msk [vmem:[#allocation2 + $0x2f] sm:$0x1] %vm422_vm4, %v435_v18 }
  0x8d   : > { %441 = vst.msk [vmem:[#allocation2 + $0x1f] sm:$0xff] %vm419_vm1, %v431_v20 }
  0x8e   : > { %423 = vst.msk [vmem:[#allocation2 + $0x17] sm:$0x1] %vm422_vm4, %v412_v19 }
  0x8f   : > { %476 = vst.msk [vmem:[#allocation2 + $0x1e] sm:$0xff] %vm458_vm5, %v466_v9 }
  0x90   : > { %511 = vst.msk [vmem:[#allocation2 + $0x1d] sm:$0xff] %vm493_vm6, %v501_v12 }
  0x93   : > { %v470_v21 = vpop.permute.xlu1 %469  ;;  %v449_v22 = vpop.permute.xlu2 %448 }
  0x94   : > { %v468_v23 = vpop.permute.xlu0 %467  ;;  %478 = vst.msk [vmem:[#allocation2 + $0x2e] sm:$0x3] %vm461_vm7, %v470_v21 }
  0x95   : > { %477 = vst.msk [vmem:[#allocation2 + $0x26] sm:$0xff] %vm458_vm5, %v468_v23 }
  0x9b   : > { %v505_v24 = vpop.permute.xlu1 %504  ;;  %v482_v25 = vpop.permute.xlu2 %481 }
  0x9c   : > { %v503_v26 = vpop.permute.xlu0 %502  ;;  %513 = vst.msk [vmem:[#allocation2 + $0x2d] sm:$0x7] %vm496_vm8, %v505_v24 }
  0x9d   : > { %512 = vst.msk [vmem:[#allocation2 + $0x25] sm:$0xff] %vm493_vm6, %v503_v26 }
  0xa3   : > { %v410_v27 = vpop.permute.xlu1 %409  ;;  %v499_v29 = vpop.permute.xlu2 %498 }
  0xa4   : > { %421 = vst.msk [vmem:[#allocation2 + $0xf] sm:$0xff] %vm419_vm1, %v410_v27  ;;  %v408_v28 = vpop.permute.xlu0 %407  ;;  %v518_v30 = vld [vmem:[#allocation2 + $0x20] sm:$0xff]  ;;  %v519_v31 = vld [vmem:[#allocation2 + $0x28] sm:$0xff] }
  0xa5   : > { %420 = vst.msk [vmem:[#allocation2 + $0x7] sm:$0xff] %vm419_vm1, %v408_v28  ;;  %v522_v32 = vpack.c.bf16 %v519_v31, %v518_v30 }
  0xa6   : > { %460 = vst.msk [vmem:[#allocation2 + $0xe] sm:$0xff] %vm458_vm5, %v449_v22 }
  0xa7   : > { %510 = vst.msk [vmem:[#allocation2 + $0x15] sm:$0xf8] %vm491_vm9, %v499_v29  ;;  %1271 = vmatmul.msk.bf16.vlgmr.msra.gmra.mxu2 %vm555_vm10, %v522_v32 }
  0xab   : > { %v447_v33 = vpop.permute.xlu1 %446 }
  0xac   : > { %459 = vst.msk [vmem:[#allocation2 + $0x6] sm:$0xff] %vm458_vm5, %v447_v33  ;;  %v445_v34 = vpop.permute.xlu0 %444 }
  0xad   : > { %457 = vst.msk [vmem:[#allocation2 - $0x2] sm:$0xfc] %vm456_vm3, %v445_v34 }
  0xae   : > { %494 = vst.msk [vmem:[#allocation2 + $0x5] sm:$0xff] %vm493_vm6, %v482_v25  ;;  %v517_v42 = vld [vmem:[#allocation2 + $0x18] sm:$0xff] }
  0xb3   : > { %v480_v35 = vpop.permute.xlu1 %479 }
  0xb4   : > { %492 = vst.msk [vmem:[#allocation2 - $0x3] sm:$0xf8] %vm491_vm9, %v480_v35  ;;  %v451_v36 = vpop.permute.xlu0 %450 }
  0xb5   : > { %462 = vst.msk [vmem:[#allocation2 + $0x16] sm:$0x3] %vm461_vm7, %v451_v36 }
  0xbb   : > { %v486_v37 = vpop.permute.xlu1 %485  ;;  %v514_v39 = vld [vmem:[#allocation2] sm:$0xff] }
  0xbc   : > { %497 = vst.msk [vmem:[#allocation2 + $0x15] sm:$0x7] %vm496_vm8, %v486_v37  ;;  %v484_v38 = vpop.permute.xlu0 %483 }
  0xbd   : > { %495 = vst.msk [vmem:[#allocation2 + $0xd] sm:$0xff] %vm493_vm6, %v484_v38 }
  0xc4   : > { %v515_v40 = vld [vmem:[#allocation2 + $0x8] sm:$0xff]  ;;  %v516_v41 = vld [vmem:[#allocation2 + $0x10] sm:$0xff] }
  0xc5   : > { %v520_v43 = vpack.c.bf16 %v515_v40, %v514_v39  ;;  %v521_v44 = vpack.c.bf16 %v517_v42, %v516_v41 }
  0xc7   : > { %1269 = vmatmul.msk.bf16.vlgmr.msra.gmra.mxu0 %vm555_vm10, %v520_v43  ;;  %1270 = vmatmul.msk.bf16.vlgmr.msra.gmra.mxu1 %vm555_vm10, %v521_v44 }
 0x12a   : > { %v1524_v45 = vpop.f32.mrf.mxu2 }
 0x132   : > { %v1534_v48 = vpop.f32.mrf.mxu2 }
 0x133   : > { %v1563_v61 = vmul.f32 %v1534_v48, %v1534_v48 }
 0x144   : > { %v1526_v46 = vpop.f32.mrf.mxu0  ;;  %v1528_v47 = vpop.f32.mrf.mxu1 }
 0x145   : > { %601 = vrot.lane.b32.xlu2 %v1528_v47, %s1416_s26  ;;  %597 = vrot.lane.b32.xlu0 %v1526_v46, %s1416_s26  ;;  %v1556_v55 = vmul.f32 %v1528_v47, %v1528_v47  ;;  %v1577_v15 = vmul.f32 %v1526_v46, %v1526_v46  ;;  %v626_v40 = vsub.f32 %v1528_v47, %v1534_v48 }
 0x14c   : > { %v1536_v49 = vpop.f32.mrf.mxu0  ;;  %v1538_v50 = vpop.f32.mrf.mxu1 }
 0x14d   : > { %616 = vrot.lane.b32.xlu2 %v1534_v48, %s1416_s26  ;;  %612 = vrot.lane.b32.xlu0 %v1538_v50, %s1416_s26  ;;  %v1587_v27 = vmul.f32 %v1538_v50, %v1538_v50  ;;  %v1602_v35 = vmul.f32 %v1536_v49, %v1536_v49 }
 0x14e   : > { %599 = vrot.lane.b32.xlu1 %v1536_v49, %s1416_s26 }
 0x156   : > { %614 = vrot.lane.b32.xlu1 %v1524_v45, %s1416_s26 }
 0x19f   : > { %v602_v53 = vpop.permute.xlu2 %601 }
 0x1a0   : > { %v608_v54 = vsel %vm591_vm11, 0.0, %v602_v53 }
 0x1a1   : > { %v659_v56 = vmul.f32 %v608_v54, %v608_v54 }
 0x1a3   : > { %v662_v57 = vadd.f32 %v659_v56, %v1556_v55 }
 0x1a5   : > { %v665_v58 = vmax.f32 %v662_v57, 1e-07 }
 0x1a7   : > { %v617_v59 = vpop.permute.xlu2 %616  ;;  %1329 = vrsqrt.f32 %v665_v58  ;;  %vm701_vm13 = vweird.f32 %v665_v58 }
 0x1a8   : > { %v623_v60 = vsel %vm591_vm11, 0.0, %v617_v59  ;;  %1331 = vlog2.f32 %v665_v58 }
 0x1a9   : > { %v647_v62 = vmul.f32 %v623_v60, %v623_v60  ;;  %v629_v31 = vsub.f32 %v608_v54, %v623_v60 }
 0x1ab   : > { %v650_v63 = vadd.f32 %v647_v62, %v1563_v61  ;;  %v635_v53 = vmul.f32 %v629_v31, %v629_v31 }
 0x1ad   : > { %v1566_v0 = vmax.f32 %v650_v63, 1e-07  ;;  %v1330_v1 = vpop.eup %1329  ;;  %v1621_v63 = vmul.f32 %v1524_v45, %v1524_v45 }
 0x1ae   : > { %v696_v2 = vmul.f32 %v1330_v1, %v665_v58  ;;  %v1332_v5 = vpop.eup %1331  ;;  %vm702_vm12 = vweird.f32 %v1330_v1 }
 0x1af   : > { %1333 = vrsqrt.f32 %v1566_v0  ;;  %v671_v13 = vmul.f32 0.6931472, %v1332_v5  ;;  %vm703_vm14 = vmor %vm701_vm13, %vm702_vm12  ;;  %vm743_vm0 = vweird.f32 %v1566_v0 }
 0x1b0   : > { %v697_v3 = vmul.f32 %v1330_v1, %v696_v2  ;;  %1335 = vlog2.f32 %v1566_v0  ;;  %v625_v2 = vsub.f32 %v1536_v49, %v1524_v45 }
 0x1b1   : > { %v674_v21 = vmul.f32 0.5, %v671_v13 }
 0x1b2   : > { %v698_v4 = vmul.f32 0.5, %v697_v3 }
 0x1b4   : > { %v699_v6 = vsub.f32 1.5, %v698_v4 }
 0x1b5   : > { %v1334_v7 = vpop.eup %1333 }
 0x1b6   : > { %v738_v8 = vmul.f32 %v1334_v7, %v1566_v0  ;;  %v700_v10 = vmul.f32 %v1330_v1, %v699_v6  ;;  %v1336_v12 = vpop.eup %1335  ;;  %vm744_vm15 = vweird.f32 %v1334_v7  ;;  %v624_v6 = vsub.f32 %v1526_v46, %v1538_v50 }
 0x1b7   : > { %v598_v9 = vpop.permute.xlu0 %597  ;;  %v713_v20 = vmul.f32 0.6931472, %v1336_v12  ;;  %vm745_vm1 = vmor %vm743_vm0, %vm744_vm15 }
 0x1b8   : > { %v1573_v11 = vsel %vm591_vm11, 0.0, %v598_v9  ;;  %v739_v14 = vmul.f32 %v1334_v7, %v738_v8  ;;  %v704_v19 = vsel %vm703_vm14, %v1330_v1, %v700_v10  ;;  %v1627_v1 = vmul.f32 %v626_v40, %v626_v40 }
 0x1b9   : > { %v657_v16 = vmul.f32 %v1573_v11, %v1573_v11  ;;  %v707_v24 = vmul.f32 %v704_v19, %v674_v21  ;;  %v716_v28 = vmul.f32 0.5, %v713_v20 }
 0x1ba   : > { %v740_v17 = vmul.f32 0.5, %v739_v14  ;;  %v638_v9 = vadd.f32 %v635_v53, %v1627_v1 }
 0x1bb   : > { %v660_v18 = vadd.f32 %v657_v16, %v1577_v15  ;;  %v752_v38 = vmul.f32 %v707_v24, %v1528_v47  ;;  %v761_v41 = vmul.f32 %v707_v24, %v608_v54 }
 0x1bc   : > { %v741_v22 = vsub.f32 1.5, %v740_v17  ;;  %v641_v24 = vmax.f32 %v638_v9, 1e-07 }
 0x1bd   : > { %v1582_v23 = vmax.f32 %v660_v18, 1e-07 }
 0x1be   : > { %v742_v25 = vmul.f32 %v1334_v7, %v741_v22 }
 0x1bf   : > { %v613_v26 = vpop.permute.xlu0 %612  ;;  %1337 = vrsqrt.f32 %v1582_v23  ;;  %vm681_vm4 = vweird.f32 %v1582_v23 }
 0x1c0   : > { %v1592_v29 = vsel %vm591_vm11, 0.0, %v613_v26  ;;  %v600_v30 = vpop.permute.xlu1 %599  ;;  %v746_v32 = vsel %vm745_vm1, %v1334_v7, %v742_v25  ;;  %1339 = vlog2.f32 %v1582_v23  ;;  %v1651_v25 = vmul.f32 %v625_v2, %v625_v2 }
 0x1c1   : > { %v645_v33 = vmul.f32 %v1592_v29, %v1592_v29  ;;  %v1598_v34 = vsel %vm591_vm11, 0.0, %v600_v30  ;;  %v749_v36 = vmul.f32 %v746_v32, %v716_v28  ;;  %v1653_v26 = vmul.f32 %v624_v6, %v624_v6 }
 0x1c2   : > { %v658_v37 = vmul.f32 %v1598_v34, %v1598_v34 }
 0x1c3   : > { %v648_v39 = vadd.f32 %v645_v33, %v1587_v27  ;;  %v755_v42 = vmul.f32 %v749_v36, %v1534_v48  ;;  %v764_v43 = vmul.f32 %v749_v36, %v623_v60  ;;  %v627_v60 = vsub.f32 %v1573_v11, %v1592_v29 }
 0x1c4   : > { %v661_v44 = vadd.f32 %v658_v37, %v1602_v35 }
 0x1c5   : > { %v1613_v56 = vmax.f32 %v648_v39, 1e-07  ;;  %v1615_v57 = vpop.eup %1337  ;;  %v758_v58 = vsub.f32 %v752_v38, %v755_v42  ;;  %v767_v59 = vsub.f32 %v761_v41, %v764_v43  ;;  %v633_v17 = vmul.f32 %v627_v60, %v627_v60 }
 0x1c6   : > { %v1617_v62 = vmax.f32 %v661_v44, 1e-07  ;;  %v676_v54 = vmul.f32 %v1615_v57, %v1582_v23  ;;  %v1340_v14 = vpop.eup %1339  ;;  %vm682_vm3 = vweird.f32 %v1615_v57  ;;  %v823_v42 = vsel %vm816_vm2, %v641_v24, 0.0 }
 0x1c7   : > { %v770_v3 = vmul.f32 %v758_v58, %v758_v58  ;;  %v773_v4 = vmul.f32 %v767_v59, %v767_v59  ;;  %1341 = vrsqrt.f32 %v1613_v56  ;;  %v826_v18 = vsel %vm816_vm2, %v1613_v56, 0.0  ;;  %vm1673_vm5 = vmor %vm681_vm4, %vm682_vm3 }
 0x1c8   : > { %v615_v5 = vpop.permute.xlu1 %614  ;;  %v677_v7 = vmul.f32 %v1615_v57, %v676_v54  ;;  %1343 = vrsqrt.f32 %v1617_v62  ;;  %827 = vadd.xlane.f32.xlu2 %v826_v18  ;;  %v667_v30 = vmul.f32 0.6931472, %v1340_v14  ;;  %v636_v36 = vadd.f32 %v633_v17, %v1653_v26 }
 0x1c9   : > { %v1637_v8 = vsel %vm591_vm11, 0.0, %v615_v5  ;;  %v776_v10 = vadd.f32 %v773_v4, %v770_v3  ;;  %1345 = vlog2.f32 %v1613_v56  ;;  %vm723_vm7 = vweird.f32 %v1613_v56 }
 0x1ca   : > { %v628_v12 = vsub.f32 %v1598_v34, %v1637_v8  ;;  %v646_v13 = vmul.f32 %v1637_v8, %v1637_v8  ;;  %v678_v16 = vmul.f32 0.5, %v677_v7  ;;  %v672_v43 = vmul.f32 0.5, %v667_v30 }
 0x1cb   : > { %v1648_v19 = vmax.f32 %v776_v10, 1e-07  ;;  %v639_v60 = vmax.f32 %v636_v36, 1e-07  ;;  %vm691_vm10 = vweird.f32 %v1617_v62 }
 0x1cc   : > { %v634_v20 = vmul.f32 %v628_v12, %v628_v12  ;;  %v649_v21 = vadd.f32 %v646_v13, %v1621_v63  ;;  %v679_v22 = vsub.f32 1.5, %v678_v16 }
 0x1cd   : > { %v1342_v28 = vpop.eup %1341  ;;  %1347 = vrsqrt.f32 %v1648_v19  ;;  %vm811_vm0 = vcmp.eq.f32.partialorder %v1648_v19, inf  ;;  %vm813_vm1 = vcmp.eq.f32.partialorder %v1648_v19, 0.0 }
 0x1ce   : > { %v1655_v31 = vmax.f32 %v649_v21, 1e-07  ;;  %v718_v32 = vmul.f32 %v1342_v28, %v1613_v56  ;;  %v637_v33 = vadd.f32 %v634_v20, %v1651_v25  ;;  %v1661_v37 = vpop.eup %1343  ;;  %v680_v38 = vmul.f32 %v1615_v57, %v679_v22 }
 0x1cf   : > { %v1346_v39 = vpop.eup %1345  ;;  %1349 = vlog2.f32 %v1617_v62  ;;  %v686_v41 = vmul.f32 %v1661_v37, %v1617_v62  ;;  %vm724_vm6 = vweird.f32 %v1342_v28  ;;  %v817_v20 = vsel %vm816_vm2, %v639_v60, 0.0 }
 0x1d0   : > { %v719_v40 = vmul.f32 %v1342_v28, %v718_v32  ;;  %1351 = vrsqrt.f32 %v1655_v31  ;;  %v829_v44 = vsel %vm816_vm2, %v1655_v31, 0.0  ;;  %v640_v54 = vmax.f32 %v637_v33, 1e-07  ;;  %824 = vadd.xlane.f32.xlu2 %v823_v42  ;;  %vm725_vm8 = vmor %vm723_vm7, %vm724_vm6 }
 0x1d1   : > { %v687_v59 = vmul.f32 %v1661_v37, %v686_v41  ;;  %830 = vadd.xlane.f32.xlu0 %v829_v44  ;;  %v684_v23 = vsel %vm1673_vm5, %v1615_v57, %v680_v38  ;;  %v709_v3 = vmul.f32 0.6931472, %v1346_v39  ;;  %1353 = vlog2.f32 %v1655_v31 }
 0x1d2   : > { %v720_v58 = vmul.f32 0.5, %v719_v40  ;;  %v820_v6 = vsel %vm816_vm2, %v640_v54, 0.0  ;;  %v705_v10 = vmul.f32 %v684_v23, %v672_v43  ;;  %vm692_vm9 = vweird.f32 %v1661_v37 }
 0x1d3   : > { %v1348_v2 = vpop.eup %1347  ;;  %v688_v5 = vmul.f32 0.5, %v687_v59  ;;  %821 = vadd.xlane.f32.xlu1 %v820_v6  ;;  %v714_v16 = vmul.f32 0.5, %v709_v3  ;;  %vm693_vm12 = vmor %vm691_vm10, %vm692_vm9  ;;  %v832_v41 = vsel %vm816_vm2, %v1566_v0, 0.0  ;;  %vm733_vm14 = vweird.f32 %v1655_v31 }
 0x1d4   : > { %v721_v4 = vsub.f32 1.5, %v720_v58  ;;  %v805_v7 = vmul.f32 %v1348_v2, %v1648_v19  ;;  %v750_v30 = vmul.f32 %v705_v10, %v1526_v46 }
 0x1d5   : > { %v1350_v9 = vpop.eup %1349  ;;  %v689_v13 = vsub.f32 1.5, %v688_v5 }
 0x1d6   : > { %v722_v12 = vmul.f32 %v1342_v28, %v721_v4  ;;  %v806_v14 = vmul.f32 %v1348_v2, %v805_v7  ;;  %v1352_v57 = vpop.eup %1351  ;;  %v669_v32 = vmul.f32 0.6931472, %v1350_v9 }
 0x1d7   : > { %v728_v18 = vmul.f32 %v1352_v57, %v1655_v31  ;;  %v1354_v21 = vpop.eup %1353  ;;  %v690_v24 = vmul.f32 %v1661_v37, %v689_v13  ;;  %vm734_vm13 = vweird.f32 %v1352_v57 }
 0x1d8   : > { %v726_v17 = vsel %vm725_vm8, %v1342_v28, %v722_v12  ;;  %v807_v56 = vmul.f32 0.5, %v806_v14  ;;  %v759_v28 = vmul.f32 %v705_v10, %v1573_v11  ;;  %v711_v53 = vmul.f32 0.6931472, %v1354_v21  ;;  %vm735_vm15 = vmor %vm733_vm14, %vm734_vm13 }
 0x1d9   : > { %v747_v22 = vmul.f32 %v726_v17, %v714_v16  ;;  %v729_v33 = vmul.f32 %v1352_v57, %v728_v18  ;;  %818 = vadd.xlane.f32.xlu0 %v817_v20  ;;  %v694_v44 = vsel %vm693_vm12, %v1661_v37, %v690_v24  ;;  %v673_v62 = vmul.f32 0.5, %v669_v32 }
 0x1da   : > { %v808_v39 = vsub.f32 1.5, %v807_v56  ;;  %v715_v0 = vmul.f32 0.5, %v711_v53  ;;  %v814_v37 = vand.u32 2147483648, %v1648_v19 }
 0x1db   : > { %v753_v36 = vmul.f32 %v747_v22, %v1538_v50  ;;  %v762_v38 = vmul.f32 %v747_v22, %v1592_v29  ;;  %v730_v40 = vmul.f32 0.5, %v729_v33  ;;  %833 = vadd.xlane.f32.xlu1 %v832_v41  ;;  %v706_v60 = vmul.f32 %v694_v44, %v673_v62 }
 0x1dc   : > { %v809_v11 = vmul.f32 %v1348_v2, %v808_v39 }
 0x1dd   : > { %v756_v42 = vsub.f32 %v750_v30, %v753_v36  ;;  %v765_v43 = vsub.f32 %v759_v28, %v762_v38  ;;  %v731_v58 = vsub.f32 1.5, %v730_v40  ;;  %v751_v9 = vmul.f32 %v706_v60, %v1536_v49 }
 0x1de   : > { %v810_v23 = vmul.f32 %v809_v11, %v1648_v19  ;;  %v760_v10 = vmul.f32 %v706_v60, %v1598_v34  ;;  %v1712_v11 = vmax.f32 %v1587_v27, 1e-07  ;;  %v1717_v60 = vmax.f32 %v1602_v35, 1e-07 }
 0x1df   : > { %v768_v59 = vmul.f32 %v756_v42, %v756_v42  ;;  %v771_v54 = vmul.f32 %v765_v43, %v765_v43  ;;  %v732_v29 = vmul.f32 %v1352_v57, %v731_v58  ;;  %v1725_v27 = vmax.f32 %v1556_v55, 1e-07 }
 0x1e0   : > { %v812_v5 = vsel %vm811_vm0, %v1648_v19, %v810_v23  ;;  %v1720_v23 = vmax.f32 %v1621_v63, 1e-07  ;;  %vm907_vm7 = vweird.f32 %v1712_v11  ;;  %vm875_vm14 = vweird.f32 %v1717_v60 }
 0x1e1   : > { %v774_v3 = vadd.f32 %v771_v54, %v768_v59  ;;  %v736_v4 = vsel %vm735_vm15, %v1352_v57, %v732_v29  ;;  %v815_v7 = vsel %vm813_vm1, %v814_v37, %v812_v5  ;;  %v847_v59 = vmax.f32 %v1577_v15, 1e-07 }
 0x1e2   : > { %v748_v6 = vmul.f32 %v736_v4, %v715_v0  ;;  %v841_v31 = vsel %vm816_vm2, %v815_v7, 0.0  ;;  %v1728_v15 = vmax.f32 %v1563_v61, 1e-07 }
 0x1e3   : > { %v777_v2 = vmax.f32 %v774_v3, 1e-07  ;;  %842 = vadd.xlane.f32.xlu1 %v841_v31  ;;  %vm865_vm10 = vweird.f32 %v847_v59 }
 0x1e4   : > { %v754_v12 = vmul.f32 %v748_v6, %v1524_v45  ;;  %v763_v13 = vmul.f32 %v748_v6, %v1637_v8 }
 0x1e5   : > { %1355 = vrsqrt.f32 %v777_v2  ;;  %vm787_vm3 = vcmp.eq.f32.partialorder %v777_v2, inf  ;;  %v790_v8 = vand.u32 2147483648, %v777_v2  ;;  %vm789_vm4 = vcmp.eq.f32.partialorder %v777_v2, 0.0 }
 0x1e6   : > { %v757_v14 = vsub.f32 %v751_v9, %v754_v12  ;;  %v766_v57 = vsub.f32 %v760_v10, %v763_v13 }
 0x1e8   : > { %v769_v16 = vmul.f32 %v757_v14, %v757_v14  ;;  %v772_v17 = vmul.f32 %v766_v57, %v766_v57 }
 0x1ea   : > { %v775_v18 = vadd.f32 %v772_v17, %v769_v16 }
 0x1eb   : > { %v1356_v19 = vpop.eup %1355 }
 0x1ec   : > { %v781_v20 = vmul.f32 %v1356_v19, %v777_v2  ;;  %v778_v21 = vmax.f32 %v775_v18, 1e-07 }
 0x1ee   : > { %v782_v22 = vmul.f32 %v1356_v19, %v781_v20  ;;  %1357 = vrsqrt.f32 %v778_v21  ;;  %vm799_vm5 = vcmp.eq.f32.partialorder %v778_v21, inf  ;;  %v802_v44 = vand.u32 2147483648, %v778_v21 }
 0x1ef   : > { %vm801_vm6 = vcmp.eq.f32.partialorder %v778_v21, 0.0  ;;  %1359 = vrsqrt.f32 %v1712_v11 }
 0x1f0   : > { %v783_v24 = vmul.f32 0.5, %v782_v22  ;;  %1361 = vrsqrt.f32 %v847_v59 }
 0x1f1   : > { %1363 = vrsqrt.f32 %v1717_v60 }
 0x1f2   : > { %v784_v56 = vsub.f32 1.5, %v783_v24  ;;  %1365 = vrsqrt.f32 %v1720_v23 }
 0x1f3   : > { %1367 = vrsqrt.f32 %v1725_v27 }
 0x1f4   : > { %v785_v30 = vmul.f32 %v1356_v19, %v784_v56  ;;  %v1358_v34 = vpop.eup %1357  ;;  %1369 = vrsqrt.f32 %v1728_v15 }
 0x1f5   : > { %v793_v33 = vmul.f32 %v1358_v34, %v778_v21  ;;  %v1360_v54 = vpop.eup %1359  ;;  %1371 = vlog2.f32 %v1712_v11 }
 0x1f6   : > { %v786_v32 = vmul.f32 %v785_v30, %v777_v2  ;;  %v1362_v29 = vpop.eup %1361  ;;  %v902_v3 = vmul.f32 %v1360_v54, %v1712_v11  ;;  %1373 = vlog2.f32 %v847_v59 }
 0x1f7   : > { %v794_v36 = vmul.f32 %v1358_v34, %v793_v33  ;;  %v860_v0 = vmul.f32 %v1362_v29, %v847_v59  ;;  %v1732_v4 = vpop.eup %1363  ;;  %1375 = vlog2.f32 %v1717_v60  ;;  %vm866_vm8 = vweird.f32 %v1362_v29 }
 0x1f8   : > { %v788_v28 = vsel %vm787_vm3, %v777_v2, %v786_v32  ;;  %v903_v37 = vmul.f32 %v1360_v54, %v902_v3  ;;  %v1736_v5 = vpop.eup %1365  ;;  %v870_v55 = vmul.f32 %v1732_v4, %v1717_v60  ;;  %1377 = vlog2.f32 %v1720_v23  ;;  %vm867_vm12 = vmor %vm865_vm10, %vm866_vm8 }
 0x1f9   : > { %v791_v38 = vsel %vm789_vm4, %v790_v8, %v788_v28  ;;  %v795_v40 = vmul.f32 0.5, %v794_v36  ;;  %v861_v35 = vmul.f32 %v1362_v29, %v860_v0  ;;  %v1740_v2 = vpop.eup %1367  ;;  %v912_v7 = vmul.f32 %v1736_v5, %v1720_v23 }
 0x1fa   : > { %v835_v39 = vsel %vm816_vm2, %v791_v38, 0.0  ;;  %v904_v63 = vmul.f32 0.5, %v903_v37  ;;  %v1744_v9 = vpop.eup %1369  ;;  %v871_v10 = vmul.f32 %v1732_v4, %v870_v55  ;;  %v880_v12 = vmul.f32 %v1740_v2, %v1725_v27 }
 0x1fb   : > { %836 = vadd.xlane.f32.xlu2 %v835_v39  ;;  %v796_v41 = vsub.f32 1.5, %v795_v40  ;;  %v862_v61 = vmul.f32 0.5, %v861_v35  ;;  %v1372_v31 = vpop.eup %1371  ;;  %v922_v57 = vmul.f32 %v1744_v9, %v1728_v15  ;;  %v913_v17 = vmul.f32 %v1736_v5, %v912_v7 }
 0x1fc   : > { %v905_v6 = vsub.f32 1.5, %v904_v63  ;;  %v1374_v14 = vpop.eup %1373  ;;  %v893_v19 = vmul.f32 0.6931472, %v1372_v31  ;;  %v872_v18 = vmul.f32 0.5, %v871_v10  ;;  %v881_v20 = vmul.f32 %v1740_v2, %v880_v12 }
 0x1fd   : > { %v797_v42 = vmul.f32 %v1358_v34, %v796_v41  ;;  %v863_v13 = vsub.f32 1.5, %v862_v61  ;;  %v851_v22 = vmul.f32 0.6931472, %v1374_v14  ;;  %v923_v24 = vmul.f32 %v1744_v9, %v922_v57  ;;  %v1376_v28 = vpop.eup %1375 }
 0x1fe   : > { %v906_v16 = vmul.f32 %v1360_v54, %v905_v6  ;;  %v914_v30 = vmul.f32 0.5, %v913_v17  ;;  %v898_v34 = vmul.f32 0.5, %v893_v19  ;;  %v873_v32 = vsub.f32 1.5, %v872_v18  ;;  %v1378_v41 = vpop.eup %1377 }
 0x1ff   : > { %v798_v43 = vmul.f32 %v797_v42, %v778_v21  ;;  %1379 = vlog2.f32 %v1725_v27  ;;  %v882_v33 = vmul.f32 0.5, %v881_v20  ;;  %v856_v38 = vmul.f32 0.5, %v851_v22 }
 0x200   : > { %1381 = vlog2.f32 %v1728_v15  ;;  %v924_v39 = vmul.f32 0.5, %v923_v24  ;;  %v915_v40 = vsub.f32 1.5, %v914_v30  ;;  %vm876_vm13 = vweird.f32 %v1732_v4 }
 0x201   : > { %v800_v53 = vsel %vm799_vm5, %v778_v21, %v798_v43  ;;  %v864_v21 = vmul.f32 %v1362_v29, %v863_v13  ;;  %v874_v43 = vmul.f32 %v1732_v4, %v873_v32  ;;  %vm918_vm15 = vweird.f32 %v1736_v5  ;;  %vm1765_vm0 = vmor %vm875_vm14, %vm876_vm13 }
 0x202   : > { %v803_v62 = vsel %vm801_vm6, %v802_v44, %v800_v53  ;;  %v883_v44 = vsub.f32 1.5, %v882_v33  ;;  %v853_v53 = vmul.f32 0.6931472, %v1376_v28  ;;  %v925_v59 = vsub.f32 1.5, %v924_v39 }
 0x203   : > { %v838_v58 = vsel %vm816_vm2, %v803_v62, 0.0  ;;  %vm908_vm2 = vweird.f32 %v1360_v54  ;;  %v868_v8 = vsel %vm867_vm12, %v1362_v29, %v864_v21  ;;  %v895_v0 = vmul.f32 0.6931472, %v1378_v41 }
 0x204   : > { %839 = vadd.xlane.f32.xlu0 %v838_v58  ;;  %vm909_vm9 = vmor %vm907_vm7, %vm908_vm2  ;;  %v889_v42 = vmul.f32 %v868_v8, %v856_v38  ;;  %v884_v35 = vmul.f32 %v1740_v2, %v883_v44  ;;  %vm886_vm1 = vweird.f32 %v1740_v2  ;;  %vm917_vm3 = vweird.f32 %v1720_v23 }
 0x205   : > { %v910_v56 = vsel %vm909_vm9, %v1360_v54, %v906_v16  ;;  %v1380_v58 = vpop.eup %1379  ;;  %v916_v54 = vmul.f32 %v1736_v5, %v915_v40  ;;  %vm928_vm4 = vweird.f32 %v1744_v9  ;;  %v857_v60 = vmul.f32 0.5, %v853_v53  ;;  %vm1777_vm5 = vmor %vm917_vm3, %vm918_vm15 }
 0x206   : > { %v931_v36 = vmul.f32 %v910_v56, %v898_v34  ;;  %v934_v3 = vmul.f32 %v889_v42, %v1526_v46  ;;  %v1382_v37 = vpop.eup %1381  ;;  %v855_v63 = vmul.f32 0.6931472, %v1380_v58  ;;  %v926_v6 = vmul.f32 %v1744_v9, %v925_v59 }
 0x207   : > { %vm885_vm6 = vweird.f32 %v1725_v27  ;;  %v897_v31 = vmul.f32 0.6931472, %v1382_v37  ;;  %v899_v12 = vmul.f32 0.5, %v895_v0  ;;  %vm927_vm7 = vweird.f32 %v1728_v15 }
 0x208   : > { %v937_v62 = vmul.f32 %v931_v36, %v1538_v50  ;;  %v878_v50 = vsel %vm1765_vm0, %v1732_v4, %v874_v43  ;;  %v920_v4 = vsel %vm1777_vm5, %v1736_v5, %v916_v54  ;;  %vm887_vm2 = vmor %vm885_vm6, %vm886_vm1  ;;  %v858_v27 = vmul.f32 0.5, %v855_v63 }
 0x209   : > { %v890_v10 = vmul.f32 %v878_v50, %v857_v60  ;;  %v888_v13 = vsel %vm887_vm2, %v1740_v2, %v884_v35  ;;  %vm929_vm8 = vmor %vm927_vm7, %vm928_vm4  ;;  %v932_v57 = vmul.f32 %v920_v4, %v899_v12  ;;  %v900_v16 = vmul.f32 0.5, %v897_v31 }
 0x20a   : > { %v940_v55 = vsub.f32 %v934_v3, %v937_v62  ;;  %v930_v5 = vsel %vm929_vm8, %v1744_v9, %v926_v6  ;;  %v891_v17 = vmul.f32 %v888_v13, %v858_v27  ;;  %v998_v24 = vshrl.u32 %v589_v51, 7 }
 0x20b   : > { %v933_v18 = vmul.f32 %v930_v5, %v900_v16  ;;  %v938_v21 = vmul.f32 %v932_v57, %v1524_v45  ;;  %v943_v33 = vmax.f32 %v1653_v26, 1e-07  ;;  %v1417_v39 = vmov 0.0  }
 0x20c   : > { %v952_v14 = vmul.f32 %v940_v55, %v940_v55  ;;  %v936_v22 = vmul.f32 %v891_v17, %v1528_v47  ;;  %v1000_v32 = vadd.s32 16, %v998_v24  ;;  %v945_v47 = vmax.f32 %v1627_v1, 1e-07 }
 0x20d   : > { %v939_v9 = vmul.f32 %v933_v18, %v1534_v48  ;;  %vm1030_vm1 = vcmask 7168   ;;  %vm1104_vm3 = vcmp.eq.s32.totalorder %v1549_v52, 2  ;;  %vm1103_vm4 = vcmp.eq.s32.totalorder %v1549_v52, 1 }
 0x20e   : > { %v955_v20 = vmax.f32 %v952_v14, 1e-07  ;;  %vm1008_vm9 = vcmp.lt.s32.totalorder %v1000_v32, 17 }
 0x20f   : > { %v942_v34 = vsub.f32 %v936_v22, %v939_v9  ;;  %v1272_v40 = vsel %vm1008_vm9, 1.0, %v1417_v39 }
 0x210   : > { %1383 = vrsqrt.f32 %v955_v20  ;;  %vm965_vm10 = vcmp.eq.f32.partialorder %v955_v20, inf  ;;  %v968_v63 = vand.u32 2147483648, %v955_v20  ;;  %vm967_vm12 = vcmp.eq.f32.partialorder %v955_v20, 0.0 }
 0x211   : > { %v954_v38 = vmul.f32 %v942_v34, %v942_v34 }
 0x213   : > { %v957_v26 = vmax.f32 %v954_v38, 1e-07 }
 0x215   : > { %vm989_vm15 = vcmp.eq.f32.partialorder %v957_v26, inf  ;;  %vm991_vm0 = vcmp.eq.f32.partialorder %v957_v26, 0.0 }
 0x216   : > { %v1384_v36 = vpop.eup %1383 }
 0x217   : > { %v959_v41 = vmul.f32 %v1384_v36, %v955_v20 }
 0x219   : > { %v960_v43 = vmul.f32 %v1384_v36, %v959_v41 }
 0x21b   : > { %v961_v44 = vmul.f32 0.5, %v960_v43 }
 0x21d   : > { %v962_v58 = vsub.f32 1.5, %v961_v44 }
 0x21f   : > { %v963_v29 = vmul.f32 %v1384_v36, %v962_v58 }
 0x221   : > { %v964_v37 = vmul.f32 %v963_v29, %v955_v20 }
 0x223   : > { %v966_v60 = vsel %vm965_vm10, %v955_v20, %v964_v37 }
 0x23b   : > { %v828_v46 = vpop.xlane.xlu2 %827 }
 0x23c   : > { %v949_v7 = vadd.f32 %v1712_v11, %v828_v46  ;;  %v935_v11 = vmul.f32 %v890_v10, %v1536_v49  ;;  %v944_v49 = vmax.f32 %v1651_v25, 1e-07  ;;  %v969_v46 = vsel %vm967_vm12, %v968_v63, %v966_v60 }
 0x23e   : > { %1051 = vrot.lane.b32.xlu1 %v949_v7, %s1416_s26  ;;  %v941_v56 = vsub.f32 %v935_v11, %v938_v21 }
 0x240   : > { %v953_v45 = vmul.f32 %v941_v56, %v941_v56 }
 0x242   : > { %v956_v48 = vmax.f32 %v953_v45, 1e-07 }
 0x243   : > { %v825_v51 = vpop.xlane.xlu2 %824 }
 0x244   : > { %v831_v19 = vpop.xlane.xlu0 %830  ;;  %v948_v25 = vadd.f32 %v945_v47, %v825_v51  ;;  %1385 = vrsqrt.f32 %v956_v48  ;;  %vm977_vm13 = vcmp.eq.f32.partialorder %v956_v48, inf  ;;  %v980_v14 = vand.u32 2147483648, %v956_v48 }
 0x245   : > { %v950_v2 = vadd.f32 %v1720_v23, %v831_v19  ;;  %1387 = vrsqrt.f32 %v957_v26  ;;  %vm979_vm14 = vcmp.eq.f32.partialorder %v956_v48, 0.0  ;;  %v992_v19 = vand.u32 2147483648, %v957_v26 }
 0x246   : > { %v822_v30 = vpop.xlane.xlu1 %821  ;;  %v1017_v42 = vmul.f32 %v1272_v40, %v948_v25 }
 0x247   : > { %1053 = vrot.lane.b32.xlu0 %v950_v2, %s1416_s26  ;;  %v947_v23 = vadd.f32 %v944_v49, %v822_v30 }
 0x24a   : > { %v1386_v1 = vpop.eup %1385 }
 0x24b   : > { %v971_v53 = vmul.f32 %v1386_v1, %v956_v48  ;;  %v1388_v62 = vpop.eup %1387 }
 0x24c   : > { %v819_v8 = vpop.xlane.xlu0 %818  ;;  %v983_v59 = vmul.f32 %v1388_v62, %v957_v26 }
 0x24d   : > { %v946_v28 = vadd.f32 %v943_v33, %v819_v8  ;;  %v972_v54 = vmul.f32 %v1386_v1, %v971_v53 }
 0x24e   : > { %v984_v3 = vmul.f32 %v1388_v62, %v983_v59  ;;  %v834_v7 = vpop.xlane.xlu1 %833 }
 0x24f   : > { %1021 = vrot.lane.b32.xlu2 %v946_v28, %s1416_s26  ;;  %1023 = vrot.lane.b32.xlu0 %v947_v23, %s1416_s26  ;;  %v973_v0 = vmul.f32 0.5, %v972_v54  ;;  %v951_v12 = vadd.f32 %v1728_v15, %v834_v7 }
 0x250   : > { %v985_v50 = vmul.f32 0.5, %v984_v3 }
 0x251   : > { %v974_v35 = vsub.f32 1.5, %v973_v0  ;;  %v1047_v57 = vmul.f32 %v1272_v40, %v951_v12 }
 0x252   : > { %v986_v55 = vsub.f32 1.5, %v985_v50 }
 0x253   : > { %v975_v61 = vmul.f32 %v1386_v1, %v974_v35 }
 0x254   : > { %v987_v31 = vmul.f32 %v1388_v62, %v986_v55 }
 0x255   : > { %v976_v10 = vmul.f32 %v975_v61, %v956_v48 }
 0x256   : > { %v988_v13 = vmul.f32 %v987_v31, %v957_v26  ;;  %v843_v18 = vpop.xlane.xlu1 %842 }
 0x257   : > { %1025 = vrot.lane.b32.xlu0 %v1017_v42, %s1416_s26  ;;  %v978_v27 = vsel %vm977_vm13, %v956_v48, %v976_v10 }
 0x258   : > { %v981_v5 = vsel %vm979_vm14, %v980_v14, %v978_v27  ;;  %v990_v11 = vsel %vm989_vm15, %v957_v26, %v988_v13 }
 0x259   : > { %v993_v20 = vsel %vm991_vm0, %v992_v19, %v990_v11 }
 0x25a   : > { %v996_v15 = vadd.f32 %v993_v20, %v843_v18 }
 0x25c   : > { %v1076_v21 = vmul.f32 %v1272_v40, %v996_v15 }
 0x26e   : > { %v837_v6 = vpop.xlane.xlu2 %836 }
 0x26f   : > { %v994_v4 = vadd.f32 %v969_v46, %v837_v6 }
 0x271   : > { %1080 = vrot.lane.b32.xlu2 %v994_v4, %s1416_s26 }
 0x277   : > { %v840_v16 = vpop.xlane.xlu0 %839 }
 0x278   : > { %v995_v17 = vadd.f32 %v981_v5, %v840_v16 }
 0x279   : > { %1055 = vrot.lane.b32.xlu2 %v1047_v57, %s1416_s26 }
 0x27a   : > { %1082 = vrot.lane.b32.xlu1 %v995_v17, %s1416_s26 }
 0x282   : > { %1084 = vrot.lane.b32.xlu1 %v1076_v21, %s1416_s26 }
 0x2a9   : > { %v1022_v24 = vpop.permute.xlu2 %1021 }
 0x2aa   : > { %v1031_v9 = vsel %vm1030_vm1, %v1022_v24, 0.0 }
 0x2b0   : > { %v1052_v45 = vpop.permute.xlu1 %1051 }
 0x2b1   : > { %v1060_v23 = vsel %vm1030_vm1, %v1052_v45, 0.0 }
 0x2b9   : > { %v1054_v2 = vpop.permute.xlu0 %1053 }
 0x2ba   : > { %v1061_v8 = vsel %vm1030_vm1, %v1054_v2, 0.0 }
 0x2bb   : > { %v1062_v28 = vadd.f32 %v1061_v8, %v1060_v23 }
 0x2c1   : > { %v1024_v22 = vpop.permute.xlu0 %1023 }
 0x2c2   : > { %v1032_v56 = vsel %vm1030_vm1, %v1024_v22, 0.0 }
 0x2c3   : > { %v1033_v49 = vadd.f32 %v1032_v56, %v1031_v9 }
 0x2c9   : > { %v1026_v30 = vpop.permute.xlu0 %1025 }
 0x2ca   : > { %v1034_v34 = vsel %vm1030_vm1, %v1026_v30, 0.0 }
 0x2cb   : > { %v1081_v32 = vpop.permute.xlu2 %1080  ;;  %v1035_v33 = vadd.f32 %v1034_v34, %v1033_v49 }
 0x2cc   : > { %v1089_v25 = vsel %vm1030_vm1, %v1081_v32, 0.0 }
 0x2cd   : > { %1036 = vadd.xlane.f32.xlu0 %v1035_v33 }
 0x2d3   : > { %v1056_v47 = vpop.permute.xlu2 %1055 }
 0x2d4   : > { %v1063_v51 = vsel %vm1030_vm1, %v1056_v47, 0.0 }
 0x2d5   : > { %v1064_v36 = vadd.f32 %v1063_v51, %v1062_v28 }
 0x2d7   : > { %1065 = vadd.xlane.f32.xlu2 %v1064_v36 }
 0x2ec   : > { %v1083_v38 = vpop.permute.xlu1 %1082 }
 0x2ed   : > { %v1090_v48 = vsel %vm1030_vm1, %v1083_v38, 0.0 }
 0x2ee   : > { %v1091_v39 = vadd.f32 %v1090_v48, %v1089_v25 }
 0x2f4   : > { %v1085_v40 = vpop.permute.xlu1 %1084 }
 0x2f5   : > { %v1092_v41 = vsel %vm1030_vm1, %v1085_v40, 0.0 }
 0x2f6   : > { %v1093_v26 = vadd.f32 %v1092_v41, %v1091_v39 }
 0x2f8   : > { %1094 = vadd.xlane.f32.xlu1 %v1093_v26 }
 0x340   : > { %v1037_v42 = vpop.xlane.xlu0 %1036 }
 0x341   : > { %v1038_v43 = vrot.slane %v1037_v42, 4 }
 0x343   : > { %v1039_v1 = vadd.f32 %v1038_v43, %v1037_v42 }
 0x345   : > { %v1040_v44 = vrot.slane %v1039_v1, 2 }
 0x347   : > { %v1041_v53 = vadd.f32 %v1040_v44, %v1039_v1 }
 0x349   : > { %v1042_v58 = vrot.slane %v1041_v53, 1 }
 0x34a   : > { %v1066_v62 = vpop.xlane.xlu2 %1065 }
 0x34b   : > { %v1067_v59 = vrot.slane %v1066_v62, 4  ;;  %v1043_v54 = vadd.f32 %v1042_v58, %v1041_v53 }
 0x34d   : > { %v1068_v29 = vadd.f32 %v1067_v59, %v1066_v62  ;;  %1293 = vpush %v1043_v54 }
 0x34f   : > { %v1069_v3 = vrot.slane %v1068_v29, 2 }
 0x351   : > { %v1070_v0 = vadd.f32 %v1069_v3, %v1068_v29 }
 0x353   : > { %v1071_v37 = vrot.slane %v1070_v0, 1 }
 0x355   : > { %v1072_v50 = vadd.f32 %v1071_v37, %v1070_v0 }
 0x357   : > { %1295 = vpush %v1072_v50 }
 0x36b   : > { %v1095_v35 = vpop.xlane.xlu1 %1094 }
 0x36c   : > { %v1096_v60 = vrot.slane %v1095_v35, 4 }
 0x36e   : > { %v1097_v63 = vadd.f32 %v1096_v60, %v1095_v35 }
 0x370   : > { %v1098_v55 = vrot.slane %v1097_v63, 2 }
 0x372   : > { %v1099_v61 = vadd.f32 %v1098_v55, %v1097_v63 }
 0x374   : > { %v1100_v46 = vrot.slane %v1099_v61, 1 }
 0x376   : > { %v1101_v6 = vadd.f32 %v1100_v46, %v1099_v61 }
 0x378   : > { %1297 = vpush %v1101_v6 }
 0x37e   : > { %s1294_s27 = spop %1293 }
 0x37f   : > { %v1109_v10 = vstv %s1294_s27 }
 0x388   : > { %s1296_s28 = spop %1295 }
 0x389   : > { %v1107_v7 = vstv %s1296_s28 }
 0x3a9   : > { %s1298_s30 = spop %1297 }
 0x3aa   : > { %v1105_v4 = vstv %s1298_s30 }
 0x3ab   : > { %v1106_v31 = vsel %vm1104_vm3, %v1105_v4, 0.0 }
 0x3ac   : > { %v1108_v12 = vsel %vm1103_vm4, %v1107_v7, %v1106_v31 }
 0x3ad   : > { %v1110_v13 = vsel %vm591_vm11, %v1109_v10, %v1108_v12 }
 0x3ae   : > { %1111 = vst [vmem:[%s384_s8] sm:$0xff] %v1110_v13 }
 0x3af PF: > { %s15_s20 = sadd.s32 1, %s1411_s20   ;;  %s1849_s18 = smov %s1407_s19 }
 0x3b0   : > { %p12_p5 = scmp.ge.s32.totalorder %s15_s20, 4   ;;  %s1850_s19 = smov %s1852_s21 }
 0x3b2   :  { %14 = sbr.rel (!%p12_p5) target bundleno = 2 (0x2), region = 79 }

// kernel: _lambda_.5
= control target key start
LH: loop header
LB: loop body
LE: loop exit
PB: predicated region body
PF: predicated region fallthrough
CT: control target
= control target key end

     0   :  { %s1864_s18 = smov 0   ;;  %s1866_s19 = smov 0   ;;  %s2725_s0 = inlined_call_operand.vmem [shape: f32[2,80,8], index: 0, kind: input, shape index: {}, may-alias: {0,1}]   ;;  %s2726_s1 = inlined_call_operand.vmem [shape: f32[2,80,8], index: 1, kind: input, shape index: {}, may-alias: {0,1}]   ;;  %s2727_s2 = inlined_call_operand.vmem [shape: f32[2,80,8], index: 2, kind: input, shape index: {}, may-alias: {2,3}]   ;;  %s2728_s3 = inlined_call_operand.vmem [shape: f32[2,80,8], index: 3, kind: input, shape index: {}, may-alias: {2,3}]   ;;  %s2729_s4 = inlined_call_operand.vmem [shape: bf16[32,32], index: 4, kind: input, shape index: {}]   ;;  %s2730_s5 = inlined_call_operand.vmem [shape: f32[2,1,8,128], index: 5, kind: output, shape index: {}]  }
   0x1   :  { %s1868_s20 = smov 0  }
   0x2 LB: > { %s27_s21 = sadd.s32 1, %s1823_s19  ;;  %p1633_p0 = scmp.ge.s32.totalorder %s1827_s20, 1  ;;  %s1827_s20 = sphi %s1868_s20, %s15_s20   ;;  %s1823_s19 = sphi %s1866_s19, %s2771_s19   ;;  %s1819_s18 = sphi %s1864_s18, %s2770_s18  }
   0x3   : > { %p29_p1 = scmp.ge.s32.totalorder %s27_s21, 2  ;;  %p271_p2 = scmp.lt.s32.totalorder %s1827_s20, 3 }
   0x5   : > { %s2773_s21 = smov (%p29_p1, %s27_s21), 0  ;;  %p272_p3 = pnand %p1633_p0, %p271_p2 }
   0x7   : > { %275 = sbr.rel (%p272_p3) target bundleno = 1008 (0x3f0), region = 40 }
   0xc   : > { %p335_p4 = scmp.lt.s32.totalorder %s1819_s18, 1  ;;  %s1829_s30 = smov 8   ;;  %vm398_vm0 = vcmask 64512   ;;  %vm433_vm1 = vcmask 130113   ;;  %vm435_vm2 = vcmask 130112   ;;  %v1660_v18 = vld [vmem:[%s2729_s4 + $0x8] sm:$0xff] }
   0xd   : > { %s1830_s9 = smov 16   ;;  %s1831_s10 = smov 24   ;;  %1662 = vmatpush.bf16.msra.mxu2 %v1660_v18  ;;  %v1659_v19 = vld [vmem:[%s2729_s4] sm:$0xff]  ;;  %1663 = vmatpush.bf16.msra.mxu3 %v1660_v18  ;;  %vm440_vm3 = vcmask 122944   ;;  %vm497_vm4 = vcmask 189568   ;;  %vm492_vm5 = vcmask 195712  }
   0xe   : > { %s2775_s18 = smov (!%p335_p4, %s1819_s18), 1  ;;  %627 = vmatpush.bf16.msra.mxu0 %v1660_v18  ;;  %1661 = vmatpush.bf16.msra.mxu1 %v1660_v18  ;;  %vm543_vm6 = vcmask 261312   ;;  %vm490_vm7 = vcmask 195714   ;;  %vm541_vm8 = vcmask 261315   ;;  %vm548_vm9 = vcmask 256192  }
   0xf   : > { %s1885_s22 = smul.u32 80, %s2775_s18  ;;  %vm605_vm10 = vcmask 261120   ;;  %vm1030_vm12 = vcmask 130048  }
  0x11   : > { %s1891_s25 = scalar_lea.vmem %s2725_s0, %s1885_s22  ;;  %s1656_s26 = sadd.s32 40, %s1885_s22  ;;  %1665 = vmatpush.bf16.msra.mxu2 %v1659_v19  ;;  %1666 = vmatpush.bf16.msra.mxu3 %v1659_v19 }
  0x12   : > { %v390_v0 = vld [vmem:[%s1891_s25 + $0x20] sm:$0xff]  ;;  %v388_v1 = vld [vmem:[%s1891_s25 + $0x10] sm:$0xff]  ;;  %s1900_s29 = scalar_lea.vmem %s2727_s2, %s1885_s22  ;;  %s353_s8 = scalar_lea.vmem %s2726_s1, %s1656_s26  ;;  %v389_v4 = vld [vmem:[%s1891_s25 + $0x18] sm:$0xff]  ;;  %628 = vmatpush.bf16.msra.mxu0 %v1659_v19  ;;  %1664 = vmatpush.bf16.msra.mxu1 %v1659_v19 }
  0x13   : > { %423 = vrot.lane.b32.xlu1 %v390_v0, %s1829_s30  ;;  %419 = vrot.lane.b32.xlu0 %v388_v1, %s1829_s30  ;;  %v392_v2 = vld [vmem:[%s1900_s29] sm:$0xff]  ;;  %v393_v5 = vld [vmem:[%s1900_s29 + $0x8] sm:$0xff]  ;;  %s375_s13 = scalar_lea.vmem %s2728_s3, %s1656_s26  ;;  %401 = vst.msk [vmem:[#allocation2 + $0x10] sm:$0xff] %vm398_vm0, %v388_v1  ;;  %s1832_s22 = smov 112  }
  0x14   : > { %448 = vrot.lane.b32.xlu2 %v392_v2, %s1829_s30  ;;  %v391_v3 = vld [vmem:[%s353_s8] sm:$0xff]  ;;  %v395_v6 = vld [vmem:[%s1900_s29 + $0x18] sm:$0xff]  ;;  %v394_v7 = vld [vmem:[%s1900_s29 + $0x10] sm:$0xff]  ;;  %404 = vst.msk [vmem:[#allocation2 + $0x28] sm:$0xff] %vm398_vm0, %v392_v2 }
  0x15   : > { %v396_v8 = vld [vmem:[%s1900_s29 + $0x20] sm:$0xff]  ;;  %v387_v11 = vld [vmem:[%s1891_s25 + $0x8] sm:$0xff]  ;;  %402 = vst.msk [vmem:[#allocation2 + $0x18] sm:$0xff] %vm398_vm0, %v389_v4 }
  0x16   : > { %v397_v9 = vld [vmem:[%s375_s13] sm:$0xff]  ;;  %400 = vst.msk [vmem:[#allocation2 + $0x8] sm:$0xff] %vm398_vm0, %v387_v11 }
  0x17   : > { %v386_v10 = vld [vmem:[%s1891_s25] sm:$0xff]  ;;  %403 = vst.msk [vmem:[#allocation2 + $0x20] sm:$0xff] %vm398_vm0, %v390_v0  ;;  %s1638_s25 = sshll.u32 %s2775_s18, 3 }
  0x18   : > { %399 = vst.msk [vmem:[#allocation2] sm:$0xff] %vm398_vm0, %v386_v10  ;;  %s384_s29 = scalar_lea.vmem %s2730_s5, %s1638_s25 }
  0x19   : > { %405 = vst.msk [vmem:[#allocation2 + $0x30] sm:$0xff] %vm398_vm0, %v393_v5 }
  0x1a   : > { %406 = vst.msk [vmem:[#allocation2 + $0x38] sm:$0xff] %vm398_vm0, %v394_v7 }
  0x1b   : > { %425 = vrot.lane.b32.xlu1 %v391_v3, %s1829_s30  ;;  %421 = vrot.lane.b32.xlu0 %v389_v4, %s1829_s30  ;;  %407 = vst.msk [vmem:[#allocation2 + $0x40] sm:$0xff] %vm398_vm0, %v395_v6 }
  0x1c   : > { %450 = vrot.lane.b32.xlu2 %v393_v5, %s1829_s30  ;;  %408 = vst.msk [vmem:[#allocation2 + $0x48] sm:$0xff] %vm398_vm0, %v396_v8 }
  0x23   : > { %480 = vrot.lane.b32.xlu1 %v390_v0, %s1830_s9  ;;  %478 = vrot.lane.b32.xlu0 %v389_v4, %s1830_s9 }
  0x24   : > { %482 = vrot.lane.b32.xlu2 %v391_v3, %s1830_s9 }
  0x2b   : > { %501 = vrot.lane.b32.xlu1 %v393_v5, %s1830_s9  ;;  %499 = vrot.lane.b32.xlu0 %v392_v2, %s1830_s9 }
  0x2c   : > { %531 = vrot.lane.b32.xlu2 %v390_v0, %s1831_s10 }
  0x33   : > { %550 = vrot.lane.b32.xlu1 %v392_v2, %s1831_s10  ;;  %533 = vrot.lane.b32.xlu0 %v391_v3, %s1831_s10 }
  0x34   : > { %552 = vrot.lane.b32.xlu2 %v393_v5, %s1831_s10 }
  0x3b   : > { %454 = vrot.lane.b32.xlu1 %v395_v6, %s1829_s30  ;;  %452 = vrot.lane.b32.xlu0 %v394_v7, %s1829_s30 }
  0x3c   : > { %503 = vrot.lane.b32.xlu2 %v394_v7, %s1830_s9 }
  0x43   : > { %456 = vrot.lane.b32.xlu1 %v396_v8, %s1829_s30  ;;  %505 = vrot.lane.b32.xlu0 %v395_v6, %s1830_s9 }
  0x44   : > { %458 = vrot.lane.b32.xlu2 %v397_v9, %s1829_s30 }
  0x4b   : > { %556 = vrot.lane.b32.xlu1 %v395_v6, %s1831_s10  ;;  %554 = vrot.lane.b32.xlu0 %v394_v7, %s1831_s10 }
  0x4c   : > { %507 = vrot.lane.b32.xlu2 %v396_v8, %s1830_s9 }
  0x53   : > { %509 = vrot.lane.b32.xlu0 %v397_v9, %s1830_s9  ;;  %415 = vrot.lane.b32.xlu1 %v386_v10, %s1829_s30 }
  0x54   : > { %417 = vrot.lane.b32.xlu2 %v387_v11, %s1829_s30 }
  0x5b   : > { %558 = vrot.lane.b32.xlu0 %v396_v8, %s1831_s10  ;;  %560 = vrot.lane.b32.xlu1 %v397_v9, %s1831_s10 }
  0x5c   : > { %472 = vrot.lane.b32.xlu2 %v386_v10, %s1830_s9 }
  0x63   : > { %474 = vrot.lane.b32.xlu0 %v387_v11, %s1830_s9  ;;  %476 = vrot.lane.b32.xlu1 %v388_v1, %s1830_s9 }
  0x64   : > { %523 = vrot.lane.b32.xlu2 %v386_v10, %s1831_s10 }
  0x6b   : > { %525 = vrot.lane.b32.xlu0 %v387_v11, %s1831_s10  ;;  %527 = vrot.lane.b32.xlu1 %v388_v1, %s1831_s10 }
  0x6c   : > { %529 = vrot.lane.b32.xlu2 %v389_v4, %s1831_s10 }
  0x6e   : > { %v449_v12 = vpop.permute.xlu2 %448 }
  0x6f   : > { %466 = vst.msk [vmem:[#allocation2 + $0x27] sm:$0xfe] %vm433_vm1, %v449_v12  ;;  %v2731_v12 = vlaneseq }
  0x76   : > { %v451_v13 = vpop.permute.xlu2 %450 }
  0x77   : > { %467 = vst.msk [vmem:[#allocation2 + $0x2f] sm:$0xff] %vm435_vm2, %v451_v13 }
  0x7e   : > { %v483_v14 = vpop.permute.xlu2 %482 }
  0x85   : > { %v424_v15 = vpop.permute.xlu1 %423  ;;  %v420_v16 = vpop.permute.xlu0 %419 }
  0x86   : > { %439 = vst.msk [vmem:[#allocation2 + $0x1f] sm:$0xff] %vm435_vm2, %v424_v15  ;;  %v532_v17 = vpop.permute.xlu2 %531 }
  0x87   : > { %437 = vst.msk [vmem:[#allocation2 + $0xf] sm:$0xff] %vm435_vm2, %v420_v16 }
  0x8d   : > { %v426_v20 = vpop.permute.xlu1 %425  ;;  %v422_v21 = vpop.permute.xlu0 %421 }
  0x8e   : > { %441 = vst.msk [vmem:[#allocation2 + $0x27] sm:$0x1] %vm440_vm3, %v426_v20  ;;  %v553_v22 = vpop.permute.xlu2 %552 }
  0x8f   : > { %438 = vst.msk [vmem:[#allocation2 + $0x17] sm:$0xff] %vm435_vm2, %v422_v21 }
  0x90   : > { %498 = vst.msk [vmem:[#allocation2 + $0x26] sm:$0x3] %vm497_vm4, %v483_v14  ;;  %v2044_v14 = vand.u32 127, %v2731_v12 }
  0x92   : > { %vm657_vm11 = vcmp.eq.s32.totalorder %v2044_v14, 0 }
  0x95   : > { %v481_v23 = vpop.permute.xlu1 %480  ;;  %v479_v24 = vpop.permute.xlu0 %478 }
  0x96   : > { %496 = vst.msk [vmem:[#allocation2 + $0x1e] sm:$0xff] %vm492_vm5, %v481_v23  ;;  %v504_v25 = vpop.permute.xlu2 %503 }
  0x97   : > { %495 = vst.msk [vmem:[#allocation2 + $0x16] sm:$0xff] %vm492_vm5, %v479_v24 }
  0x98   : > { %547 = vst.msk [vmem:[#allocation2 + $0x1d] sm:$0xff] %vm543_vm6, %v532_v17 }
  0x9d   : > { %v502_v26 = vpop.permute.xlu1 %501  ;;  %v500_v27 = vpop.permute.xlu0 %499 }
  0x9e   : > { %518 = vst.msk [vmem:[#allocation2 + $0x2e] sm:$0xff] %vm492_vm5, %v502_v26  ;;  %v459_v28 = vpop.permute.xlu2 %458 }
  0x9f   : > { %517 = vst.msk [vmem:[#allocation2 + $0x26] sm:$0xfc] %vm490_vm7, %v500_v27 }
  0xa0   : > { %569 = vst.msk [vmem:[#allocation2 + $0x2d] sm:$0xff] %vm543_vm6, %v553_v22 }
  0xa1   : > { %471 = vst.msk [vmem:[#allocation2 + $0x4f] sm:$0x1] %vm440_vm3, %v459_v28 }
  0xa5   : > { %v551_v29 = vpop.permute.xlu1 %550  ;;  %v534_v30 = vpop.permute.xlu0 %533 }
  0xa6   : > { %568 = vst.msk [vmem:[#allocation2 + $0x25] sm:$0xf8] %vm541_vm8, %v551_v29  ;;  %v508_v31 = vpop.permute.xlu2 %507 }
  0xa7   : > { %549 = vst.msk [vmem:[#allocation2 + $0x25] sm:$0x7] %vm548_vm9, %v534_v30 }
  0xad   : > { %v455_v32 = vpop.permute.xlu1 %454  ;;  %v453_v33 = vpop.permute.xlu0 %452  ;;  %v579_v34 = vld [vmem:[#allocation2 + $0x28] sm:$0xff] }
  0xae   : > { %469 = vst.msk [vmem:[#allocation2 + $0x3f] sm:$0xff] %vm435_vm2, %v455_v32  ;;  %v578_v35 = vld [vmem:[#allocation2 + $0x20] sm:$0xff]  ;;  %v418_v37 = vpop.permute.xlu2 %417 }
  0xaf   : > { %468 = vst.msk [vmem:[#allocation2 + $0x37] sm:$0xff] %vm435_vm2, %v453_v33  ;;  %v586_v36 = vpack.c.bf16 %v579_v34, %v578_v35 }
  0xb0   : > { %519 = vst.msk [vmem:[#allocation2 + $0x36] sm:$0xff] %vm492_vm5, %v504_v25 }
  0xb1   : > { %1649 = vmatmul.msk.bf16.vlgmr.msra.gmra.mxu2 %vm605_vm10, %v586_v36  ;;  %436 = vst.msk [vmem:[#allocation2 + $0x7] sm:$0xff] %vm435_vm2, %v418_v37 }
  0xb5   : > { %v457_v38 = vpop.permute.xlu1 %456  ;;  %v506_v39 = vpop.permute.xlu0 %505 }
  0xb6   : > { %470 = vst.msk [vmem:[#allocation2 + $0x47] sm:$0xff] %vm435_vm2, %v457_v38  ;;  %v473_v42 = vpop.permute.xlu2 %472 }
  0xb7   : > { %520 = vst.msk [vmem:[#allocation2 + $0x3e] sm:$0xff] %vm492_vm5, %v506_v39 }
  0xb8   : > { %521 = vst.msk [vmem:[#allocation2 + $0x46] sm:$0xff] %vm492_vm5, %v508_v31 }
  0xbd   : > { %v557_v40 = vpop.permute.xlu1 %556  ;;  %v555_v41 = vpop.permute.xlu0 %554 }
  0xbe   : > { %571 = vst.msk [vmem:[#allocation2 + $0x3d] sm:$0xff] %vm543_vm6, %v557_v40  ;;  %v524_v48 = vpop.permute.xlu2 %523 }
  0xbf   : > { %570 = vst.msk [vmem:[#allocation2 + $0x35] sm:$0xff] %vm543_vm6, %v555_v41 }
  0xc5   : > { %v510_v43 = vpop.permute.xlu0 %509  ;;  %v416_v44 = vpop.permute.xlu1 %415 }
  0xc6   : > { %522 = vst.msk [vmem:[#allocation2 + $0x4e] sm:$0x3] %vm497_vm4, %v510_v43  ;;  %v580_v45 = vld [vmem:[#allocation2 + $0x30] sm:$0xff]  ;;  %v581_v46 = vld [vmem:[#allocation2 + $0x38] sm:$0xff]  ;;  %v530_v51 = vpop.permute.xlu2 %529 }
  0xc7   : > { %434 = vst.msk [vmem:[#allocation2 - $0x1] sm:$0xfe] %vm433_vm1, %v416_v44  ;;  %v587_v47 = vpack.c.bf16 %v581_v46, %v580_v45 }
  0xc8   : > { %491 = vst.msk [vmem:[#allocation2 - $0x2] sm:$0xfc] %vm490_vm7, %v473_v42 }
  0xc9   : > { %1650 = vmatmul.msk.bf16.gmra.mxu2 %vm605_vm10, %v587_v47  ;;  %542 = vst.msk [vmem:[#allocation2 - $0x3] sm:$0xf8] %vm541_vm8, %v524_v48 }
  0xcd   : > { %v559_v49 = vpop.permute.xlu0 %558  ;;  %v561_v50 = vpop.permute.xlu1 %560 }
  0xce   : > { %572 = vst.msk [vmem:[#allocation2 + $0x45] sm:$0xff] %vm543_vm6, %v559_v49 }
  0xcf   : > { %573 = vst.msk [vmem:[#allocation2 + $0x4d] sm:$0x7] %vm548_vm9, %v561_v50 }
  0xd5   : > { %v475_v52 = vpop.permute.xlu0 %474  ;;  %v477_v53 = vpop.permute.xlu1 %476  ;;  %v582_v54 = vld [vmem:[#allocation2 + $0x40] sm:$0xff] }
  0xd6   : > { %493 = vst.msk [vmem:[#allocation2 + $0x6] sm:$0xff] %vm492_vm5, %v475_v52  ;;  %v583_v55 = vld [vmem:[#allocation2 + $0x48] sm:$0xff] }
  0xd7   : > { %494 = vst.msk [vmem:[#allocation2 + $0xe] sm:$0xff] %vm492_vm5, %v477_v53  ;;  %v588_v56 = vpack.c.bf16 %v583_v55, %v582_v54 }
  0xd8   : > { %546 = vst.msk [vmem:[#allocation2 + $0x15] sm:$0xff] %vm543_vm6, %v530_v51 }
  0xd9   : > { %1651 = vmatmul.msk.bf16.vlgmr.msra.gmra.mxu3 %vm605_vm10, %v588_v56 }
  0xdd   : > { %v526_v57 = vpop.permute.xlu0 %525  ;;  %v528_v58 = vpop.permute.xlu1 %527 }
  0xde   : > { %544 = vst.msk [vmem:[#allocation2 + $0x5] sm:$0xff] %vm543_vm6, %v526_v57 }
  0xdf   : > { %545 = vst.msk [vmem:[#allocation2 + $0xd] sm:$0xff] %vm543_vm6, %v528_v58  ;;  %v577_v62 = vld [vmem:[#allocation2 + $0x18] sm:$0xff] }
  0xe5   : > { %v574_v59 = vld [vmem:[#allocation2] sm:$0xff] }
  0xe6   : > { %v575_v60 = vld [vmem:[#allocation2 + $0x8] sm:$0xff]  ;;  %v576_v61 = vld [vmem:[#allocation2 + $0x10] sm:$0xff] }
  0xe7   : > { %v584_v63 = vpack.c.bf16 %v575_v60, %v574_v59  ;;  %v585_v0 = vpack.c.bf16 %v577_v62, %v576_v61 }
  0xe9   : > { %1647 = vmatmul.msk.bf16.vlgmr.msra.gmra.mxu0 %vm605_vm10, %v584_v63  ;;  %1648 = vmatmul.msk.bf16.vlgmr.msra.gmra.mxu1 %vm605_vm10, %v585_v0 }
 0x134   : > { %v2003_v1 = vpop.f32.mrf.mxu2 }
 0x135   : > { %v2120_v46 = vmul.f32 %v2003_v1, %v2003_v1 }
 0x13c   : > { %v2005_v2 = vpop.f32.mrf.mxu2 }
 0x13d   : > { %2737 = vst [vmem:[#allocation3_spill] sm:$0xff] %v2005_v2  ;;  %690 = vrot.lane.b32.xlu2 %v2005_v2, %s1832_s22  ;;  %v2068_v23 = vmul.f32 %v2005_v2, %v2005_v2 }
 0x14c   : > { %v2009_v3 = vpop.f32.mrf.mxu2 }
 0x14d   : > { %v2116_v45 = vmul.f32 %v2009_v3, %v2009_v3 }
 0x154   : > { %v2011_v4 = vpop.f32.mrf.mxu2 }
 0x155   : > { %694 = vrot.lane.b32.xlu2 %v2011_v4, %s1832_s22  ;;  %v2081_v28 = vmul.f32 %v2011_v4, %v2011_v4 }
 0x157   : > { %2739 = vst [vmem:[#allocation5_spill] sm:$0xff] %v2081_v28 }
 0x15c   : > { %v2015_v5 = vpop.f32.mrf.mxu3 }
 0x15d   : > { %2738 = vst [vmem:[#allocation4_spill] sm:$0xff] %v2015_v5  ;;  %696 = vrot.lane.b32.xlu2 %v2015_v5, %s1832_s22  ;;  %v2053_v17 = vmul.f32 %v2015_v5, %v2015_v5 }
 0x164   : > { %v2039_v10 = vpop.f32.mrf.mxu3 }
 0x165   : > { %v714_v40 = vsub.f32 %v2003_v1, %v2039_v10  ;;  %v2143_v55 = vmul.f32 %v2039_v10, %v2039_v10 }
 0x166   : > { %v2019_v6 = vpop.f32.mrf.mxu0  ;;  %v2021_v7 = vpop.f32.mrf.mxu1 }
 0x167   : > { %669 = vrot.lane.b32.xlu1 %v2021_v7, %s1832_s22  ;;  %665 = vrot.lane.b32.xlu0 %v2019_v6, %s1832_s22  ;;  %v2110_v42 = vmul.f32 %v2021_v7, %v2021_v7  ;;  %v710_v44 = vsub.f32 %v2019_v6, %v2005_v2  ;;  %v2132_v50 = vmul.f32 %v2019_v6, %v2019_v6 }
 0x168   : > { %v2146_v57 = vmul.f32 %v714_v40, %v714_v40 }
 0x169   : > { %2740 = vst [vmem:[#allocation6_spill] sm:$0xff] %v2110_v42  ;;  %v2150_v61 = vmul.f32 %v710_v44, %v710_v44 }
 0x16e   : > { %v2027_v8 = vpop.f32.mrf.mxu0  ;;  %v2029_v9 = vpop.f32.mrf.mxu1 }
 0x16f   : > { %671 = vrot.lane.b32.xlu0 %v2029_v9, %s1832_s22  ;;  %667 = vrot.lane.b32.xlu1 %v2027_v8, %s1832_s22  ;;  %v2154_v63 = vmul.f32 %v2027_v8, %v2027_v8  ;;  %v2158_v0 = vmul.f32 %v2029_v9, %v2029_v9 }
 0x177   : > { %692 = vrot.lane.b32.xlu0 %v2009_v3, %s1832_s22  ;;  %673 = vrot.lane.b32.xlu1 %v2003_v1, %s1832_s22 }
 0x17f   : > { %698 = vrot.lane.b32.xlu0 %v2039_v10, %s1832_s22 }
 0x197   : > { %v691_v11 = vpop.permute.xlu2 %690 }
 0x198   : > { %v2059_v19 = vsel %vm657_vm11, 0.0, %v691_v11 }
 0x199   : > { %v745_v21 = vmul.f32 %v2059_v19, %v2059_v19 }
 0x19b   : > { %v750_v26 = vadd.f32 %v745_v21, %v2068_v23  ;;  %v713_v21 = vsub.f32 %v2029_v9, %v2015_v5 }
 0x19d   : > { %v2083_v29 = vmax.f32 %v750_v26, 1e-07 }
 0x19f   : > { %1705 = vrsqrt.f32 %v2083_v29  ;;  %vm871_vm13 = vweird.f32 %v2083_v29 }
 0x1a5   : > { %v2091_v32 = vpop.eup %1705 }
 0x1a6   : > { %v866_v34 = vmul.f32 %v2091_v32, %v2083_v29  ;;  %vm872_vm14 = vweird.f32 %v2091_v32 }
 0x1a7   : > { %vm2198_vm0 = vmor %vm871_vm13, %vm872_vm14 }
 0x1a8   : > { %v867_v37 = vmul.f32 %v2091_v32, %v866_v34 }
 0x1aa   : > { %v868_v47 = vmul.f32 0.5, %v867_v37 }
 0x1ac   : > { %v869_v11 = vsub.f32 1.5, %v868_v47 }
 0x1af   : > { %v695_v13 = vpop.permute.xlu2 %694 }
 0x1b0   : > { %v2072_v24 = vsel %vm657_vm11, 0.0, %v695_v13  ;;  %v712_v13 = vsub.f32 %v2021_v7, %v2011_v4 }
 0x1b1   : > { %v747_v27 = vmul.f32 %v2072_v24, %v2072_v24 }
 0x1b3   : > { %v752_v30 = vadd.f32 %v747_v27, %v2081_v28  ;;  %v711_v27 = vsub.f32 %v2027_v8, %v2009_v3 }
 0x1b5   : > { %v2087_v31 = vmax.f32 %v752_v30, 1e-07 }
 0x1b7   : > { %v697_v15 = vpop.permute.xlu2 %696  ;;  %vm891_vm4 = vweird.f32 %v2087_v31 }
 0x1b8   : > { %v2049_v16 = vsel %vm657_vm11, 0.0, %v697_v15 }
 0x1b9   : > { %v748_v18 = vmul.f32 %v2049_v16, %v2049_v16 }
 0x1bb   : > { %v753_v20 = vadd.f32 %v748_v18, %v2053_v17 }
 0x1bd   : > { %v2064_v22 = vmax.f32 %v753_v20, 1e-07 }
 0x1bf   : > { %v1055_v25 = vsel %vm1030_vm12, %v2064_v22, 0.0  ;;  %1707 = vrsqrt.f32 %v2064_v22  ;;  %vm901_vm1 = vweird.f32 %v2064_v22 }
 0x1c0   : > { %1056 = vadd.xlane.f32.xlu2 %v1055_v25  ;;  %1709 = vrsqrt.f32 %v2087_v31 }
 0x1c1   : > { %1711 = vlog2.f32 %v2083_v29 }
 0x1c2   : > { %1713 = vlog2.f32 %v2064_v22 }
 0x1c3   : > { %1715 = vlog2.f32 %v2087_v31 }
 0x1c5   : > { %v2093_v33 = vpop.eup %1707 }
 0x1c6   : > { %v2097_v35 = vpop.eup %1709  ;;  %v896_v36 = vmul.f32 %v2093_v33, %v2064_v22  ;;  %vm902_vm15 = vweird.f32 %v2093_v33 }
 0x1c7   : > { %v886_v38 = vmul.f32 %v2097_v35, %v2087_v31  ;;  %v1712_v62 = vpop.eup %1711  ;;  %vm892_vm2 = vweird.f32 %v2097_v35  ;;  %vm2216_vm3 = vmor %vm901_vm1, %vm902_vm15 }
 0x1c8   : > { %v897_v39 = vmul.f32 %v2093_v33, %v896_v36  ;;  %v851_v30 = vmul.f32 0.6931472, %v1712_v62  ;;  %vm2239_vm5 = vmor %vm891_vm4, %vm892_vm2 }
 0x1c9   : > { %v887_v51 = vmul.f32 %v2097_v35, %v886_v38  ;;  %v1714_v38 = vpop.eup %1713 }
 0x1ca   : > { %v898_v56 = vmul.f32 0.5, %v897_v39  ;;  %v870_v39 = vmul.f32 %v2091_v32, %v869_v11  ;;  %v1716_v62 = vpop.eup %1715  ;;  %v860_v22 = vmul.f32 0.5, %v851_v30 }
 0x1cb   : > { %v888_v15 = vmul.f32 0.5, %v887_v51 }
 0x1cc   : > { %v899_v25 = vsub.f32 1.5, %v898_v56  ;;  %v857_v56 = vmul.f32 0.6931472, %v1714_v38  ;;  %v874_v11 = vsel %vm2198_vm0, %v2091_v32, %v870_v39  ;;  %v855_v38 = vmul.f32 0.6931472, %v1716_v62 }
 0x1cd   : > { %v915_v30 = vmul.f32 %v874_v11, %v860_v22 }
 0x1ce   : > { %v863_v39 = vmul.f32 0.5, %v857_v56 }
 0x1d9   : > { %v670_v41 = vpop.permute.xlu1 %669  ;;  %v666_v43 = vpop.permute.xlu0 %665 }
 0x1da   : > { %v2124_v48 = vsel %vm657_vm11, 0.0, %v670_v41  ;;  %v2128_v49 = vsel %vm657_vm11, 0.0, %v666_v43  ;;  %v889_v43 = vsub.f32 1.5, %v888_v15 }
 0x1db   : > { %v767_v52 = vmul.f32 %v2124_v48, %v2124_v48  ;;  %v715_v53 = vsub.f32 %v2128_v49, %v2059_v19  ;;  %v765_v54 = vmul.f32 %v2128_v49, %v2128_v49  ;;  %v717_v56 = vsub.f32 %v2124_v48, %v2072_v24 }
 0x1dd   : > { %v772_v58 = vadd.f32 %v767_v52, %v2110_v42  ;;  %v725_v59 = vmul.f32 %v715_v53, %v715_v53  ;;  %v770_v60 = vadd.f32 %v765_v54, %v2132_v50  ;;  %v900_v52 = vmul.f32 %v2093_v33, %v899_v25 }
 0x1de   : > { %v890_v25 = vmul.f32 %v2097_v35, %v889_v43  ;;  %v727_v12 = vmul.f32 %v717_v56, %v717_v56 }
 0x1df   : > { %v2162_v18 = vmax.f32 %v772_v58, 1e-07  ;;  %v730_v20 = vadd.f32 %v725_v59, %v2150_v61  ;;  %v2168_v26 = vmax.f32 %v770_v60, 1e-07  ;;  %v2204_v60 = vmul.f32 %v712_v13, %v712_v13 }
 0x1e1   : > { %v672_v34 = vpop.permute.xlu0 %671  ;;  %v668_v36 = vpop.permute.xlu1 %667  ;;  %v735_v37 = vmax.f32 %v730_v20, 1e-07  ;;  %1717 = vrsqrt.f32 %v2162_v18  ;;  %v2210_v20 = vmul.f32 %v713_v21, %v713_v21  ;;  %v904_v21 = vsel %vm2216_vm3, %v2093_v33, %v900_v52 }
 0x1e2   : > { %v2178_v40 = vsel %vm657_vm11, 0.0, %v672_v34  ;;  %v2182_v41 = vsel %vm657_vm11, 0.0, %v668_v36  ;;  %1719 = vrsqrt.f32 %v2168_v26  ;;  %v940_v34 = vmul.f32 %v915_v30, %v2059_v19 }
 0x1e3   : > { %v718_v44 = vsub.f32 %v2178_v40, %v2049_v16  ;;  %v768_v47 = vmul.f32 %v2178_v40, %v2178_v40  ;;  %v766_v51 = vmul.f32 %v2182_v41, %v2182_v41  ;;  %v1031_v53 = vsel %vm1030_vm12, %v735_v37, 0.0  ;;  %2743 = vst [vmem:[#allocation7_spill] sm:$0xff] %v2210_v20 }
 0x1e4   : > { %1032 = vadd.xlane.f32.xlu1 %v1031_v53  ;;  %1721 = vlog2.f32 %v2168_v26  ;;  %v2230_v37 = vmul.f32 %v711_v27, %v711_v27  ;;  %v918_v53 = vmul.f32 %v904_v21, %v863_v39  ;;  %vm801_vm7 = vweird.f32 %v2168_v26 }
 0x1e5   : > { %v773_v58 = vadd.f32 %v768_v47, %v2158_v0  ;;  %v771_v59 = vadd.f32 %v766_v51, %v2154_v63  ;;  %v728_v15 = vmul.f32 %v718_v44, %v718_v44  ;;  %v2235_v47 = vsel %vm1030_vm12, %v2083_v29, 0.0 }
 0x1e6   : > { %v894_v29 = vsel %vm2239_vm5, %v2097_v35, %v890_v25  ;;  %v862_v35 = vmul.f32 0.5, %v855_v38  ;;  %v925_v25 = vmul.f32 %v915_v30, %v2005_v2  ;;  %v2279_v30 = vmul.f32 %v918_v53, %v2049_v16 }
 0x1e7   : > { %v2221_v13 = vmax.f32 %v773_v58, 1e-07  ;;  %v2223_v32 = vpop.eup %1717  ;;  %v2228_v36 = vmax.f32 %v771_v59, 1e-07  ;;  %v733_v52 = vadd.f32 %v728_v15, %v2210_v20  ;;  %vm821_vm8 = vweird.f32 %v2162_v18 }
 0x1e8   : > { %v1720_v51 = vpop.eup %1719  ;;  %v816_v27 = vmul.f32 %v2223_v32, %v2162_v18  ;;  %v2269_v39 = vmul.f32 %v894_v29, %v862_v35  ;;  %vm822_vm10 = vweird.f32 %v2223_v32 }
 0x1e9   : > { %v693_v43 = vpop.permute.xlu0 %692  ;;  %v674_v44 = vpop.permute.xlu1 %673  ;;  %1723 = vrsqrt.f32 %v2221_v13  ;;  %v796_v54 = vmul.f32 %v1720_v51, %v2168_v26  ;;  %v738_v21 = vmax.f32 %v733_v52, 1e-07  ;;  %vm802_vm6 = vweird.f32 %v1720_v51  ;;  %vm2323_vm0 = vmor %vm821_vm8, %vm822_vm10 }
 0x1ea   : > { %1725 = vlog2.f32 %v2162_v18  ;;  %v2257_v58 = vsel %vm657_vm11, 0.0, %v693_v43  ;;  %v2261_v59 = vsel %vm657_vm11, 0.0, %v674_v44  ;;  %v1722_v62 = vpop.eup %1721  ;;  %v817_v22 = vmul.f32 %v2223_v32, %v816_v27  ;;  %vm803_vm9 = vmor %vm801_vm7, %vm802_vm6 }
 0x1eb   : > { %1727 = vrsqrt.f32 %v2228_v36  ;;  %v797_v11 = vmul.f32 %v1720_v51, %v796_v54  ;;  %v746_v15 = vmul.f32 %v2257_v58, %v2257_v58  ;;  %v769_v38 = vmul.f32 %v2261_v59, %v2261_v59 }
 0x1ec   : > { %1729 = vlog2.f32 %v2221_v13  ;;  %v2275_v54 = vmul.f32 %v918_v53, %v2015_v5  ;;  %v781_v20 = vmul.f32 0.6931472, %v1722_v62  ;;  %v1040_v2 = vsel %vm1030_vm12, %v738_v21, 0.0 }
 0x1ed   : > { %v798_v43 = vmul.f32 0.5, %v797_v11  ;;  %v751_v44 = vadd.f32 %v746_v15, %v2116_v45  ;;  %1041 = vadd.xlane.f32.xlu0 %v1040_v2  ;;  %v818_v35 = vmul.f32 0.5, %v817_v22  ;;  %1731 = vlog2.f32 %v2228_v36 }
 0x1ee   : > { %v774_v53 = vadd.f32 %v769_v38, %v2120_v46  ;;  %v790_v2 = vmul.f32 0.5, %v781_v20  ;;  %v2294_v26 = vadd.f32 %v727_v12, %v2204_v60  ;;  %vm831_vm14 = vweird.f32 %v2221_v13 }
 0x1ef   : > { %v1724_v33 = vpop.eup %1723  ;;  %v799_v27 = vsub.f32 1.5, %v798_v43  ;;  %v2286_v56 = vmax.f32 %v751_v44, 1e-07  ;;  %vm811_vm1 = vweird.f32 %v2228_v36 }
 0x1f0   : > { %v1726_v19 = vpop.eup %1725  ;;  %v826_v52 = vmul.f32 %v1724_v33, %v2221_v13  ;;  %vm832_vm13 = vweird.f32 %v1724_v33  ;;  %v2299_v42 = vmax.f32 %v774_v53, 1e-07 }
 0x1f1   : > { %v2282_v29 = vpop.eup %1727  ;;  %v800_v11 = vmul.f32 %v1720_v51, %v799_v27  ;;  %v785_v21 = vmul.f32 0.6931472, %v1726_v19  ;;  %1733 = vrsqrt.f32 %v2286_v56  ;;  %v819_v27 = vsub.f32 1.5, %v818_v35  ;;  %v699_v19 = vpop.permute.xlu0 %698  ;;  %vm833_vm15 = vmor %vm831_vm14, %vm832_vm13 }
 0x1f2   : > { %v1730_v62 = vpop.eup %1729  ;;  %v827_v15 = vmul.f32 %v1724_v33, %v826_v52  ;;  %v806_v16 = vmul.f32 %v2282_v29, %v2228_v36  ;;  %1735 = vlog2.f32 %v2286_v56  ;;  %vm812_vm2 = vweird.f32 %v2282_v29 }
 0x1f3   : > { %v804_v22 = vsel %vm803_vm9, %v1720_v51, %v800_v11  ;;  %v787_v38 = vmul.f32 0.6931472, %v1730_v62  ;;  %v1732_v5 = vpop.eup %1731  ;;  %v716_v62 = vsub.f32 %v2182_v41, %v2257_v58  ;;  %1737 = vrsqrt.f32 %v2299_v42  ;;  %vm2341_vm3 = vmor %vm811_vm1, %vm812_vm2 }
 0x1f4   : > { %v828_v43 = vmul.f32 0.5, %v827_v15  ;;  %v807_v44 = vmul.f32 %v2282_v29, %v806_v16  ;;  %v845_v52 = vmul.f32 %v804_v22, %v790_v2  ;;  %v2309_v15 = vsel %vm657_vm11, 0.0, %v699_v19 }
 0x1f5   : > { %1047 = vadd.xlane.f32.xlu0 %v2235_v47  ;;  %v2313_v16 = vmul.f32 %v2223_v32, %v819_v27  ;;  %v793_v2 = vmul.f32 0.5, %v787_v38  ;;  %v719_v47 = vsub.f32 %v2261_v59, %v2309_v15  ;;  %v726_v38 = vmul.f32 %v716_v62, %v716_v62 }
 0x1f6   : > { %v829_v28 = vsub.f32 1.5, %v828_v43  ;;  %v808_v20 = vmul.f32 0.5, %v807_v44  ;;  %v920_v12 = vmul.f32 %v845_v52, %v2019_v6  ;;  %v935_v51 = vmul.f32 %v845_v52, %v2128_v49 }
 0x1f7   : > { %v1734_v13 = vpop.eup %1733  ;;  %v783_v43 = vmul.f32 0.6931472, %v1732_v5  ;;  %v749_v36 = vmul.f32 %v2309_v15, %v2309_v15  ;;  %vm881_vm4 = vweird.f32 %v2286_v56  ;;  %1739 = vlog2.f32 %v2299_v42 }
 0x1f8   : > { %v830_v35 = vmul.f32 %v1724_v33, %v829_v28  ;;  %v809_v11 = vsub.f32 1.5, %v808_v20  ;;  %v930_v53 = vsub.f32 %v920_v12, %v925_v25  ;;  %v945_v49 = vsub.f32 %v935_v51, %v940_v34 }
 0x1f9   : > { %v792_v28 = vmul.f32 0.5, %v785_v21  ;;  %v876_v5 = vmul.f32 %v1734_v13, %v2286_v56  ;;  %v824_v21 = vsel %vm2323_vm0, %v2223_v32, %v2313_v16  ;;  %v791_v12 = vmul.f32 0.5, %v783_v43 }
 0x1fa   : > { %v834_v22 = vsel %vm833_vm15, %v1724_v33, %v830_v35  ;;  %v950_v44 = vmul.f32 %v930_v53, %v930_v53  ;;  %v955_v52 = vmul.f32 %v945_v49, %v945_v49  ;;  %v810_v34 = vmul.f32 %v2282_v29, %v809_v11  ;;  %v1736_v33 = vpop.eup %1735 }
 0x1fb   : > { %v848_v19 = vmul.f32 %v834_v22, %v793_v2  ;;  %v877_v51 = vmul.f32 %v1734_v13, %v876_v5  ;;  %v729_v32 = vmul.f32 %v719_v47, %v719_v47  ;;  %v2346_v16 = vpop.eup %1737  ;;  %v853_v62 = vmul.f32 0.6931472, %v1736_v33 }
 0x1fc   : > { %v960_v20 = vadd.f32 %v955_v52, %v950_v44  ;;  %v754_v2 = vadd.f32 %v749_v36, %v2143_v55  ;;  %vm882_vm5 = vweird.f32 %v1734_v13  ;;  %v731_v25 = vadd.f32 %v726_v38, %v2230_v37 }
 0x1fd   : > { %v923_v18 = vmul.f32 %v848_v19, %v2029_v9  ;;  %v938_v27 = vmul.f32 %v848_v19, %v2178_v40  ;;  %v814_v40 = vsel %vm2341_vm3, %v2282_v29, %v810_v34  ;;  %v878_v49 = vmul.f32 0.5, %v877_v51  ;;  %vm883_vm6 = vmor %vm881_vm4, %vm882_vm5 }
 0x1fe   : > { %v2354_v43 = vmax.f32 %v960_v20, 1e-07  ;;  %v2356_v52 = vmax.f32 %v754_v2, 1e-07  ;;  %v1049_v19 = vsel %vm1030_vm12, %v2286_v56, 0.0  ;;  %v734_v34 = vadd.f32 %v729_v32, %v2146_v57 }
 0x1ff   : > { %v933_v35 = vsub.f32 %v923_v18, %v2275_v54  ;;  %v948_v11 = vsub.f32 %v938_v27, %v2279_v30  ;;  %v836_v30 = vmul.f32 %v2346_v16, %v2299_v42  ;;  %v879_v44 = vsub.f32 1.5, %v878_v49  ;;  %1050 = vadd.xlane.f32.xlu2 %v1049_v19 }
 0x200   : > { %v846_v5 = vmul.f32 %v814_v40, %v791_v12  ;;  %v1058_v18 = vsel %vm1030_vm12, %v2356_v52, 0.0  ;;  %v861_v20 = vmul.f32 0.5, %v853_v62  ;;  %1741 = vrsqrt.f32 %v2356_v52 }
 0x201   : > { %v953_v54 = vmul.f32 %v933_v35, %v933_v35  ;;  %v958_v22 = vmul.f32 %v948_v11, %v948_v11  ;;  %v837_v29 = vmul.f32 %v2346_v16, %v836_v30  ;;  %v880_v33 = vmul.f32 %v1734_v13, %v879_v44  ;;  %1059 = vadd.xlane.f32.xlu0 %v1058_v18 }
 0x202   : > { %v736_v36 = vmax.f32 %v731_v25, 1e-07  ;;  %v739_v12 = vmax.f32 %v734_v34, 1e-07  ;;  %1743 = vrsqrt.f32 %v2354_v43  ;;  %v847_v35 = vmul.f32 %v824_v21, %v792_v28  ;;  %v1740_v28 = vpop.eup %1739 }
 0x203   : > { %v963_v47 = vadd.f32 %v958_v22, %v953_v54  ;;  %v838_v51 = vmul.f32 0.5, %v837_v29  ;;  %v884_v38 = vsel %vm883_vm6, %v1734_v13, %v880_v33  ;;  %v921_v53 = vmul.f32 %v846_v5, %v2027_v8 }
 0x204   : > { %v916_v11 = vmul.f32 %v884_v38, %v861_v20  ;;  %v1043_v56 = vsel %vm1030_vm12, %v739_v12, 0.0  ;;  %v737_v32 = vmax.f32 %v2294_v26, 1e-07  ;;  %v936_v40 = vmul.f32 %v846_v5, %v2182_v41 }
 0x205   : > { %v2366_v27 = vmax.f32 %v963_v47, 1e-07  ;;  %v839_v49 = vsub.f32 1.5, %v838_v51  ;;  %1044 = vadd.xlane.f32.xlu1 %v1043_v56  ;;  %v927_v21 = vmul.f32 %v2269_v39, %v2011_v4  ;;  %v1034_v2 = vsel %vm1030_vm12, %v736_v36, 0.0 }
 0x206   : > { %v926_v13 = vmul.f32 %v916_v11, %v2009_v3  ;;  %v941_v62 = vmul.f32 %v916_v11, %v2257_v58  ;;  %v1742_v54 = vpop.eup %1741  ;;  %v922_v22 = vmul.f32 %v847_v35, %v2021_v7  ;;  %v937_v30 = vmul.f32 %v847_v35, %v2124_v48 }
 0x207   : > { %1745 = vrsqrt.f32 %v2366_v27  ;;  %1035 = vadd.xlane.f32.xlu2 %v1034_v2  ;;  %v942_v58 = vmul.f32 %v2269_v39, %v2072_v24  ;;  %vm842_vm7 = vweird.f32 %v2346_v16  ;;  %v906_v19 = vmul.f32 %v1742_v54, %v2356_v52 }
 0x208   : > { %1747 = vlog2.f32 %v2356_v52  ;;  %v931_v26 = vsub.f32 %v921_v53, %v926_v13  ;;  %v946_v44 = vsub.f32 %v936_v40, %v941_v62  ;;  %v1744_v41 = vpop.eup %1743  ;;  %v1037_v47 = vsel %vm1030_vm12, %v737_v32, 0.0 }
 0x209   : > { %v840_v5 = vmul.f32 %v2346_v16, %v839_v49  ;;  %1038 = vadd.xlane.f32.xlu0 %v1037_v47  ;;  %v971_v48 = vmul.f32 %v1744_v41, %v2354_v43  ;;  %v789_v18 = vmul.f32 0.6931472, %v1740_v28  ;;  %v907_v20 = vmul.f32 %v1742_v54, %v906_v19 }
 0x20a   : > { %v951_v25 = vmul.f32 %v931_v26, %v931_v26  ;;  %v956_v34 = vmul.f32 %v946_v44, %v946_v44  ;;  %v932_v24 = vsub.f32 %v922_v22, %v927_v21  ;;  %v947_v39 = vsub.f32 %v937_v30, %v942_v58 }
 0x20b   : > { %vm841_vm8 = vweird.f32 %v2299_v42  ;;  %v972_v38 = vmul.f32 %v1744_v41, %v971_v48  ;;  %v908_v12 = vmul.f32 0.5, %v907_v20  ;;  %v1052_v35 = vsel %vm1030_vm12, %v2087_v31, 0.0 }
 0x20c   : > { %vm2397_vm9 = vmor %vm841_vm8, %vm842_vm7  ;;  %v961_v53 = vadd.f32 %v956_v34, %v951_v25  ;;  %v794_v40 = vmul.f32 0.5, %v789_v18  ;;  %vm912_vm10 = vweird.f32 %v1742_v54  ;;  %v952_v49 = vmul.f32 %v932_v24, %v932_v24 }
 0x20d   : > { %v1746_v29 = vpop.eup %1745  ;;  %v844_v56 = vsel %vm2397_vm9, %v2346_v16, %v840_v5  ;;  %1053 = vadd.xlane.f32.xlu1 %v1052_v35  ;;  %v973_v42 = vmul.f32 0.5, %v972_v38  ;;  %v909_v13 = vsub.f32 1.5, %v908_v12  ;;  %v957_v28 = vmul.f32 %v947_v39, %v947_v39 }
 0x20e   : > { %v1748_v33 = vpop.eup %1747  ;;  %v1007_v51 = vmul.f32 %v1746_v29, %v2366_v27  ;;  %v849_v2 = vmul.f32 %v844_v56, %v794_v40  ;;  %vm911_vm13 = vweird.f32 %v2356_v52  ;;  %v2407_v30 = vmax.f32 %v961_v53, 1e-07 }
 0x20f   : > { %v859_v32 = vmul.f32 0.6931472, %v1748_v33  ;;  %v974_v21 = vsub.f32 1.5, %v973_v42  ;;  %v910_v22 = vmul.f32 %v1742_v54, %v909_v13  ;;  %vm913_vm14 = vmor %vm911_vm13, %vm912_vm10  ;;  %v962_v19 = vadd.f32 %v957_v28, %v952_v49 }
 0x210   : > { %v1008_v11 = vmul.f32 %v1746_v29, %v1007_v51  ;;  %v924_v25 = vmul.f32 %v849_v2, %v2003_v1  ;;  %vm1013_vm15 = vcmp.eq.f32.partialorder %v2366_v27, inf  ;;  %v1016_v5 = vand.u32 2147483648, %v2366_v27 }
 0x211   : > { %v864_v26 = vmul.f32 0.5, %v859_v32  ;;  %v914_v16 = vsel %vm913_vm14, %v1742_v54, %v910_v22  ;;  %v975_v58 = vmul.f32 %v1744_v41, %v974_v21  ;;  %v939_v52 = vmul.f32 %v849_v2, %v2261_v59 }
 0x212   : > { %v1009_v62 = vmul.f32 0.5, %v1008_v11  ;;  %1749 = vrsqrt.f32 %v2407_v30  ;;  %vm1015_vm0 = vcmp.eq.f32.partialorder %v2366_v27, 0.0  ;;  %v2421_v24 = vmax.f32 %v962_v19, 1e-07 }
 0x213   : > { %v919_v47 = vmul.f32 %v914_v16, %v864_v26  ;;  %v976_v41 = vmul.f32 %v975_v58, %v2354_v43  ;;  %vm977_vm1 = vcmp.eq.f32.partialorder %v2354_v43, inf  ;;  %vm979_vm2 = vcmp.eq.f32.partialorder %v2354_v43, 0.0 }
 0x214   : > { %v1010_v31 = vsub.f32 1.5, %v1009_v62  ;;  %1751 = vrsqrt.f32 %v2421_v24  ;;  %v2432_v16 = vmax.f32 %v2158_v0, 1e-07  ;;  %v2435_v58 = vmax.f32 %v2053_v17, 1e-07 }
 0x215   : > { %v929_v48 = vmul.f32 %v919_v47, %v2039_v10  ;;  %v944_v33 = vmul.f32 %v919_v47, %v2309_v15  ;;  %v978_v15 = vsel %vm977_vm1, %v2354_v43, %v976_v41  ;;  %vm989_vm5 = vcmp.eq.f32.partialorder %v2407_v30, inf }
 0x216   : > { %v1011_v44 = vmul.f32 %v1746_v29, %v1010_v31  ;;  %vm991_vm6 = vcmp.eq.f32.partialorder %v2407_v30, 0.0  ;;  %vm1001_vm7 = vcmp.eq.f32.partialorder %v2421_v24, inf  ;;  %vm1003_vm8 = vcmp.eq.f32.partialorder %v2421_v24, 0.0 }
 0x217   : > { %v934_v29 = vsub.f32 %v924_v25, %v929_v48  ;;  %v949_v18 = vsub.f32 %v939_v52, %v944_v33  ;;  %v992_v33 = vand.u32 2147483648, %v2407_v30  ;;  %vm1137_vm9 = vweird.f32 %v2432_v16 }
 0x218   : > { %v1012_v34 = vmul.f32 %v1011_v44, %v2366_v27  ;;  %v1750_v38 = vpop.eup %1749  ;;  %vm1207_vm14 = vweird.f32 %v2435_v58 }
 0x219   : > { %v954_v59 = vmul.f32 %v934_v29, %v934_v29  ;;  %v959_v39 = vmul.f32 %v949_v18, %v949_v18  ;;  %v983_v11 = vmul.f32 %v1750_v38, %v2407_v30 }
 0x21a   : > { %v1014_v54 = vsel %vm1013_vm15, %v2366_v27, %v1012_v34  ;;  %v980_v27 = vand.u32 2147483648, %v2354_v43  ;;  %v1752_v32 = vpop.eup %1751 }
 0x21b   : > { %v1017_v20 = vsel %vm1015_vm0, %v1016_v5, %v1014_v54  ;;  %v964_v36 = vadd.f32 %v959_v39, %v954_v59  ;;  %v984_v56 = vmul.f32 %v1750_v38, %v983_v11  ;;  %v995_v62 = vmul.f32 %v1752_v32, %v2421_v24 }
 0x21c   : > { %v1070_v51 = vsel %vm1030_vm12, %v1017_v20, 0.0  ;;  %v981_v35 = vsel %vm979_vm2, %v980_v27, %v978_v15  ;;  %v2445_v54 = vmax.f32 %v2132_v50, 1e-07  ;;  %v2450_v20 = vmax.f32 %v2068_v23, 1e-07 }
 0x21d   : > { %1071 = vadd.xlane.f32.xlu1 %v1070_v51  ;;  %v969_v12 = vmax.f32 %v964_v36, 1e-07  ;;  %v1061_v53 = vsel %vm1030_vm12, %v981_v35, 0.0  ;;  %v985_v13 = vmul.f32 0.5, %v984_v56  ;;  %v996_v21 = vmul.f32 %v1752_v32, %v995_v62 }
 0x21e   : > { %v1004_v15 = vand.u32 2147483648, %v2421_v24  ;;  %vm1107_vm2 = vweird.f32 %v2445_v54 }
 0x21f   : > { %1753 = vrsqrt.f32 %v969_v12  ;;  %v986_v43 = vsub.f32 1.5, %v985_v13  ;;  %v997_v26 = vmul.f32 0.5, %v996_v21  ;;  %vm1025_vm3 = vcmp.eq.f32.partialorder %v969_v12, inf }
 0x220   : > { %v1028_v19 = vand.u32 2147483648, %v969_v12  ;;  %vm1027_vm4 = vcmp.eq.f32.partialorder %v969_v12, 0.0  ;;  %1755 = vrsqrt.f32 %v2432_v16 }
 0x221   : > { %v987_v31 = vmul.f32 %v1750_v38, %v986_v43  ;;  %v998_v34 = vsub.f32 1.5, %v997_v26  ;;  %1757 = vrsqrt.f32 %v2435_v58 }
 0x222   : > { %1759 = vrsqrt.f32 %v2445_v54 }
 0x223   : > { %v988_v25 = vmul.f32 %v987_v31, %v2407_v30  ;;  %v999_v0 = vmul.f32 %v1752_v32, %v998_v34  ;;  %1761 = vrsqrt.f32 %v2450_v20 }
 0x224   : > { %1763 = vlog2.f32 %v2432_v16 }
 0x225   : > { %1062 = vadd.xlane.f32.xlu1 %v1061_v53  ;;  %v1754_v42 = vpop.eup %1753  ;;  %v990_v17 = vsel %vm989_vm5, %v2407_v30, %v988_v25  ;;  %v1000_v51 = vmul.f32 %v999_v0, %v2421_v24  ;;  %1765 = vlog2.f32 %v2435_v58  ;;  %v1241_v25 = vmax.f32 %v2150_v61, 1e-07 }
 0x226   : > { %v1019_v40 = vmul.f32 %v1754_v42, %v969_v12  ;;  %v993_v29 = vsel %vm991_vm6, %v992_v33, %v990_v17  ;;  %v1756_v18 = vpop.eup %1755  ;;  %1767 = vlog2.f32 %v2445_v54 }
 0x227   : > { %v1758_v59 = vpop.eup %1757  ;;  %v1064_v39 = vsel %vm1030_vm12, %v993_v29, 0.0  ;;  %v1132_v50 = vmul.f32 %v1756_v18, %v2432_v16  ;;  %v1002_v30 = vsel %vm1001_vm7, %v2421_v24, %v1000_v51  ;;  %1769 = vlog2.f32 %v2450_v20 }
 0x228   : > { %v1020_v49 = vmul.f32 %v1754_v42, %v1019_v40  ;;  %v1202_v23 = vmul.f32 %v1758_v59, %v2435_v58  ;;  %v1005_v36 = vsel %vm1003_vm8, %v1004_v15, %v1002_v30  ;;  %v2463_v27 = vpop.eup %1759  ;;  %vm1208_vm10 = vweird.f32 %v1758_v59 }
 0x229   : > { %v1133_v38 = vmul.f32 %v1756_v18, %v1132_v50  ;;  %v2465_v35 = vpop.eup %1761  ;;  %v1067_v11 = vsel %vm1030_vm12, %v1005_v36, 0.0  ;;  %v1102_v56 = vmul.f32 %v2463_v27, %v2445_v54  ;;  %vm1209_vm15 = vmor %vm1207_vm14, %vm1208_vm10  ;;  %v2482_v16 = vmax.f32 %v2154_v63, 1e-07  ;;  %v2754_v50 = vld [vmem:[#allocation4_spill] sm:$0xff] }
 0x22a   : > { %v1021_v28 = vmul.f32 0.5, %v1020_v49  ;;  %v1172_v32 = vmul.f32 %v2465_v35, %v2450_v20  ;;  %v1764_v13 = vpop.eup %1763  ;;  %vm1108_vm0 = vweird.f32 %v2463_v27  ;;  %v2487_v51 = vmax.f32 %v2116_v45, 1e-07 }
 0x22b   : > { %v1134_v53 = vmul.f32 0.5, %v1133_v38  ;;  %v1103_v40 = vmul.f32 %v2463_v27, %v1102_v56  ;;  %vm1178_vm1 = vweird.f32 %v2465_v35  ;;  %1771 = vrsqrt.f32 %v2482_v16  ;;  %v2755_v38 = vld [vmem:[#allocation6_spill] sm:$0xff]  ;;  %v2757_v56 = vld [vmem:[#allocation7_spill] sm:$0xff] }
 0x22c   : > { %v1022_v2 = vsub.f32 1.5, %v1021_v28  ;;  %v1173_v62 = vmul.f32 %v2465_v35, %v1172_v32  ;;  %v1766_v28 = vpop.eup %1765  ;;  %v2498_v45 = vmax.f32 %v2120_v46, 1e-07  ;;  %1773 = vrsqrt.f32 %v2487_v51 }
 0x22d   : > { %v1104_v21 = vmul.f32 0.5, %v1103_v40  ;;  %v1163_v26 = vmul.f32 0.6931472, %v1766_v28  ;;  %v1768_v34 = vpop.eup %1767  ;;  %v1244_v32 = vmax.f32 %v2757_v56, 1e-07  ;;  %v2758_v28 = vld [vmem:[#allocation3_spill] sm:$0xff]  ;;  %vm1117_vm7 = vweird.f32 %v2482_v16 }
 0x22e   : > { %v1023_v22 = vmul.f32 %v1754_v42, %v1022_v2  ;;  %v1135_v42 = vsub.f32 1.5, %v1134_v53  ;;  %v1093_v2 = vmul.f32 0.6931472, %v1764_v13  ;;  %v1770_v17 = vpop.eup %1769  ;;  %1775 = vrsqrt.f32 %v2498_v45 }
 0x22f   : > { %v1169_v33 = vmul.f32 0.5, %v1163_v26 }
 0x230   : > { %v1024_v44 = vmul.f32 %v1023_v22, %v969_v12  ;;  %v1136_v43 = vmul.f32 %v1756_v18, %v1135_v42  ;;  %v1174_v22 = vmul.f32 0.5, %v1173_v62 }
 0x231   : > { %v2510_v46 = vpop.eup %1771 }
 0x232   : > { %v1026_v47 = vsel %vm1025_vm3, %v969_v12, %v1024_v44  ;;  %v1203_v12 = vmul.f32 %v1758_v59, %v1202_v23  ;;  %vm1109_vm3 = vmor %vm1107_vm2, %vm1108_vm0  ;;  %v2516_v42 = vpop.eup %1773  ;;  %vm1118_vm6 = vweird.f32 %v2510_v46  ;;  %vm1147_vm0 = vweird.f32 %v2498_v45 }
 0x233   : > { %v1029_v5 = vsel %vm1027_vm4, %v1028_v19, %v1026_v47  ;;  %v1057_v48 = vpop.xlane.xlu2 %1056  ;;  %v1105_v19 = vsub.f32 1.5, %v1104_v21  ;;  %v1099_v47 = vmul.f32 0.5, %v1093_v2  ;;  %vm1177_vm4 = vweird.f32 %v2450_v20 }
 0x234   : > { %v1073_v52 = vsel %vm1030_vm12, %v1029_v5, 0.0  ;;  %v1254_v41 = vadd.f32 %v2435_v58, %v1057_v48  ;;  %v1204_v24 = vmul.f32 0.5, %v1203_v12  ;;  %vm1138_vm12 = vweird.f32 %v1756_v18  ;;  %vm1179_vm5 = vmor %vm1177_vm4, %vm1178_vm1 }
 0x235   : > { %1074 = vadd.xlane.f32.xlu2 %v1073_v52  ;;  %vm1139_vm13 = vmor %vm1137_vm9, %vm1138_vm12  ;;  %v1175_v5 = vsub.f32 1.5, %v1174_v22  ;;  %v1106_v29 = vmul.f32 %v2463_v27, %v1105_v19  ;;  %v1182_v21 = vmul.f32 %v2516_v42, %v2487_v51  ;;  %vm1188_vm8 = vweird.f32 %v2516_v42 }
 0x236   : > { %v1205_v49 = vsub.f32 1.5, %v1204_v24  ;;  %v1140_v44 = vsel %vm1139_vm13, %v1756_v18, %v1136_v43  ;;  %v1087_v18 = vmul.f32 0.6931472, %v1768_v34  ;;  %v2514_v24 = vmax.f32 %v2143_v55, 1e-07  ;;  %v2525_v55 = vpop.eup %1775  ;;  %vm2573_vm12 = vmor %vm1117_vm7, %vm1118_vm6 }
 0x237   : > { %v1154_v0 = vmul.f32 %v1140_v44, %v1099_v47  ;;  %v1176_v61 = vmul.f32 %v2465_v35, %v1175_v5  ;;  %v1142_v26 = vmul.f32 %v2525_v55, %v2498_v45  ;;  %v1183_v19 = vmul.f32 %v2516_v42, %v1182_v21 }
 0x238   : > { %v1206_v31 = vmul.f32 %v1758_v59, %v1205_v49  ;;  %v1096_v23 = vmul.f32 0.5, %v1087_v18  ;;  %v1112_v49 = vmul.f32 %v2510_v46, %v2482_v16  ;;  %vm1187_vm9 = vweird.f32 %v2487_v51 }
 0x239   : > { %v1229_v63 = vmul.f32 %v1154_v0, %v2029_v9  ;;  %v1180_v54 = vsel %vm1179_vm5, %v2465_v35, %v1176_v61  ;;  %v2504_v9 = vmax.f32 %v2755_v38, 1e-07  ;;  %v1143_v0 = vmul.f32 %v2525_v55, %v1142_v26  ;;  %vm2590_vm10 = vmor %vm1187_vm9, %vm1188_vm8 }
 0x23a   : > { %v1210_v52 = vsel %vm1209_vm15, %v1758_v59, %v1206_v31  ;;  %v1157_v59 = vmul.f32 0.6931472, %v1770_v17  ;;  %v1113_v22 = vmul.f32 %v2510_v46, %v1112_v49  ;;  %vm1148_vm14 = vweird.f32 %v2525_v55 }
 0x23b   : > { %v1224_v58 = vmul.f32 %v1210_v52, %v1169_v33  ;;  %1777 = vrsqrt.f32 %v2504_v9  ;;  %vm1127_vm2 = vweird.f32 %v2504_v9  ;;  %vm1217_vm6 = vweird.f32 %v2514_v24 }
 0x23c   : > { %v1166_v15 = vmul.f32 0.5, %v1157_v59  ;;  %v1114_v52 = vmul.f32 0.5, %v1113_v22 }
 0x23d   : > { %1065 = vadd.xlane.f32.xlu2 %v1064_v39  ;;  %v1110_v39 = vsel %vm1109_vm3, %v2463_v27, %v1106_v29  ;;  %v1234_v30 = vmul.f32 %v1224_v58, %v2754_v50 }
 0x23e   : > { %1419 = vrot.lane.b32.xlu1 %v1254_v41, %s1832_s22  ;;  %v1151_v36 = vmul.f32 %v1110_v39, %v1096_v23  ;;  %v1221_v27 = vmul.f32 %v1180_v54, %v1166_v15  ;;  %v1115_v29 = vsub.f32 1.5, %v1114_v52 }
 0x23f   : > { %v1239_v12 = vsub.f32 %v1229_v63, %v1234_v30  ;;  %v1144_v63 = vmul.f32 0.5, %v1143_v0 }
 0x240   : > { %v1226_v40 = vmul.f32 %v1151_v36, %v2019_v6  ;;  %v1231_v43 = vmul.f32 %v1221_v27, %v2758_v28  ;;  %v1116_v23 = vmul.f32 %v2510_v46, %v1115_v29 }
 0x241   : > { %v1259_v62 = vmul.f32 %v1239_v12, %v1239_v12  ;;  %v2533_v31 = vpop.eup %1777  ;;  %v1145_v12 = vsub.f32 1.5, %v1144_v63 }
 0x242   : > { %v1236_v2 = vsub.f32 %v1226_v40, %v1231_v43  ;;  %vm1128_vm15 = vweird.f32 %v2533_v31  ;;  %v1245_v40 = vmax.f32 %v2146_v57, 1e-07  ;;  %v1833_v57 = vmov 0.0  }
 0x243   : > { %v2530_v6 = vmax.f32 %v1259_v62, 1e-07  ;;  %vm2620_vm4 = vmor %vm1127_vm2, %vm1128_vm15 }
 0x245   : > { %1068 = vadd.xlane.f32.xlu2 %v1067_v11  ;;  %v2756_v11 = vld [vmem:[#allocation5_spill] sm:$0xff]  ;;  %vm1309_vm9 = vcmp.eq.f32.partialorder %v2530_v6, inf }
 0x246   : > { %v2507_v53 = vmax.f32 %v2756_v11, 1e-07 }
 0x248   : > { %1779 = vrsqrt.f32 %v2507_v53  ;;  %vm1197_vm13 = vweird.f32 %v2507_v53 }
 0x249   : > { %1781 = vrsqrt.f32 %v2514_v24 }
 0x24a   : > { %1783 = vrsqrt.f32 %v2530_v6 }
 0x24b   : > { %1785 = vlog2.f32 %v2482_v16  ;;  %v1120_v16 = vsel %vm2573_vm12, %v2510_v46, %v1116_v23  ;;  %v1243_v23 = vmax.f32 %v2204_v60, 1e-07  ;;  %vm1149_vm12 = vmor %vm1147_vm0, %vm1148_vm14 }
 0x24c   : > { %1787 = vlog2.f32 %v2487_v51 }
 0x24d   : > { %1789 = vlog2.f32 %v2498_v45 }
 0x24e   : > { %v2537_v44 = vpop.eup %1779  ;;  %1791 = vlog2.f32 %v2504_v9 }
 0x24f   : > { %v2542_v5 = vpop.eup %1781  ;;  %v1192_v17 = vmul.f32 %v2537_v44, %v2507_v53  ;;  %vm1198_vm1 = vweird.f32 %v2537_v44 }
 0x250   : > { %v1212_v33 = vmul.f32 %v2542_v5, %v2514_v24  ;;  %v2558_v18 = vpop.eup %1783  ;;  %vm1218_vm3 = vweird.f32 %v2542_v5  ;;  %vm2633_vm5 = vmor %vm1197_vm13, %vm1198_vm1 }
 0x251   : > { %v1193_v61 = vmul.f32 %v2537_v44, %v1192_v17  ;;  %v1786_v59 = vpop.eup %1785  ;;  %v1303_v15 = vmul.f32 %v2558_v18, %v2530_v6  ;;  %vm2644_vm7 = vmor %vm1217_vm6, %vm1218_vm3  ;;  %vm1490_vm6 = vcmp.eq.s32.totalorder %v2044_v14, 2 }
 0x252   : > { %v1213_v50 = vmul.f32 %v2542_v5, %v1212_v33  ;;  %v1788_v30 = vpop.eup %1787  ;;  %v1089_v36 = vmul.f32 0.6931472, %v1786_v59 }
 0x253   : > { %v1194_v38 = vmul.f32 0.5, %v1193_v61  ;;  %v1790_v27 = vpop.eup %1789  ;;  %v1304_v43 = vmul.f32 %v2558_v18, %v1303_v15 }
 0x254   : > { %v1792_v49 = vpop.eup %1791  ;;  %v1097_v22 = vmul.f32 0.5, %v1089_v36  ;;  %v2594_v26 = vmul.f32 0.6931472, %v1790_v27 }
 0x255   : > { %v1305_v33 = vmul.f32 0.5, %v1304_v43  ;;  %v1091_v61 = vmul.f32 0.6931472, %v1792_v49 }
 0x257   : > { %v1033_v48 = vpop.xlane.xlu1 %1032 }
 0x258   : > { %v1246_v41 = vadd.f32 %v1241_v25, %v1033_v48  ;;  %v1256_v25 = vmul.f32 %v1236_v2, %v1236_v2  ;;  %v1122_v48 = vmul.f32 %v2533_v31, %v2504_v9  ;;  %v1195_v2 = vsub.f32 1.5, %v1194_v38 }
 0x25a   : > { %1369 = vrot.lane.b32.xlu0 %v1246_v41, %s1832_s22  ;;  %v2554_v41 = vmax.f32 %v1256_v25, 1e-07  ;;  %v1123_v58 = vmul.f32 %v2533_v31, %v1122_v48  ;;  %v1152_v48 = vmul.f32 %v1120_v16, %v1097_v22 }
 0x25c   : > { %1793 = vrsqrt.f32 %v2554_v41  ;;  %v1124_v54 = vmul.f32 0.5, %v1123_v58  ;;  %v1196_v58 = vmul.f32 %v2537_v44, %v1195_v2  ;;  %v1227_v15 = vmul.f32 %v1152_v48, %v2027_v8 }
 0x25d   : > { %1795 = vlog2.f32 %v2507_v53  ;;  %vm1273_vm13 = vcmp.eq.f32.partialorder %v2554_v41, inf  ;;  %vm1275_vm14 = vcmp.eq.f32.partialorder %v2554_v41, 0.0 }
 0x25e   : > { %1797 = vlog2.f32 %v2514_v24  ;;  %v1125_v28 = vsub.f32 1.5, %v1124_v54 }
 0x260   : > { %v1042_v35 = vpop.xlane.xlu0 %1041 }
 0x261   : > { %v1249_v13 = vadd.f32 %v1244_v32, %v1042_v35  ;;  %v1214_v35 = vmul.f32 0.5, %v1213_v50 }
 0x262   : > { %v2586_v21 = vpop.eup %1793 }
 0x263   : > { %1375 = vrot.lane.b32.xlu2 %v1249_v13, %s1832_s22  ;;  %v1159_v13 = vmul.f32 0.6931472, %v1788_v30  ;;  %v1215_v52 = vsub.f32 1.5, %v1214_v35  ;;  %v1267_v29 = vmul.f32 %v2586_v21, %v2554_v41 }
 0x265   : > { %v1167_v17 = vmul.f32 0.5, %v1159_v13 }
 0x268   : > { %v1048_v47 = vpop.xlane.xlu0 %1047 }
 0x269   : > { %v1251_v34 = vadd.f32 %v2450_v20, %v1048_v47  ;;  %v1184_v20 = vmul.f32 0.5, %v1183_v19  ;;  %v2601_v19 = vmul.f32 %v2525_v55, %v1145_v12  ;;  %v2763_v47 = vlaneseq }
 0x26a   : > { %v1306_v12 = vsub.f32 1.5, %v1305_v33  ;;  %v1312_v33 = vand.u32 2147483648, %v2530_v6 }
 0x26b   : > { %1413 = vrot.lane.b32.xlu2 %v1251_v34, %s1832_s22  ;;  %v1185_v39 = vsub.f32 1.5, %v1184_v20  ;;  %v1332_v25 = vshrl.u32 %v2763_v47, 7  ;;  %v1796_v34 = vpop.eup %1795  ;;  %v1126_v20 = vmul.f32 %v2533_v31, %v1125_v28 }
 0x26c   : > { %v1161_v54 = vmul.f32 0.6931472, %v1796_v34  ;;  %v1307_v2 = vmul.f32 %v2558_v18, %v1306_v12  ;;  %v1100_v18 = vmul.f32 0.5, %v2594_v26 }
 0x26d   : > { %v1186_v56 = vmul.f32 %v2516_v42, %v1185_v39  ;;  %v1798_v39 = vpop.eup %1797  ;;  %v1336_v30 = vadd.s32 32, %v1332_v25  ;;  %v1130_v9 = vsel %vm2620_vm4, %v2533_v31, %v1126_v20 }
 0x26e   : > { %v1165_v27 = vmul.f32 0.6931472, %v1798_v39  ;;  %v1168_v13 = vmul.f32 0.5, %v1161_v54  ;;  %v1308_v45 = vmul.f32 %v1307_v2, %v2530_v6 }
 0x26f   : > { %v1190_v46 = vsel %vm2590_vm10, %v2516_v42, %v1186_v56  ;;  %v1242_v42 = vmax.f32 %v2230_v37, 1e-07  ;;  %v1216_v37 = vmul.f32 %v2542_v5, %v1215_v52  ;;  %v1098_v56 = vmul.f32 0.5, %v1091_v61 }
 0x270   : > { %v1222_v63 = vmul.f32 %v1190_v46, %v1167_v17  ;;  %vm1348_vm8 = vcmp.lt.s32.totalorder %v1336_v30, 33  ;;  %v1170_v46 = vmul.f32 0.5, %v1165_v27  ;;  %v1310_v26 = vsel %vm1309_vm9, %v2530_v6, %v1308_v45 }
 0x271   : > { %v1153_v49 = vmul.f32 %v1130_v9, %v1098_v56  ;;  %v2660_v47 = vsel %vm1348_vm8, 1.0, %v1833_v57  ;;  %vm1311_vm10 = vcmp.eq.f32.partialorder %v2530_v6, 0.0 }
 0x272   : > { %v1051_v11 = vpop.xlane.xlu2 %1050  ;;  %v1232_v31 = vmul.f32 %v1222_v63, %v2009_v3  ;;  %v1220_v3 = vsel %vm2644_vm7, %v2542_v5, %v1216_v37  ;;  %v1150_v5 = vsel %vm1149_vm12, %v2525_v55, %v2601_v19  ;;  %vm1489_vm7 = vcmp.eq.s32.totalorder %v2044_v14, 1 }
 0x273   : > { %v1252_v32 = vadd.f32 %v2487_v51, %v1051_v11  ;;  %v1268_v11 = vmul.f32 %v2586_v21, %v1267_v29  ;;  %v1225_v25 = vmul.f32 %v1220_v3, %v1170_v46 }
 0x274   : > { %v2578_v62 = vpop.xlane.xlu0 %1059  ;;  %v1237_v28 = vsub.f32 %v1227_v15, %v1232_v31 }
 0x275   : > { %1415 = vrot.lane.b32.xlu0 %v1252_v32, %s1832_s22  ;;  %v1200_v32 = vsel %vm2633_vm5, %v2537_v44, %v1196_v58  ;;  %v1269_v22 = vmul.f32 0.5, %v1268_v11  ;;  %v1235_v55 = vmul.f32 %v1225_v25, %v2039_v10  ;;  %v1313_v58 = vsel %vm1311_vm10, %v1312_v33, %v1310_v26 }
 0x276   : > { %v1223_v51 = vmul.f32 %v1200_v32, %v1168_v13  ;;  %v1257_v34 = vmul.f32 %v1237_v28, %v1237_v28  ;;  %v1255_v15 = vadd.f32 %v2514_v24, %v2578_v62  ;;  %vm1384_vm5 = vcmask 7168  }
 0x277   : > { %v1270_v48 = vsub.f32 1.5, %v1269_v22 }
 0x278   : > { %v1045_v0 = vpop.xlane.xlu1 %1044  ;;  %v1233_v17 = vmul.f32 %v1223_v51, %v2011_v4  ;;  %v1407_v9 = vmul.f32 %v2660_v47, %v1255_v15 }
 0x279   : > { %v1250_v44 = vadd.f32 %v1245_v40, %v1045_v0  ;;  %v1155_v0 = vmul.f32 %v1150_v5, %v1100_v18  ;;  %v1271_v20 = vmul.f32 %v2586_v21, %v1270_v48 }
 0x27a   : > { %v1036_v59 = vpop.xlane.xlu2 %1035 }
 0x27b   : > { %v1247_v50 = vadd.f32 %v1242_v42, %v1036_v59  ;;  %v1363_v52 = vmul.f32 %v2660_v47, %v1250_v44  ;;  %v1230_v42 = vmul.f32 %v1155_v0, %v2003_v1  ;;  %v1272_v63 = vmul.f32 %v1271_v20, %v2554_v41 }
 0x27c   : > { %v1039_v36 = vpop.xlane.xlu0 %1038 }
 0x27d   : > { %1371 = vrot.lane.b32.xlu1 %v1247_v50, %s1832_s22  ;;  %v1248_v60 = vadd.f32 %v1243_v23, %v1039_v36  ;;  %v1240_v29 = vsub.f32 %v1230_v42, %v1235_v55  ;;  %v1274_v1 = vsel %vm1273_vm13, %v2554_v41, %v1272_v63  ;;  %v1276_v50 = vand.u32 2147483648, %v2554_v41 }
 0x27f   : > { %1373 = vrot.lane.b32.xlu2 %v1248_v60, %s1832_s22  ;;  %v1260_v39 = vmul.f32 %v1240_v29, %v1240_v29  ;;  %v1277_v30 = vsel %vm1275_vm14, %v1276_v50, %v1274_v1 }
 0x280   : > { %v1054_v16 = vpop.xlane.xlu1 %1053 }
 0x281   : > { %v1253_v43 = vadd.f32 %v2507_v53, %v1054_v16  ;;  %v1228_v53 = vmul.f32 %v1153_v49, %v2021_v7  ;;  %v1262_v7 = vmax.f32 %v1257_v34, 1e-07  ;;  %v1265_v6 = vmax.f32 %v1260_v39, 1e-07 }
 0x283   : > { %v1238_v19 = vsub.f32 %v1228_v53, %v1233_v17  ;;  %1799 = vrsqrt.f32 %v1262_v7  ;;  %vm1285_vm15 = vcmp.eq.f32.partialorder %v1262_v7, inf  ;;  %v1288_v16 = vand.u32 2147483648, %v1262_v7 }
 0x284   : > { %vm1287_vm0 = vcmp.eq.f32.partialorder %v1262_v7, 0.0  ;;  %vm1321_vm3 = vcmp.eq.f32.partialorder %v1265_v6, inf  ;;  %v1324_v34 = vand.u32 2147483648, %v1265_v6  ;;  %vm1323_vm4 = vcmp.eq.f32.partialorder %v1265_v6, 0.0 }
 0x285   : > { %1417 = vrot.lane.b32.xlu1 %v1253_v43, %s1832_s22  ;;  %v1258_v4 = vmul.f32 %v1238_v19, %v1238_v19 }
 0x287   : > { %1377 = vrot.lane.b32.xlu2 %v1363_v52, %s1832_s22  ;;  %v1263_v59 = vmax.f32 %v1258_v4, 1e-07 }
 0x289   : > { %v1800_v21 = vpop.eup %1799  ;;  %1801 = vrsqrt.f32 %v1263_v59  ;;  %vm1297_vm1 = vcmp.eq.f32.partialorder %v1263_v59, inf  ;;  %v1300_v57 = vand.u32 2147483648, %v1263_v59  ;;  %vm1299_vm2 = vcmp.eq.f32.partialorder %v1263_v59, 0.0 }
 0x28a   : > { %v1279_v37 = vmul.f32 %v1800_v21, %v1262_v7  ;;  %1803 = vrsqrt.f32 %v1265_v6 }
 0x28c   : > { %v1280_v38 = vmul.f32 %v1800_v21, %v1279_v37 }
 0x28e   : > { %v1281_v60 = vmul.f32 0.5, %v1280_v38 }
 0x28f   : > { %v1802_v36 = vpop.eup %1801 }
 0x290   : > { %v1072_v61 = vpop.xlane.xlu1 %1071  ;;  %v1291_v12 = vmul.f32 %v1802_v36, %v1263_v59  ;;  %v1804_v11 = vpop.eup %1803  ;;  %v1282_v8 = vsub.f32 1.5, %v1281_v60 }
 0x291   : > { %v1329_v10 = vadd.f32 %v1313_v58, %v1072_v61  ;;  %v1315_v41 = vmul.f32 %v1804_v11, %v1265_v6 }
 0x292   : > { %v1292_v27 = vmul.f32 %v1802_v36, %v1291_v12  ;;  %v1283_v31 = vmul.f32 %v1800_v21, %v1282_v8 }
 0x293   : > { %1462 = vrot.lane.b32.xlu0 %v1329_v10, %s1832_s22  ;;  %v1316_v56 = vmul.f32 %v1804_v11, %v1315_v41 }
 0x294   : > { %v1293_v32 = vmul.f32 0.5, %v1292_v27  ;;  %v1284_v13 = vmul.f32 %v1283_v31, %v1262_v7 }
 0x295   : > { %v1317_v40 = vmul.f32 0.5, %v1316_v56 }
 0x296   : > { %v1294_v3 = vsub.f32 1.5, %v1293_v32  ;;  %v1286_v62 = vsel %vm1285_vm15, %v1262_v7, %v1284_v13 }
 0x297   : > { %v1318_v24 = vsub.f32 1.5, %v1317_v40  ;;  %v1289_v28 = vsel %vm1287_vm0, %v1288_v16, %v1286_v62 }
 0x298   : > { %v1063_v23 = vpop.xlane.xlu1 %1062  ;;  %v1295_v49 = vmul.f32 %v1802_v36, %v1294_v3 }
 0x299   : > { %v1326_v54 = vadd.f32 %v1277_v30, %v1063_v23  ;;  %v1319_v43 = vmul.f32 %v1804_v11, %v1318_v24 }
 0x29a   : > { %v1296_v22 = vmul.f32 %v1295_v49, %v1263_v59 }
 0x29b   : > { %1456 = vrot.lane.b32.xlu1 %v1326_v54, %s1832_s22  ;;  %v1320_v51 = vmul.f32 %v1319_v43, %v1265_v6 }
 0x29c   : > { %v1298_v46 = vsel %vm1297_vm1, %v1263_v59, %v1296_v22 }
 0x29d   : > { %v1301_v5 = vsel %vm1299_vm2, %v1300_v57, %v1298_v46  ;;  %v1322_v53 = vsel %vm1321_vm3, %v1265_v6, %v1320_v51 }
 0x29e   : > { %v1325_v52 = vsel %vm1323_vm4, %v1324_v34, %v1322_v53 }
 0x2a3   : > { %1421 = vrot.lane.b32.xlu1 %v1407_v9, %s1832_s22 }
 0x2a8   : > { %v1075_v35 = vpop.xlane.xlu2 %1074 }
 0x2a9   : > { %v1330_v45 = vadd.f32 %v1325_v52, %v1075_v35 }
 0x2ab   : > { %v1450_v48 = vmul.f32 %v2660_v47, %v1330_v45 }
 0x2b0   : > { %v1066_v44 = vpop.xlane.xlu2 %1065  ;;  %v1420_v55 = vpop.permute.xlu1 %1419 }
 0x2b1   : > { %v1327_v2 = vadd.f32 %v1289_v28, %v1066_v44  ;;  %v1433_v54 = vsel %vm1384_vm5, %v1420_v55, 0.0 }
 0x2b3   : > { %1458 = vrot.lane.b32.xlu0 %v1327_v2, %s1832_s22 }
 0x2b8   : > { %v1069_v25 = vpop.xlane.xlu2 %1068 }
 0x2b9   : > { %v1328_v18 = vadd.f32 %v1301_v5, %v1069_v25 }
 0x2bb   : > { %1460 = vrot.lane.b32.xlu0 %v1328_v18, %s1832_s22 }
 0x2c0   : > { %v1376_v17 = vpop.permute.xlu2 %1375 }
 0x2c1   : > { %v1390_v47 = vsel %vm1384_vm5, %v1376_v17, 0.0 }
 0x2c3   : > { %1464 = vrot.lane.b32.xlu0 %v1450_v48, %s1832_s22 }
 0x2c8   : > { %v1414_v0 = vpop.permute.xlu2 %1413 }
 0x2c9   : > { %v1428_v50 = vsel %vm1384_vm5, %v1414_v0, 0.0 }
 0x2cc   : > { %v1370_v7 = vpop.permute.xlu0 %1369 }
 0x2cd   : > { %v1385_v20 = vsel %vm1384_vm5, %v1370_v7, 0.0 }
 0x2d9   : > { %v1374_v19 = vpop.permute.xlu2 %1373 }
 0x2da   : > { %v1388_v4 = vsel %vm1384_vm5, %v1374_v19, 0.0 }
 0x2e1   : > { %v1378_v29 = vpop.permute.xlu2 %1377 }
 0x2e2   : > { %v1392_v10 = vsel %vm1384_vm5, %v1378_v29, 0.0 }
 0x2e7   : > { %v1416_v39 = vpop.permute.xlu0 %1415 }
 0x2e8   : > { %v1429_v1 = vsel %vm1384_vm5, %v1416_v39, 0.0 }
 0x2e9   : > { %v1430_v30 = vadd.f32 %v1429_v1, %v1428_v50 }
 0x2ef   : > { %v1372_v26 = vpop.permute.xlu1 %1371 }
 0x2f0   : > { %v1386_v42 = vsel %vm1384_vm5, %v1372_v26, 0.0 }
 0x2f1   : > { %v1387_v33 = vadd.f32 %v1386_v42, %v1385_v20 }
 0x2f3   : > { %v1389_v58 = vadd.f32 %v1388_v4, %v1387_v33 }
 0x2f5   : > { %v1391_v61 = vadd.f32 %v1390_v47, %v1389_v58 }
 0x2f7   : > { %v1393_v63 = vadd.f32 %v1392_v10, %v1391_v61  ;;  %v1418_v59 = vpop.permute.xlu1 %1417 }
 0x2f8   : > { %v1431_v6 = vsel %vm1384_vm5, %v1418_v59, 0.0 }
 0x2f9   : > { %1394 = vadd.xlane.f32.xlu2 %v1393_v63  ;;  %v1432_v23 = vadd.f32 %v1431_v6, %v1430_v30 }
 0x2fb   : > { %v1434_v15 = vadd.f32 %v1433_v54, %v1432_v23 }
 0x305   : > { %v1463_v9 = vpop.permute.xlu0 %1462 }
 0x306   : > { %v1476_v31 = vsel %vm1384_vm5, %v1463_v9, 0.0 }
 0x30d   : > { %v1457_v21 = vpop.permute.xlu1 %1456 }
 0x30e   : > { %v1471_v41 = vsel %vm1384_vm5, %v1457_v21, 0.0 }
 0x315   : > { %v1422_v37 = vpop.permute.xlu1 %1421 }
 0x316   : > { %v1435_v38 = vsel %vm1384_vm5, %v1422_v37, 0.0 }
 0x317   : > { %v1436_v36 = vadd.f32 %v1435_v38, %v1434_v15 }
 0x319   : > { %1437 = vadd.xlane.f32.xlu1 %v1436_v36 }
 0x325   : > { %v1459_v60 = vpop.permute.xlu0 %1458 }
 0x326   : > { %v1472_v12 = vsel %vm1384_vm5, %v1459_v60, 0.0 }
 0x327   : > { %v1473_v27 = vadd.f32 %v1472_v12, %v1471_v41 }
 0x32d   : > { %v1461_v11 = vpop.permute.xlu0 %1460 }
 0x32e   : > { %v1474_v8 = vsel %vm1384_vm5, %v1461_v11, 0.0 }
 0x32f   : > { %v1475_v56 = vadd.f32 %v1474_v8, %v1473_v27 }
 0x331   : > { %v1477_v35 = vadd.f32 %v1476_v31, %v1475_v56 }
 0x335   : > { %v1465_v32 = vpop.permute.xlu0 %1464 }
 0x336   : > { %v1478_v40 = vsel %vm1384_vm5, %v1465_v32, 0.0 }
 0x337   : > { %v1479_v13 = vadd.f32 %v1478_v40, %v1477_v35 }
 0x339   : > { %1480 = vadd.xlane.f32.xlu0 %v1479_v13 }
 0x36c   : > { %v1395_v3 = vpop.xlane.xlu2 %1394 }
 0x36d   : > { %v1396_v24 = vrot.slane %v1395_v3, 4 }
 0x36f   : > { %v1397_v62 = vadd.f32 %v1396_v24, %v1395_v3 }
 0x371   : > { %v1398_v49 = vrot.slane %v1397_v62, 2 }
 0x373   : > { %v1399_v16 = vadd.f32 %v1398_v49, %v1397_v62 }
 0x375   : > { %v1400_v28 = vrot.slane %v1399_v16, 1 }
 0x377   : > { %v1401_v44 = vadd.f32 %v1400_v28, %v1399_v16 }
 0x379   : > { %1669 = vpush %v1401_v44 }
 0x38c   : > { %v1438_v43 = vpop.xlane.xlu1 %1437 }
 0x38d   : > { %v1439_v2 = vrot.slane %v1438_v43, 4 }
 0x38f   : > { %v1440_v22 = vadd.f32 %v1439_v2, %v1438_v43 }
 0x391   : > { %v1441_v51 = vrot.slane %v1440_v22, 2 }
 0x393   : > { %v1442_v46 = vadd.f32 %v1441_v51, %v1440_v22 }
 0x395   : > { %v1443_v57 = vrot.slane %v1442_v46, 1 }
 0x397   : > { %v1444_v5 = vadd.f32 %v1443_v57, %v1442_v46 }
 0x399   : > { %1671 = vpush %v1444_v5 }
 0x3aa   : > { %s1670_s23 = spop %1669 }
 0x3ab   : > { %v1495_v19 = vstv %s1670_s23 }
 0x3ac   : > { %v1481_v25 = vpop.xlane.xlu0 %1480 }
 0x3ad   : > { %v1482_v53 = vrot.slane %v1481_v25, 4 }
 0x3af   : > { %v1483_v18 = vadd.f32 %v1482_v53, %v1481_v25 }
 0x3b1   : > { %v1484_v34 = vrot.slane %v1483_v18, 2 }
 0x3b3   : > { %v1485_v52 = vadd.f32 %v1484_v34, %v1483_v18 }
 0x3b5   : > { %v1486_v45 = vrot.slane %v1485_v52, 1 }
 0x3b7   : > { %v1487_v48 = vadd.f32 %v1486_v45, %v1485_v52 }
 0x3b9   : > { %1673 = vpush %v1487_v48 }
 0x3ca   : > { %s1672_s24 = spop %1671 }
 0x3cb   : > { %v1493_v0 = vstv %s1672_s24 }
 0x3ea   : > { %s1674_s26 = spop %1673 }
 0x3eb   : > { %v1491_v17 = vstv %s1674_s26 }
 0x3ec   : > { %v1492_v55 = vsel %vm1490_vm6, %v1491_v17, 0.0 }
 0x3ed   : > { %v1494_v7 = vsel %vm1489_vm7, %v1493_v0, %v1492_v55 }
 0x3ee   : > { %v1496_v26 = vsel %vm657_vm11, %v1495_v19, %v1494_v7 }
 0x3ef   : > { %1497 = vst [vmem:[%s384_s29] sm:$0xff] %v1496_v26 }
 0x3f0 PF: > { %s15_s20 = sadd.s32 1, %s1827_s20   ;;  %s2770_s18 = smov %s1823_s19 }
 0x3f1   : > { %p12_p5 = scmp.ge.s32.totalorder %s15_s20, 4   ;;  %s2771_s19 = smov %s2773_s21 }
 0x3f3   :  { %14 = sbr.rel (!%p12_p5) target bundleno = 2 (0x2), region = 79 }

</bundles_post_ra>
